<compile_context>
chip_gen: v7x
topology: tpu7x:2x2x1
jax: 0.10.0
libtpu: 0.0.40
codegen_flags: <defaults>
</compile_context>

<pallas_src>
import functools

import jax
import jax.numpy as jnp
from jax import lax
from jax.experimental import pallas as pl
from jax.experimental.pallas import tpu as pltpu

_LANE = 128      # pad channels to a multiple of the 128-lane vreg width
_LPAD = 8        # left W-halo width: keeps interior stores sublane-aligned


def _middle_flow_kernel(x_ref, dw_ref, pw_ref, bias_ref, out_ref, act_ref, *,
                        H, W, n_units, weights_resident):
    """One (ReLU -> depthwise 3x3 -> pointwise 1x1 -> BN) unit per grid step.

    grid = (batch_block, unit); the activation stays resident in act_ref across
    the unit axis, so HBM is touched once for the input and once for the output
    per batch block.

    x_ref:    (Nb, H, W, Cp)            original input (also the residual)
    dw_ref:   (n_units|1, 3, 3, Cp)     depthwise weights (f32)
    pw_ref:   (n_units|1, Cp, Cp)       pointwise weights, BN scale folded (bf16)
    bias_ref: (n_units|1, 1, Cp)        folded BN bias (f32)
    out_ref:  (Nb, H, W, Cp)
    act_ref:  (Nb, H+2, _LPAD+W+1, Cp)  f32 already-ReLU'd activation with zero
                                        halo rows 0/H+1 and cols _LPAD-1/_LPAD+W
    """
    u = pl.program_id(1)
    Nb = x_ref.shape[0]
    Cp = x_ref.shape[3]
    WW = act_ref.shape[2]

    # First unit of this batch block: zero only the halo strips, then seed the
    # interior with ReLU(x) (producer-side ReLU; ReLU(0)=0 keeps the halo valid
    # zero padding for every unit).
    @pl.when(u == 0)
    def _init():
        zrow = jnp.zeros((Nb, 1, WW, Cp), jnp.float32)
        act_ref[:, pl.ds(0, 1), :, :] = zrow
        act_ref[:, pl.ds(H + 1, 1), :, :] = zrow
        zcol = jnp.zeros((Nb, H + 2, 1, Cp), jnp.float32)
        act_ref[:, :, pl.ds(_LPAD - 1, 1), :] = zcol
        act_ref[:, :, pl.ds(_LPAD + W, 1), :] = zcol
        act_ref[:, pl.ds(1, H), pl.ds(_LPAD, W), :] = jnp.maximum(
            x_ref[...].astype(jnp.float32), 0.0)

    # Weight lookup: dynamic unit index when the whole stack is VMEM-resident,
    # index 0 when weights are pipeline-streamed one unit at a time.
    wu = u if weights_resident else 0
    dw = dw_ref[wu].astype(jnp.float32)        # (3, 3, Cp)
    pw = pw_ref[wu]                            # (Cp, Cp) bf16 MXU operand
    bias = bias_ref[wu].astype(jnp.float32)    # (1, Cp)

    # Depthwise 3x3 on the zero-padded, already-ReLU'd activation (VPU).
    # H offsets are on an untiled dim (free); the kx==1 tap is sublane-aligned.
    # TODO(synk): kx in {0,2} taps are sublane-offset reads; a pltpu.roll-based
    # variant would move those shifts onto the XLU slot.
    acc = act_ref[:, pl.ds(0, H), pl.ds(_LPAD - 1, W), :] * dw[0, 0]
    for ky in range(3):
        for kx in range(3):
            if ky == 0 and kx == 0:
                continue
            tap = act_ref[:, pl.ds(ky, H), pl.ds(_LPAD - 1 + kx, W), :]
            acc = acc + tap * dw[ky, kx]

    # Pointwise 1x1 conv == channel matmul on the MXU; bf16 operands, f32
    # accumulate.  BN scale is pre-folded into pw, only the bias add remains.
    # W is a multiple of 8, so this reshape is layout-free (no sublane repack).
    y = jnp.dot(acc.reshape(Nb * H * W, Cp).astype(jnp.bfloat16), pw,
                preferred_element_type=jnp.float32)
    y = (y + bias).reshape(Nb, H, W, Cp)

    # Not the last unit: keep relu(y) resident in VMEM for the next unit
    # (producer-side ReLU; store is sublane-aligned thanks to _LPAD == 8).
    @pl.when(u < n_units - 1)
    def _carry():
        act_ref[:, pl.ds(1, H), pl.ds(_LPAD, W), :] = jnp.maximum(y, 0.0)

    # Last unit: fuse the residual add (+x) into the single HBM write.
    @pl.when(u == n_units - 1)
    def _emit():
        out_ref[...] = (y + x_ref[...].astype(jnp.float32)).astype(out_ref.dtype)


def middle_flow_fused(x_nhwc, dw_stack, pw_stack, bias_stack):
    """All 3*repeat_times units + the residual add in a single pallas_call."""
    N, H, W, Cp = x_nhwc.shape
    n_units = int(dw_stack.shape[0])
    assert W % 8 == 0, "pad W to a multiple of 8 for a layout-free matmul reshape"
    # TODO(synk): for W not a multiple of 8 (e.g. Xception W=19) pad the W dim.

    # Generation-aware VMEM budget (<= 3/4 of physical; v7x has only 64 MiB).
    try:
        cap = int(getattr(pltpu.get_tpu_info(), "vmem_capacity_bytes",
                          128 * 1024 * 1024))
    except Exception:
        cap = 128 * 1024 * 1024
    vmem_limit = int(min((cap * 3) // 4, 100 * 1024 * 1024))

    itemsize = x_nhwc.dtype.itemsize
    w_bytes = int(dw_stack.size * dw_stack.dtype.itemsize
                  + pw_stack.size * pw_stack.dtype.itemsize
                  + bias_stack.size * bias_stack.dtype.itemsize)
    unit_w_bytes = w_bytes // n_units

    # Per-image VMEM: halo scratch (f32) + double-buffered x-in and out.
    per_img = ((H + 2) * (_LPAD + W + 1) * Cp * 4
               + 2 * H * W * Cp * itemsize
               + 2 * H * W * Cp * itemsize)

    # Keep the whole weight stack resident in VMEM when it fits (v5e/v6e);
    # otherwise stream per unit with a 3-deep pipeline (v7x, 64 MiB VMEM).
    weights_resident = (2 * w_bytes + per_img) <= vmem_limit
    fixed = 2 * w_bytes if weights_resident else 3 * unit_w_bytes

    # Batch blocking: Nb images per grid step (amortizes weight DMA, grows the
    # MXU M dim); keep >=2 parallel grid steps when N allows (v7x has 2 TCs).
    nb = 1
    for cand in range(1, min(N, 8) + 1):
        if N % cand:
            continue
        if N >= 4 and N // cand < 2:
            continue
        if fixed + cand * per_img <= vmem_limit:
            nb = cand

    if weights_resident:
        dw_spec = pl.BlockSpec((n_units, 3, 3, Cp), lambda b, u: (0, 0, 0, 0))
        pw_spec = pl.BlockSpec((n_units, Cp, Cp), lambda b, u: (0, 0, 0))
        bias_spec = pl.BlockSpec((n_units, 1, Cp), lambda b, u: (0, 0, 0))
    else:
        dw_spec = pl.BlockSpec((1, 3, 3, Cp), lambda b, u: (u, 0, 0, 0))
        pw_spec = pl.BlockSpec((1, Cp, Cp), lambda b, u: (u, 0, 0),
                               pipeline_mode=pl.Buffered(3))
        bias_spec = pl.BlockSpec((1, 1, Cp), lambda b, u: (u, 0, 0))

    flops = n_units * N * (2 * H * W * Cp * Cp + 20 * H * W * Cp)
    bytes_accessed = (2 * N * H * W * Cp * itemsize
                      + (w_bytes if weights_resident else w_bytes * (N // nb)))

    kernel = functools.partial(_middle_flow_kernel, H=H, W=W, n_units=n_units,
                               weights_resident=weights_resident)
    return pl.pallas_call(
        kernel,
        out_shape=jax.ShapeDtypeStruct((N, H, W, Cp), x_nhwc.dtype),
        grid=(N // nb, n_units),
        in_specs=[
            pl.BlockSpec((nb, H, W, Cp), lambda b, u: (b, 0, 0, 0)),  # x, resident over u
            dw_spec, pw_spec, bias_spec,
        ],
        out_specs=pl.BlockSpec((nb, H, W, Cp), lambda b, u: (b, 0, 0, 0)),
        scratch_shapes=[pltpu.VMEM((nb, H + 2, _LPAD + W + 1, Cp), jnp.float32)],
        compiler_params=pltpu.CompilerParams(
            dimension_semantics=("parallel", "arbitrary"),
            vmem_limit_bytes=vmem_limit),
        cost_estimate=pl.CostEstimate(flops=int(flops), transcendentals=0,
                                      bytes_accessed=int(bytes_accessed)),
    )(x_nhwc, dw_stack, pw_stack, bias_stack)


def middle_flow(x_nchw, dw_stack, pw_stack, bias_stack):
    """MiddleFlow.forward: conv_residual(x) + x, NCHW in / NCHW out."""
    x = jnp.transpose(x_nchw, (0, 2, 3, 1))          # NCHW -> NHWC
    C = x.shape[-1]
    Cp = pw_stack.shape[-1]
    if Cp != C:                                      # lane-pad channels (zeros)
        x = jnp.pad(x, ((0, 0), (0, 0), (0, 0), (0, Cp - C)))
    y = middle_flow_fused(x, dw_stack, pw_stack, bias_stack)
    return jnp.transpose(y[..., :C], (0, 3, 1, 2))   # strip pad, back to NCHW


def make_params(key, in_channel, repeat_times):
    """Raw parameters for 3*repeat_times (ReLU->SepConv->BN) units."""
    params = []
    n_units = 3 * repeat_times
    keys = jax.random.split(key, n_units * 6)
    for un in range(n_units):
        k = keys[un * 6:(un + 1) * 6]
        dw = 0.1 * jax.random.normal(k[0], (3, 3, in_channel), jnp.float32)
        pw = 0.1 * jax.random.normal(k[1], (in_channel, in_channel), jnp.float32)
        gamma = 1.0 + 0.1 * jax.random.normal(k[2], (in_channel,), jnp.float32)
        beta = 0.1 * jax.random.normal(k[3], (in_channel,), jnp.float32)
        running_mean = 0.1 * jax.random.normal(k[4], (in_channel,), jnp.float32)
        running_var = 1.0 + 0.1 * jax.random.uniform(k[5], (in_channel,), jnp.float32)
        params.append((dw, pw, gamma, beta, running_mean, running_var))
    return params


def fold_and_stack(raw_params, eps=1e-5):
    """Fold BN scale into the pointwise weights, zero-pad channels to a multiple
    of 128, stack per-unit arrays; pw is stored in bf16 (MXU operand)."""
    C = raw_params[0][0].shape[-1]
    Cp = ((C + _LANE - 1) // _LANE) * _LANE
    pad_c = Cp - C
    dws, pws, biases = [], [], []
    for (dw, pw, gamma, beta, mean, var) in raw_params:
        scale = gamma / jnp.sqrt(var + eps)
        pw_f = pw * scale[None, :]                   # fold BN scale (out-channels)
        b = beta - mean * scale                      # remaining BN bias
        if pad_c:
            dw = jnp.pad(dw, ((0, 0), (0, 0), (0, pad_c)))
            pw_f = jnp.pad(pw_f, ((0, pad_c), (0, pad_c)))
            b = jnp.pad(b, (0, pad_c))
        dws.append(dw)
        pws.append(pw_f)
        biases.append(b.reshape(1, Cp))
    return (jnp.stack(dws).astype(jnp.float32),
            jnp.stack(pws).astype(jnp.bfloat16),
            jnp.stack(biases).astype(jnp.float32))


# --- pure-JAX reference (correctness check only, raw/unfolded f32 params) ---
def _ref_middle_flow(x_nchw, raw_params, eps=1e-5):
    x = jnp.transpose(x_nchw, (0, 2, 3, 1))
    y = x
    for (dw, pw, gamma, beta, mean, var) in raw_params:
        y = jnp.maximum(y, 0.0)
        C = y.shape[-1]
        y = lax.conv_general_dilated(
            y, dw.reshape(3, 3, 1, C), (1, 1), 'SAME',
            dimension_numbers=('NHWC', 'HWIO', 'NHWC'), feature_group_count=C)
        y = lax.conv_general_dilated(
            y, pw.reshape(1, 1, *pw.shape), (1, 1), 'SAME',
            dimension_numbers=('NHWC', 'HWIO', 'NHWC'))
        scale = gamma / jnp.sqrt(var + eps)
        y = y * scale + (beta - mean * scale)
    return jnp.transpose(y + x, (0, 3, 1, 2))


if __name__ == "__main__":
    N, C, H, W = 2, 8, 16, 16
    repeat_times = 2

    key = jax.random.PRNGKey(0)
    kx_, kp_ = jax.random.split(key)
    x = jax.random.normal(kx_, (N, C, H, W), jnp.float32)      # NCHW like PyTorch
    raw_params = make_params(kp_, C, repeat_times)
    dw_stack, pw_stack, bias_stack = fold_and_stack(raw_params)

    out = jax.jit(middle_flow)(x, dw_stack, pw_stack, bias_stack)
    out = jax.block_until_ready(out)

    ref = _ref_middle_flow(x, raw_params)
    assert out.shape == (N, C, H, W)
    max_err = float(jnp.max(jnp.abs(out - ref)))
    # bf16 MXU operands -> slightly relaxed tolerance vs the f32 reference.
    assert jnp.allclose(out, ref, atol=2e-2, rtol=2e-2), \
        f"mismatch vs JAX reference (max abs err {max_err})"

    print("KERNEL_OK")
</pallas_src>

<mosaic_0001>
module attributes {stable_mosaic.version = 11 : i64} {
  func.func @_middle_flow_kernel(%arg0: i32, %arg1: i32, %arg2: memref<2x16x16x128xf32, #tpu.memory_space<vmem>>, %arg3: memref<6x3x3x128xf32, #tpu.memory_space<vmem>>, %arg4: memref<6x128x128xbf16, #tpu.memory_space<vmem>>, %arg5: memref<6x1x128xf32, #tpu.memory_space<vmem>>, %arg6: memref<2x16x16x128xf32, #tpu.memory_space<vmem>>, %arg7: memref<2x18x25x128xf32, #tpu.memory_space<vmem>>) attributes {dimension_semantics = [#tpu.dimension_semantics<parallel>, #tpu.dimension_semantics<arbitrary>], iteration_bounds = array<i64: 1, 6>, scalar_prefetch = 0 : i64, scratch_operands = 1 : i64, tpu.core_type = #tpu.core_type<tc>, window_params = [{transform_indices = @transform_0, window_bounds = array<i64: 2, 16, 16, 128>}, {pipeline_mode = #tpu.pipeline_mode<synchronous>, transform_indices = @transform_1, window_bounds = array<i64: 6, 3, 3, 128>}, {pipeline_mode = #tpu.pipeline_mode<synchronous>, transform_indices = @transform_2, window_bounds = array<i64: 6, 128, 128>}, {pipeline_mode = #tpu.pipeline_mode<synchronous>, transform_indices = @transform_3, window_bounds = array<i64: 6, 1, 128>}, {transform_indices = @transform_4, window_bounds = array<i64: 2, 16, 16, 128>}]} {
    %c0_i32 = arith.constant 0 : i32
    %0 = arith.cmpi eq, %arg1, %c0_i32 : i32
    %1 = arith.extui %0 : i1 to i32
    %c0_i32_0 = arith.constant 0 : i32
    %2 = arith.cmpi ne, %1, %c0_i32_0 : i32
    scf.if %2 {
      %cst_41 = arith.constant 0.000000e+00 : f32
      %86 = vector.broadcast %cst_41 : f32 to vector<2x1x25x128xf32>
      %c0_42 = arith.constant 0 : index
      %c0_43 = arith.constant 0 : index
      %c0_44 = arith.constant 0 : index
      %c0_45 = arith.constant 0 : index
      %87 = vector.load %arg7[%c0_42, %c0_43, %c0_44, %c0_45] : memref<2x18x25x128xf32, #tpu.memory_space<vmem>>, vector<2x1x25x128xf32>
      tpu.vector_store %arg7[%c0_42, %c0_43, %c0_44, %c0_45], %86 {strides = array<i32>} : memref<2x18x25x128xf32, #tpu.memory_space<vmem>>, vector<2x1x25x128xf32>,
      %c0_46 = arith.constant 0 : index
      %c17 = arith.constant 17 : index
      %c0_47 = arith.constant 0 : index
      %c0_48 = arith.constant 0 : index
      %88 = vector.load %arg7[%c0_46, %c17, %c0_47, %c0_48] : memref<2x18x25x128xf32, #tpu.memory_space<vmem>>, vector<2x1x25x128xf32>
      tpu.vector_store %arg7[%c0_46, %c17, %c0_47, %c0_48], %86 {strides = array<i32>} : memref<2x18x25x128xf32, #tpu.memory_space<vmem>>, vector<2x1x25x128xf32>,
      %cst_49 = arith.constant 0.000000e+00 : f32
      %89 = vector.broadcast %cst_49 : f32 to vector<2x18x1x128xf32>
      %c0_50 = arith.constant 0 : index
      %c0_51 = arith.constant 0 : index
      %c7_52 = arith.constant 7 : index
      %c0_53 = arith.constant 0 : index
      %90 = vector.load %arg7[%c0_50, %c0_51, %c7_52, %c0_53] : memref<2x18x25x128xf32, #tpu.memory_space<vmem>>, vector<2x18x1x128xf32>
      tpu.vector_store %arg7[%c0_50, %c0_51, %c7_52, %c0_53], %89 {strides = array<i32>} : memref<2x18x25x128xf32, #tpu.memory_space<vmem>>, vector<2x18x1x128xf32>,
      %c0_54 = arith.constant 0 : index
      %c0_55 = arith.constant 0 : index
      %c24 = arith.constant 24 : index
      %c0_56 = arith.constant 0 : index
      %91 = vector.load %arg7[%c0_54, %c0_55, %c24, %c0_56] : memref<2x18x25x128xf32, #tpu.memory_space<vmem>>, vector<2x18x1x128xf32>
      tpu.vector_store %arg7[%c0_54, %c0_55, %c24, %c0_56], %89 {strides = array<i32>} : memref<2x18x25x128xf32, #tpu.memory_space<vmem>>, vector<2x18x1x128xf32>,
      %c0_57 = arith.constant 0 : index
      %c0_58 = arith.constant 0 : index
      %c0_59 = arith.constant 0 : index
      %c0_60 = arith.constant 0 : index
      %92 = vector.load %arg2[%c0_57, %c0_58, %c0_59, %c0_60] : memref<2x16x16x128xf32, #tpu.memory_space<vmem>>, vector<2x16x16x128xf32>
      %cst_61 = arith.constant 0.000000e+00 : f32
      %93 = vector.broadcast %cst_61 : f32 to vector<2x16x16x128xf32>
      %94 = arith.maximumf %92, %93 : vector<2x16x16x128xf32>
      %c0_62 = arith.constant 0 : index
      %c1_63 = arith.constant 1 : index
      %c8_64 = arith.constant 8 : index
      %c0_65 = arith.constant 0 : index
      %95 = vector.load %arg7[%c0_62, %c1_63, %c8_64, %c0_65] : memref<2x18x25x128xf32, #tpu.memory_space<vmem>>, vector<2x16x16x128xf32>
      tpu.vector_store %arg7[%c0_62, %c1_63, %c8_64, %c0_65], %94 {strides = array<i32>} : memref<2x18x25x128xf32, #tpu.memory_space<vmem>>, vector<2x16x16x128xf32>,
    } else {
    }
    %3 = arith.index_cast %arg1 : i32 to index
    %c0 = arith.constant 0 : index
    %c0_1 = arith.constant 0 : index
    %c0_2 = arith.constant 0 : index
    %4 = vector.load %arg3[%3, %c0, %c0_1, %c0_2] : memref<6x3x3x128xf32, #tpu.memory_space<vmem>>, vector<1x3x3x128xf32>
    %5 = vector.shape_cast %4 : vector<1x3x3x128xf32> to vector<3x3x128xf32>
    %6 = arith.index_cast %arg1 : i32 to index
    %c0_3 = arith.constant 0 : index
    %c0_4 = arith.constant 0 : index
    %7 = vector.load %arg4[%6, %c0_3, %c0_4] : memref<6x128x128xbf16, #tpu.memory_space<vmem>>, vector<1x128x128xbf16>
    %8 = vector.shape_cast %7 : vector<1x128x128xbf16> to vector<128x128xbf16>
    %9 = arith.index_cast %arg1 : i32 to index
    %c0_5 = arith.constant 0 : index
    %c0_6 = arith.constant 0 : index
    %10 = vector.load %arg5[%9, %c0_5, %c0_6] : memref<6x1x128xf32, #tpu.memory_space<vmem>>, vector<1x1x128xf32>
    %11 = vector.shape_cast %10 : vector<1x1x128xf32> to vector<1x128xf32>
    %c0_7 = arith.constant 0 : index
    %c0_8 = arith.constant 0 : index
    %c7 = arith.constant 7 : index
    %c0_9 = arith.constant 0 : index
    %12 = vector.load %arg7[%c0_7, %c0_8, %c7, %c0_9] : memref<2x18x25x128xf32, #tpu.memory_space<vmem>>, vector<2x16x16x128xf32>
    %13 = vector.extract_strided_slice %5 {offsets = [0, 0, 0], sizes = [1, 1, 128], strides = [1, 1, 1]} : vector<3x3x128xf32> to vector<1x1x128xf32>
    %14 = vector.shape_cast %13 : vector<1x1x128xf32> to vector<128xf32>
    %15 = vector.shape_cast %14 : vector<128xf32> to vector<1x1x1x128xf32>
    %16 = vector.broadcast %15 : vector<1x1x1x128xf32> to vector<2x16x16x128xf32>
    %17 = arith.mulf %12, %16 : vector<2x16x16x128xf32>
    %c0_10 = arith.constant 0 : index
    %c0_11 = arith.constant 0 : index
    %c8 = arith.constant 8 : index
    %c0_12 = arith.constant 0 : index
    %18 = vector.load %arg7[%c0_10, %c0_11, %c8, %c0_12] : memref<2x18x25x128xf32, #tpu.memory_space<vmem>>, vector<2x16x16x128xf32>
    %19 = vector.extract_strided_slice %5 {offsets = [0, 1, 0], sizes = [1, 1, 128], strides = [1, 1, 1]} : vector<3x3x128xf32> to vector<1x1x128xf32>
    %20 = vector.shape_cast %19 : vector<1x1x128xf32> to vector<128xf32>
    %21 = vector.shape_cast %20 : vector<128xf32> to vector<1x1x1x128xf32>
    %22 = vector.broadcast %21 : vector<1x1x1x128xf32> to vector<2x16x16x128xf32>
    %23 = arith.mulf %18, %22 : vector<2x16x16x128xf32>
    %24 = arith.addf %17, %23 : vector<2x16x16x128xf32>
    %c0_13 = arith.constant 0 : index
    %c0_14 = arith.constant 0 : index
    %c9 = arith.constant 9 : index
    %c0_15 = arith.constant 0 : index
    %25 = vector.load %arg7[%c0_13, %c0_14, %c9, %c0_15] : memref<2x18x25x128xf32, #tpu.memory_space<vmem>>, vector<2x16x16x128xf32>
    %26 = vector.extract_strided_slice %5 {offsets = [0, 2, 0], sizes = [1, 1, 128], strides = [1, 1, 1]} : vector<3x3x128xf32> to vector<1x1x128xf32>
    %27 = vector.shape_cast %26 : vector<1x1x128xf32> to vector<128xf32>
    %28 = vector.shape_cast %27 : vector<128xf32> to vector<1x1x1x128xf32>
    %29 = vector.broadcast %28 : vector<1x1x1x128xf32> to vector<2x16x16x128xf32>
    %30 = arith.mulf %25, %29 : vector<2x16x16x128xf32>
    %31 = arith.addf %24, %30 : vector<2x16x16x128xf32>
    %c0_16 = arith.constant 0 : index
    %c1 = arith.constant 1 : index
    %c7_17 = arith.constant 7 : index
    %c0_18 = arith.constant 0 : index
    %32 = vector.load %arg7[%c0_16, %c1, %c7_17, %c0_18] : memref<2x18x25x128xf32, #tpu.memory_space<vmem>>, vector<2x16x16x128xf32>
    %33 = vector.extract_strided_slice %5 {offsets = [1, 0, 0], sizes = [1, 1, 128], strides = [1, 1, 1]} : vector<3x3x128xf32> to vector<1x1x128xf32>
    %34 = vector.shape_cast %33 : vector<1x1x128xf32> to vector<128xf32>
    %35 = vector.shape_cast %34 : vector<128xf32> to vector<1x1x1x128xf32>
    %36 = vector.broadcast %35 : vector<1x1x1x128xf32> to vector<2x16x16x128xf32>
    %37 = arith.mulf %32, %36 : vector<2x16x16x128xf32>
    %38 = arith.addf %31, %37 : vector<2x16x16x128xf32>
    %c0_19 = arith.constant 0 : index
    %c1_20 = arith.constant 1 : index
    %c8_21 = arith.constant 8 : index
    %c0_22 = arith.constant 0 : index
    %39 = vector.load %arg7[%c0_19, %c1_20, %c8_21, %c0_22] : memref<2x18x25x128xf32, #tpu.memory_space<vmem>>, vector<2x16x16x128xf32>
    %40 = vector.extract_strided_slice %5 {offsets = [1, 1, 0], sizes = [1, 1, 128], strides = [1, 1, 1]} : vector<3x3x128xf32> to vector<1x1x128xf32>
    %41 = vector.shape_cast %40 : vector<1x1x128xf32> to vector<128xf32>
    %42 = vector.shape_cast %41 : vector<128xf32> to vector<1x1x1x128xf32>
    %43 = vector.broadcast %42 : vector<1x1x1x128xf32> to vector<2x16x16x128xf32>
    %44 = arith.mulf %39, %43 : vector<2x16x16x128xf32>
    %45 = arith.addf %38, %44 : vector<2x16x16x128xf32>
    %c0_23 = arith.constant 0 : index
    %c1_24 = arith.constant 1 : index
    %c9_25 = arith.constant 9 : index
    %c0_26 = arith.constant 0 : index
    %46 = vector.load %arg7[%c0_23, %c1_24, %c9_25, %c0_26] : memref<2x18x25x128xf32, #tpu.memory_space<vmem>>, vector<2x16x16x128xf32>
    %47 = vector.extract_strided_slice %5 {offsets = [1, 2, 0], sizes = [1, 1, 128], strides = [1, 1, 1]} : vector<3x3x128xf32> to vector<1x1x128xf32>
    %48 = vector.shape_cast %47 : vector<1x1x128xf32> to vector<128xf32>
    %49 = vector.shape_cast %48 : vector<128xf32> to vector<1x1x1x128xf32>
    %50 = vector.broadcast %49 : vector<1x1x1x128xf32> to vector<2x16x16x128xf32>
    %51 = arith.mulf %46, %50 : vector<2x16x16x128xf32>
    %52 = arith.addf %45, %51 : vector<2x16x16x128xf32>
    %c0_27 = arith.constant 0 : index
    %c2 = arith.constant 2 : index
    %c7_28 = arith.constant 7 : index
    %c0_29 = arith.constant 0 : index
    %53 = vector.load %arg7[%c0_27, %c2, %c7_28, %c0_29] : memref<2x18x25x128xf32, #tpu.memory_space<vmem>>, vector<2x16x16x128xf32>
    %54 = vector.extract_strided_slice %5 {offsets = [2, 0, 0], sizes = [1, 1, 128], strides = [1, 1, 1]} : vector<3x3x128xf32> to vector<1x1x128xf32>
    %55 = vector.shape_cast %54 : vector<1x1x128xf32> to vector<128xf32>
    %56 = vector.shape_cast %55 : vector<128xf32> to vector<1x1x1x128xf32>
    %57 = vector.broadcast %56 : vector<1x1x1x128xf32> to vector<2x16x16x128xf32>
    %58 = arith.mulf %53, %57 : vector<2x16x16x128xf32>
    %59 = arith.addf %52, %58 : vector<2x16x16x128xf32>
    %c0_30 = arith.constant 0 : index
    %c2_31 = arith.constant 2 : index
    %c8_32 = arith.constant 8 : index
    %c0_33 = arith.constant 0 : index
    %60 = vector.load %arg7[%c0_30, %c2_31, %c8_32, %c0_33] : memref<2x18x25x128xf32, #tpu.memory_space<vmem>>, vector<2x16x16x128xf32>
    %61 = vector.extract_strided_slice %5 {offsets = [2, 1, 0], sizes = [1, 1, 128], strides = [1, 1, 1]} : vector<3x3x128xf32> to vector<1x1x128xf32>
    %62 = vector.shape_cast %61 : vector<1x1x128xf32> to vector<128xf32>
    %63 = vector.shape_cast %62 : vector<128xf32> to vector<1x1x1x128xf32>
    %64 = vector.broadcast %63 : vector<1x1x1x128xf32> to vector<2x16x16x128xf32>
    %65 = arith.mulf %60, %64 : vector<2x16x16x128xf32>
    %66 = arith.addf %59, %65 : vector<2x16x16x128xf32>
    %c0_34 = arith.constant 0 : index
    %c2_35 = arith.constant 2 : index
    %c9_36 = arith.constant 9 : index
    %c0_37 = arith.constant 0 : index
    %67 = vector.load %arg7[%c0_34, %c2_35, %c9_36, %c0_37] : memref<2x18x25x128xf32, #tpu.memory_space<vmem>>, vector<2x16x16x128xf32>
    %68 = vector.extract_strided_slice %5 {offsets = [2, 2, 0], sizes = [1, 1, 128], strides = [1, 1, 1]} : vector<3x3x128xf32> to vector<1x1x128xf32>
    %69 = vector.shape_cast %68 : vector<1x1x128xf32> to vector<128xf32>
    %70 = vector.shape_cast %69 : vector<128xf32> to vector<1x1x1x128xf32>
    %71 = vector.broadcast %70 : vector<1x1x1x128xf32> to vector<2x16x16x128xf32>
    %72 = arith.mulf %67, %71 : vector<2x16x16x128xf32>
    %73 = arith.addf %66, %72 : vector<2x16x16x128xf32>
    %74 = vector.shape_cast %73 : vector<2x16x16x128xf32> to vector<512x128xf32>
    %75 = arith.truncf %74 : vector<512x128xf32> to vector<512x128xbf16>
    %cst = arith.constant dense<0.000000e+00> : vector<512x128xf32>
    %76 = tpu.matmul %75, %8, %cst {dimension_numbers = #tpu.dot_dimension_numbers<[1], [0], [0], [1], [0, 0, 1, 1], [], []>} : vector<512x128xbf16>, vector<128x128xbf16>, vector<512x128xf32> -> vector<512x128xf32>
    %77 = vector.broadcast %11 : vector<1x128xf32> to vector<512x128xf32>
    %78 = arith.addf %76, %77 : vector<512x128xf32>
    %79 = vector.shape_cast %78 : vector<512x128xf32> to vector<2x16x16x128xf32>
    %c5_i32 = arith.constant 5 : i32
    %80 = arith.cmpi slt, %arg1, %c5_i32 : i32
    %81 = arith.extui %80 : i1 to i32
    %c0_i32_38 = arith.constant 0 : i32
    %82 = arith.cmpi ne, %81, %c0_i32_38 : i32
    scf.if %82 {
      %cst_41 = arith.constant 0.000000e+00 : f32
      %86 = vector.broadcast %cst_41 : f32 to vector<2x16x16x128xf32>
      %87 = arith.maximumf %79, %86 : vector<2x16x16x128xf32>
      %c0_42 = arith.constant 0 : index
      %c1_43 = arith.constant 1 : index
      %c8_44 = arith.constant 8 : index
      %c0_45 = arith.constant 0 : index
      %88 = vector.load %arg7[%c0_42, %c1_43, %c8_44, %c0_45] : memref<2x18x25x128xf32, #tpu.memory_space<vmem>>, vector<2x16x16x128xf32>
      tpu.vector_store %arg7[%c0_42, %c1_43, %c8_44, %c0_45], %87 {strides = array<i32>} : memref<2x18x25x128xf32, #tpu.memory_space<vmem>>, vector<2x16x16x128xf32>,
    } else {
    }
    %c5_i32_39 = arith.constant 5 : i32
    %83 = arith.cmpi eq, %arg1, %c5_i32_39 : i32
    %84 = arith.extui %83 : i1 to i32
    %c0_i32_40 = arith.constant 0 : i32
    %85 = arith.cmpi ne, %84, %c0_i32_40 : i32
    scf.if %85 {
      %c0_41 = arith.constant 0 : index
      %c0_42 = arith.constant 0 : index
      %c0_43 = arith.constant 0 : index
      %c0_44 = arith.constant 0 : index
      %86 = vector.load %arg2[%c0_41, %c0_42, %c0_43, %c0_44] : memref<2x16x16x128xf32, #tpu.memory_space<vmem>>, vector<2x16x16x128xf32>
      %87 = arith.addf %79, %86 : vector<2x16x16x128xf32>
      %c0_45 = arith.constant 0 : index
      %c0_46 = arith.constant 0 : index
      %c0_47 = arith.constant 0 : index
      %c0_48 = arith.constant 0 : index
      %88 = vector.load %arg6[%c0_45, %c0_46, %c0_47, %c0_48] : memref<2x16x16x128xf32, #tpu.memory_space<vmem>>, vector<2x16x16x128xf32>
      tpu.vector_store %arg6[%c0_45, %c0_46, %c0_47, %c0_48], %87 {strides = array<i32>} : memref<2x16x16x128xf32, #tpu.memory_space<vmem>>, vector<2x16x16x128xf32>,
    } else {
    }
    return
  }
  func.func @transform_0(%arg0: i32, %arg1: i32) -> (i32, i32, i32, i32) {
    %c0_i32 = arith.constant 0 : i32
    %c0_i32_0 = arith.constant 0 : i32
    %c0_i32_1 = arith.constant 0 : i32
    %c0_i32_2 = arith.constant 0 : i32
    return %arg0, %c0_i32, %c0_i32_0, %c0_i32_1 : i32, i32, i32, i32
  }
  func.func @transform_1(%arg0: i32, %arg1: i32) -> (i32, i32, i32, i32) {
    %c0_i32 = arith.constant 0 : i32
    %c0_i32_0 = arith.constant 0 : i32
    %c0_i32_1 = arith.constant 0 : i32
    %c0_i32_2 = arith.constant 0 : i32
    %c0_i32_3 = arith.constant 0 : i32
    return %c0_i32, %c0_i32_0, %c0_i32_1, %c0_i32_2 : i32, i32, i32, i32
  }
  func.func @transform_2(%arg0: i32, %arg1: i32) -> (i32, i32, i32) {
    %c0_i32 = arith.constant 0 : i32
    %c0_i32_0 = arith.constant 0 : i32
    %c0_i32_1 = arith.constant 0 : i32
    %c0_i32_2 = arith.constant 0 : i32
    return %c0_i32, %c0_i32_0, %c0_i32_1 : i32, i32, i32
  }
  func.func @transform_3(%arg0: i32, %arg1: i32) -> (i32, i32, i32) {
    %c0_i32 = arith.constant 0 : i32
    %c0_i32_0 = arith.constant 0 : i32
    %c0_i32_1 = arith.constant 0 : i32
    %c0_i32_2 = arith.constant 0 : i32
    return %c0_i32, %c0_i32_0, %c0_i32_1 : i32, i32, i32
  }
  func.func @transform_4(%arg0: i32, %arg1: i32) -> (i32, i32, i32, i32) {
    %c0_i32 = arith.constant 0 : i32
    %c0_i32_0 = arith.constant 0 : i32
    %c0_i32_1 = arith.constant 0 : i32
    %c0_i32_2 = arith.constant 0 : i32
    return %arg0, %c0_i32, %c0_i32_0, %c0_i32_1 : i32, i32, i32, i32
  }
}

</mosaic_0001>

<bundles_post_ra>
// kernel: middle_flow.1
= control target key start
LH: loop header
LB: loop body
LE: loop exit
PB: predicated region body
PF: predicated region fallthrough
CT: control target
= control target key end

     0   :  { %9 = vsyncpa [#allocation4], 0  ;;  %s5717_s0 = inlined_call_operand.hbm [shape: f32[2,16,16,128], index: 0, kind: input, shape index: {}]   ;;  %s5718_s1 = inlined_call_operand.hbm [shape: f32[6,3,3,128], index: 1, kind: input, shape index: {}]   ;;  %s5719_s2 = inlined_call_operand.hbm [shape: bf16[6,128,128], index: 2, kind: input, shape index: {}]   ;;  %s5720_s3 = inlined_call_operand.hbm [shape: f32[6,1,128], index: 3, kind: input, shape index: {}]   ;;  %s5721_s4 = inlined_call_operand.hbm [shape: f32[2,16,16,128], index: 4, kind: output, shape index: {}]  }
   0x1   :  { %10 = vsyncpa [#allocation7], 0 }
   0x2   :  { %11 = vsyncpa [#allocation10], 0 }
   0x3   :  { %12 = vsyncpa [#allocation5], 0  ;;  %s3540_s15 = smov 0   ;;  %s3542_s16 = smov 0  }
   0x4   :  { %s3544_s17 = smov 0  }
   0x5 LB: > { %s3501_s18 = smov [#allocation6]   ;;  %s5725_s20 = sadd.s32 4294967295, %s3499_s17   ;;  %s3499_s17 = sphi %s3544_s17, %s18_s17   ;;  %s3495_s16 = sphi %s3542_s16, %s5798_s16   ;;  %s3491_s15 = sphi %s3540_s15, %s5797_s15  }
   0x6   : > { %s179_s19 = sshll.u32 %s3501_s18, 4  ;;  %p3069_p0 = scmp.ge.s32.totalorder %s3499_s17, 1  ;;  %s3564_s19 = int_to_ptr.vmem [resolvable:$true] %s179_s19 }
   0x7   : > { %p150_p1 = scmp.lt.s32.totalorder %s3499_s17, 7  ;;  %p3560_p2 = scmp.eq.s32.totalorder %s5725_s20, 0 }
   0x8   : > { %s27_s24 = sadd.s32 1, %s3495_s16  ;;  %s3502_s26 = smov [#allocation3]  }
   0x9   : > { %s5737_s21 = scalar_select %p3560_p2, 1, 0 }
   0xa   : > { %p3566_p3 = pnand %p3069_p0, %p150_p1  ;;  %p3579_p6 = scmp.ge.s32.totalorder %s27_s24, 6 }
   0xb   : > { %s166_s27 = sshll.u32 %s3502_s26, 4  ;;  %s3323_s30 = scalar_lea.hbm %s5718_s1, 1152  ;;  %s167_s27 = int_to_ptr.vmem [resolvable:$true] %s166_s27 }
   0xc   : > { %s5738_s22 = scalar_select %p3566_p3, 1, 0 }
   0xd   : > { %p3254_p4 = pneg %p3566_p3  ;;  %p3324_p7 = scmp.ne.s32.totalorder %s5718_s1, %s3323_s30 }
   0xe   : > { %p3330_p11 = scmp.lt.u32.totalorder %s3323_s30, %s5718_s1 }
   0xf   : > { %p3574_p5 = pnand %p3560_p2, %p3254_p4 }
  0x11   : > { %p3591_p8 = pneg %p3574_p5 }
  0x13   : > { %p3326_p9 = pnand %p3591_p8, %p3324_p7 }
  0x15   : > { %p3327_p10 = pneg %p3326_p9 }
  0x17   : > { %p3332_p12 = pnand %p3330_p11, %p3327_p10 }
  0x19   : > { %3335 = shalt.err (!%p3332_p12)
}
  0x1a   : > { %s3336_s10 = scalar_lea.vmem %s3564_s19, 1152  ;;  %p3344_p4 = scmp.lt.s32.totalorder %s3564_s19, %s3564_s19 }
  0x1b   : > { %p3337_p13 = scmp.ne.s32.totalorder %s3564_s19, %s3336_s10  ;;  %p3345_p2 = scmp.lt.s32.totalorder %s3336_s10, %s3336_s10 }
  0x1d   : > { %p3339_p0 = pnand %p3337_p13, %p3591_p8  ;;  %p3346_p7 = por %p3345_p2, %p3344_p4 }
  0x1f   : > { %p3340_p1 = pneg %p3339_p0 }
  0x21   : > { %p3347_p9 = pnand %p3346_p7, %p3340_p1 }
  0x23   : > { %3350 = shalt.err (!%p3347_p9)
}
  0x24   : > { %s3503_s11 = smov 64   ;;  %s3504_s12 = smov 4  }
  0x25   : > { %3260 = dma.hbm_to_vmem [thread:$0]  (!%p3574_p5), %s5718_s1, 1152, %s3564_s19, [#allocation7], %s3503_s11, %s3503_s11, %s3504_s12  }
  0x26   : > { %s5800_s24 = smov (%p3579_p6, %s27_s24), 0  ;;  %s3351_s28 = scalar_lea.hbm %s5717_s0, 8192 }
  0x27   : > { %p3352_p2 = scmp.ne.s32.totalorder %s5717_s0, %s3351_s28  ;;  %p3358_p12 = scmp.lt.u32.totalorder %s3351_s28, %s5717_s0 }
  0x29   : > { %p3354_p10 = pnand %p3352_p2, %p3591_p8 }
  0x2b   : > { %p3355_p11 = pneg %p3354_p10 }
  0x2d   : > { %p3360_p13 = pnand %p3358_p12, %p3355_p11 }
  0x2f   : > { %3363 = shalt.err (!%p3360_p13)
}
  0x30   : > { %s3364_s19 = scalar_lea.vmem %s167_s27, 8192  ;;  %p3372_p4 = scmp.lt.s32.totalorder %s167_s27, %s167_s27 }
  0x31   : > { %p3365_p6 = scmp.ne.s32.totalorder %s167_s27, %s3364_s19  ;;  %p3373_p7 = scmp.lt.s32.totalorder %s3364_s19, %s3364_s19 }
  0x33   : > { %p3367_p0 = pnand %p3365_p6, %p3591_p8  ;;  %p3374_p9 = por %p3373_p7, %p3372_p4 }
  0x35   : > { %p3368_p1 = pneg %p3367_p0 }
  0x37   : > { %p3375_p3 = pnand %p3374_p9, %p3368_p1 }
  0x39   : > { %3378 = shalt.err (!%p3375_p3)
}
  0x3a   : > { %s3505_s25 = smov 128   ;;  %s3506_s8 = smov 8  }
  0x3b   : > { %3257 = dma.hbm_to_vmem [thread:$0]  (!%p3574_p5), %s5717_s0, 8192, %s167_s27, [#allocation4], %s3505_s25, %s3505_s25, %s3506_s8  }
  0x3c   : > { %s3507_s13 = smov [#allocation8]   ;;  %s3508_s18 = smov [#allocation9]  }
  0x3d   : > { %s192_s14 = sshll.u32 %s3507_s13, 4  ;;  %s205_s26 = sshll.u32 %s3508_s18, 4  ;;  %s193_s14 = int_to_ptr.vmem [resolvable:$true] %s192_s14  ;;  %s206_s26 = int_to_ptr.vmem [resolvable:$true] %s205_s26 }
  0x3e   : > { %s3379_s30 = scalar_lea.hbm %s5719_s2, 6144 }
  0x3f   : > { %p3380_p3 = scmp.ne.s32.totalorder %s5719_s2, %s3379_s30  ;;  %p3386_p11 = scmp.lt.u32.totalorder %s3379_s30, %s5719_s2 }
  0x41   : > { %p3382_p2 = pnand %p3380_p3, %p3591_p8 }
  0x43   : > { %p3383_p10 = pneg %p3382_p2 }
  0x45   : > { %p3388_p12 = pnand %p3386_p11, %p3383_p10 }
  0x47   : > { %3391 = shalt.err (!%p3388_p12)
}
  0x48   : > { %s3392_s27 = scalar_lea.vmem %s193_s14, 6144  ;;  %p3400_p1 = scmp.lt.s32.totalorder %s193_s14, %s193_s14 }
  0x49   : > { %p3393_p13 = scmp.ne.s32.totalorder %s193_s14, %s3392_s27  ;;  %p3401_p4 = scmp.lt.s32.totalorder %s3392_s27, %s3392_s27 }
  0x4b   : > { %p3395_p6 = pnand %p3393_p13, %p3591_p8  ;;  %p3402_p7 = por %p3401_p4, %p3400_p1 }
  0x4d   : > { %p3396_p0 = pneg %p3395_p6 }
  0x4f   : > { %p3403_p9 = pnand %p3402_p7, %p3396_p0 }
  0x51   : > { %3406 = shalt.err (!%p3403_p9)
}
  0x52   : > { %3263 = dma.hbm_to_vmem [thread:$0]  (!%p3574_p5), %s5719_s2, 6144, %s193_s14, [#allocation7], %s3503_s11, %s3503_s11, %s3504_s12  }
  0x53   : > { %s3407_s10 = scalar_lea.hbm %s5720_s3, 96 }
  0x54   : > { %p3408_p3 = scmp.ne.s32.totalorder %s5720_s3, %s3407_s10  ;;  %p3414_p11 = scmp.lt.u32.totalorder %s3407_s10, %s5720_s3 }
  0x56   : > { %p3410_p2 = pnand %p3408_p3, %p3591_p8 }
  0x58   : > { %p3411_p10 = pneg %p3410_p2 }
  0x5a   : > { %p3416_p12 = pnand %p3414_p11, %p3411_p10 }
  0x5c   : > { %3419 = shalt.err (!%p3416_p12)
}
  0x5d   : > { %s3420_s30 = scalar_lea.vmem %s206_s26, 96  ;;  %p3428_p1 = scmp.lt.s32.totalorder %s206_s26, %s206_s26 }
  0x5e   : > { %p3421_p13 = scmp.ne.s32.totalorder %s206_s26, %s3420_s30  ;;  %p3429_p4 = scmp.lt.s32.totalorder %s3420_s30, %s3420_s30 }
  0x60   : > { %p3423_p6 = pnand %p3421_p13, %p3591_p8  ;;  %p3430_p7 = por %p3429_p4, %p3428_p1 }
  0x62   : > { %p3424_p0 = pneg %p3423_p6 }
  0x64   : > { %p3431_p9 = pnand %p3430_p7, %p3424_p0 }
  0x66   : > { %3434 = shalt.err (!%p3431_p9)
}
  0x67   : > { %s3509_s11 = smov 16   ;;  %s3510_s12 = smov 1  }
  0x68   : > { %3266 = dma.hbm_to_vmem [thread:$0]  (!%p3574_p5), %s5720_s3, 96, %s206_s26, [#allocation10], %s3509_s11, %s3509_s11, %s3510_s12  }
  0x69   : > { %p5742_p3 = scmp.ne.s32.totalorder %s5738_s22, 0 }
  0x6b   : > { %221 = sbr.rel (%p5742_p3) target bundleno = 813 (0x32d), region = 36 }
  0x72   : > { %p5743_p2 = scmp.ne.s32.totalorder %s5737_s21, 0 }
  0x74   : > { %3474 = dma.done.wait (%p5743_p2), [#allocation4], 8192  }
  0x75   : > { %3476 = vsyncadd (%p5743_p2), [#allocation4], 4294959104 }
  0x76   : > { %3478 = dma.done.wait (%p5743_p2), [#allocation7], 7296  }
  0x77   : > { %3480 = vsyncadd (%p5743_p2), [#allocation7], 4294960000 }
  0x78   : > { %3482 = dma.done.wait (%p5743_p2), [#allocation10], 96  }
  0x79   : > { %3484 = vsyncadd (%p5743_p2), [#allocation10], 4294967200  ;;  %p3079_p5 = scmp.ne.s32.totalorder %s3491_s15, 0 }
  0x7a   : > { %v3691_v0 = vld [vmem:[#allocation3] sm:$0xff] (!%p3079_p5)  ;;  %v3693_v1 = vld [vmem:[#allocation3 + $0x8] sm:$0xff] (!%p3079_p5)  ;;  %v3695_v2 = vld [vmem:[#allocation3 + $0x10] sm:$0xff] (!%p3079_p5)  ;;  %v3511_v3 = vmov (!%p3079_p5), 0.0  }
  0x7b   : > { %255 = sbr.rel (%p3079_p5) target bundleno = 199 (0xc7), region = 56  ;;  %256 = vst [vmem:[#allocation2] sm:$0xff] (!%p3079_p5), %v3511_v3  ;;  %257 = vst [vmem:[#allocation2 + $0x8] sm:$0xff] (!%p3079_p5), %v3511_v3  ;;  %v409_v4 = vmax.f32 (!%p3079_p5), %v3691_v0, 0.0  ;;  %v410_v5 = vmax.f32 (!%p3079_p5), %v3693_v1, 0.0  ;;  %v411_v6 = vmax.f32 (!%p3079_p5), %v3695_v2, 0.0 }
  0x7c   : > { %258 = vst [vmem:[#allocation2 + $0x10] sm:$0xff] (!%p3079_p5), %v3511_v3  ;;  %259 = vst [vmem:[#allocation2 + $0x18] sm:$0x1] (!%p3079_p5), %v3511_v3  ;;  %v348_v7 = vld [vmem:[#allocation3 + $0x18] sm:$0xff] (!%p3079_p5)  ;;  %v349_v8 = vld [vmem:[#allocation3 + $0x20] sm:$0xff] (!%p3079_p5) }
  0x7d   : > { %260 = vst [vmem:[#allocation2 + $0x240] sm:$0xff] (!%p3079_p5), %v3511_v3  ;;  %261 = vst [vmem:[#allocation2 + $0x248] sm:$0xff] (!%p3079_p5), %v3511_v3  ;;  %v350_v9 = vld [vmem:[#allocation3 + $0x28] sm:$0xff] (!%p3079_p5)  ;;  %v412_v10 = vmax.f32 (!%p3079_p5), %v348_v7, 0.0  ;;  %v413_v11 = vmax.f32 (!%p3079_p5), %v349_v8, 0.0  ;;  %v351_v13 = vld [vmem:[#allocation3 + $0x30] sm:$0xff] (!%p3079_p5) }
  0x7e   : > { %262 = vst [vmem:[#allocation2 + $0x250] sm:$0xff] (!%p3079_p5), %v3511_v3  ;;  %263 = vst [vmem:[#allocation2 + $0x258] sm:$0x1] (!%p3079_p5), %v3511_v3  ;;  %v414_v12 = vmax.f32 (!%p3079_p5), %v350_v9, 0.0  ;;  %v352_v14 = vld [vmem:[#allocation3 + $0x38] sm:$0xff] (!%p3079_p5)  ;;  %v353_v15 = vld [vmem:[#allocation3 + $0x40] sm:$0xff] (!%p3079_p5) }
  0x7f   : > { %265 = vst [vmem:[#allocation2 + $0x220] sm:$0xff] (!%p3079_p5), %v3511_v3  ;;  %266 = vst [vmem:[#allocation2 + $0x228] sm:$0xff] (!%p3079_p5), %v3511_v3  ;;  %v415_v16 = vmax.f32 (!%p3079_p5), %v351_v13, 0.0  ;;  %v416_v17 = vmax.f32 (!%p3079_p5), %v352_v14, 0.0  ;;  %v417_v18 = vmax.f32 (!%p3079_p5), %v353_v15, 0.0  ;;  %v354_v19 = vld [vmem:[#allocation3 + $0x48] sm:$0xff] (!%p3079_p5) }
  0x80   : > { %267 = vst [vmem:[#allocation2 + $0x230] sm:$0xff] (!%p3079_p5), %v3511_v3  ;;  %268 = vst [vmem:[#allocation2 + $0x238] sm:$0x1] (!%p3079_p5), %v3511_v3  ;;  %v355_v20 = vld [vmem:[#allocation3 + $0x50] sm:$0xff] (!%p3079_p5)  ;;  %v356_v21 = vld [vmem:[#allocation3 + $0x58] sm:$0xff] (!%p3079_p5)  ;;  %v418_v22 = vmax.f32 (!%p3079_p5), %v354_v19, 0.0 }
  0x81   : > { %269 = vst [vmem:[#allocation2 + $0x460] sm:$0xff] (!%p3079_p5), %v3511_v3  ;;  %270 = vst [vmem:[#allocation2 + $0x468] sm:$0xff] (!%p3079_p5), %v3511_v3  ;;  %v419_v23 = vmax.f32 (!%p3079_p5), %v355_v20, 0.0  ;;  %v420_v24 = vmax.f32 (!%p3079_p5), %v356_v21, 0.0  ;;  %v357_v25 = vld [vmem:[#allocation3 + $0x60] sm:$0xff] (!%p3079_p5)  ;;  %v358_v26 = vld [vmem:[#allocation3 + $0x68] sm:$0xff] (!%p3079_p5) }
  0x82   : > { %271 = vst [vmem:[#allocation2 + $0x470] sm:$0xff] %v3511_v3  ;;  %272 = vst [vmem:[#allocation2 + $0x478] sm:$0x1] %v3511_v3  ;;  %v359_v27 = vld [vmem:[#allocation3 + $0x70] sm:$0xff]  ;;  %v421_v28 = vmax.f32 %v357_v25, 0.0  ;;  %v422_v29 = vmax.f32 %v358_v26, 0.0 }
  0x83   : > { %274 = vst [vmem:[#allocation2 + $0x27] sm:$0x1] %v3511_v3  ;;  %275 = vst [vmem:[#allocation2 + $0x47] sm:$0x1] %v3511_v3  ;;  %v423_v30 = vmax.f32 %v359_v27, 0.0  ;;  %v360_v31 = vld [vmem:[#allocation3 + $0x78] sm:$0xff] }
  0x84   : > { %276 = vst [vmem:[#allocation2 + $0x67] sm:$0x1] %v3511_v3  ;;  %277 = vst [vmem:[#allocation2 + $0x87] sm:$0x1] %v3511_v3  ;;  %v361_v32 = vld [vmem:[#allocation3 + $0x80] sm:$0xff]  ;;  %v362_v33 = vld [vmem:[#allocation3 + $0x88] sm:$0xff] }
  0x85   : > { %278 = vst [vmem:[#allocation2 + $0xa7] sm:$0x1] %v3511_v3  ;;  %279 = vst [vmem:[#allocation2 + $0xc7] sm:$0x1] %v3511_v3  ;;  %v424_v34 = vmax.f32 %v360_v31, 0.0  ;;  %v425_v35 = vmax.f32 %v361_v32, 0.0 }
  0x86   : > { %280 = vst [vmem:[#allocation2 + $0xe7] sm:$0x1] %v3511_v3  ;;  %281 = vst [vmem:[#allocation2 + $0x107] sm:$0x1] %v3511_v3  ;;  %v426_v36 = vmax.f32 %v362_v33, 0.0  ;;  %v363_v37 = vld [vmem:[#allocation3 + $0x90] sm:$0xff] }
  0x87   : > { %282 = vst [vmem:[#allocation2 + $0x127] sm:$0x1] %v3511_v3  ;;  %283 = vst [vmem:[#allocation2 + $0x147] sm:$0x1] %v3511_v3  ;;  %v364_v38 = vld [vmem:[#allocation3 + $0x98] sm:$0xff]  ;;  %v365_v39 = vld [vmem:[#allocation3 + $0xa0] sm:$0xff] }
  0x88   : > { %284 = vst [vmem:[#allocation2 + $0x167] sm:$0x1] %v3511_v3  ;;  %285 = vst [vmem:[#allocation2 + $0x187] sm:$0x1] %v3511_v3  ;;  %v427_v40 = vmax.f32 %v363_v37, 0.0  ;;  %v428_v41 = vmax.f32 %v364_v38, 0.0 }
  0x89   : > { %286 = vst [vmem:[#allocation2 + $0x1a7] sm:$0x1] %v3511_v3  ;;  %287 = vst [vmem:[#allocation2 + $0x1c7] sm:$0x1] %v3511_v3  ;;  %v429_v42 = vmax.f32 %v365_v39, 0.0  ;;  %v366_v43 = vld [vmem:[#allocation3 + $0xa8] sm:$0xff] }
  0x8a   : > { %288 = vst [vmem:[#allocation2 + $0x1e7] sm:$0x1] %v3511_v3  ;;  %289 = vst [vmem:[#allocation2 + $0x207] sm:$0x1] %v3511_v3  ;;  %v367_v44 = vld [vmem:[#allocation3 + $0xb0] sm:$0xff]  ;;  %v368_v45 = vld [vmem:[#allocation3 + $0xb8] sm:$0xff] }
  0x8b   : > { %292 = vst [vmem:[#allocation2 + $0x267] sm:$0x1] %v3511_v3  ;;  %293 = vst [vmem:[#allocation2 + $0x287] sm:$0x1] %v3511_v3  ;;  %v430_v46 = vmax.f32 %v366_v43, 0.0  ;;  %v431_v47 = vmax.f32 %v367_v44, 0.0 }
  0x8c   : > { %294 = vst [vmem:[#allocation2 + $0x2a7] sm:$0x1] %v3511_v3  ;;  %295 = vst [vmem:[#allocation2 + $0x2c7] sm:$0x1] %v3511_v3  ;;  %v432_v48 = vmax.f32 %v368_v45, 0.0  ;;  %v369_v49 = vld [vmem:[#allocation3 + $0xc0] sm:$0xff] }
  0x8d   : > { %296 = vst [vmem:[#allocation2 + $0x2e7] sm:$0x1] %v3511_v3  ;;  %297 = vst [vmem:[#allocation2 + $0x307] sm:$0x1] %v3511_v3  ;;  %v370_v50 = vld [vmem:[#allocation3 + $0xc8] sm:$0xff]  ;;  %v371_v51 = vld [vmem:[#allocation3 + $0xd0] sm:$0xff] }
  0x8e   : > { %298 = vst [vmem:[#allocation2 + $0x327] sm:$0x1] %v3511_v3  ;;  %299 = vst [vmem:[#allocation2 + $0x347] sm:$0x1] %v3511_v3  ;;  %v433_v52 = vmax.f32 %v369_v49, 0.0  ;;  %v434_v53 = vmax.f32 %v370_v50, 0.0 }
  0x8f   : > { %300 = vst [vmem:[#allocation2 + $0x367] sm:$0x1] %v3511_v3  ;;  %301 = vst [vmem:[#allocation2 + $0x387] sm:$0x1] %v3511_v3  ;;  %v435_v54 = vmax.f32 %v371_v51, 0.0  ;;  %v372_v55 = vld [vmem:[#allocation3 + $0xd8] sm:$0xff] }
  0x90   : > { %302 = vst [vmem:[#allocation2 + $0x3a7] sm:$0x1] %v3511_v3  ;;  %303 = vst [vmem:[#allocation2 + $0x3c7] sm:$0x1] %v3511_v3  ;;  %v373_v56 = vld [vmem:[#allocation3 + $0xe0] sm:$0xff]  ;;  %v374_v57 = vld [vmem:[#allocation3 + $0xe8] sm:$0xff] }
  0x91   : > { %304 = vst [vmem:[#allocation2 + $0x3e7] sm:$0x1] %v3511_v3  ;;  %305 = vst [vmem:[#allocation2 + $0x407] sm:$0x1] %v3511_v3  ;;  %v436_v58 = vmax.f32 %v372_v55, 0.0  ;;  %v437_v59 = vmax.f32 %v373_v56, 0.0 }
  0x92   : > { %306 = vst [vmem:[#allocation2 + $0x427] sm:$0x1] %v3511_v3  ;;  %307 = vst [vmem:[#allocation2 + $0x447] sm:$0x1] %v3511_v3  ;;  %v438_v60 = vmax.f32 %v374_v57, 0.0  ;;  %v375_v61 = vld [vmem:[#allocation3 + $0xf0] sm:$0xff] }
  0x93   : > { %310 = vst [vmem:[#allocation2 + $0x38] sm:$0x1] %v3511_v3  ;;  %311 = vst [vmem:[#allocation2 + $0x58] sm:$0x1] %v3511_v3  ;;  %v376_v62 = vld [vmem:[#allocation3 + $0xf8] sm:$0xff]  ;;  %v377_v63 = vld [vmem:[#allocation3 + $0x100] sm:$0xff] }
  0x94   : > { %312 = vst [vmem:[#allocation2 + $0x78] sm:$0x1] %v3511_v3  ;;  %313 = vst [vmem:[#allocation2 + $0x98] sm:$0x1] %v3511_v3  ;;  %v439_v0 = vmax.f32 %v375_v61, 0.0  ;;  %v440_v1 = vmax.f32 %v376_v62, 0.0 }
  0x95   : > { %314 = vst [vmem:[#allocation2 + $0xb8] sm:$0x1] %v3511_v3  ;;  %315 = vst [vmem:[#allocation2 + $0xd8] sm:$0x1] %v3511_v3  ;;  %v441_v2 = vmax.f32 %v377_v63, 0.0  ;;  %v381_v9 = vld [vmem:[#allocation3 + $0x120] sm:$0xff] }
  0x96   : > { %316 = vst [vmem:[#allocation2 + $0xf8] sm:$0x1] %v3511_v3  ;;  %317 = vst [vmem:[#allocation2 + $0x118] sm:$0x1] %v3511_v3  ;;  %v384_v15 = vld [vmem:[#allocation3 + $0x138] sm:$0xff]  ;;  %v387_v21 = vld [vmem:[#allocation3 + $0x150] sm:$0xff] }
  0x97   : > { %318 = vst [vmem:[#allocation2 + $0x138] sm:$0x1] %v3511_v3  ;;  %319 = vst [vmem:[#allocation2 + $0x158] sm:$0x1] %v3511_v3  ;;  %v390_v27 = vld [vmem:[#allocation3 + $0x168] sm:$0xff]  ;;  %v393_v33 = vld [vmem:[#allocation3 + $0x180] sm:$0xff] }
  0x98   : > { %320 = vst [vmem:[#allocation2 + $0x178] sm:$0x1] %v3511_v3  ;;  %321 = vst [vmem:[#allocation2 + $0x198] sm:$0x1] %v3511_v3  ;;  %v396_v39 = vld [vmem:[#allocation3 + $0x198] sm:$0xff]  ;;  %v399_v45 = vld [vmem:[#allocation3 + $0x1b0] sm:$0xff] }
  0x99   : > { %322 = vst [vmem:[#allocation2 + $0x1b8] sm:$0x1] %v3511_v3  ;;  %323 = vst [vmem:[#allocation2 + $0x1d8] sm:$0x1] %v3511_v3  ;;  %v402_v51 = vld [vmem:[#allocation3 + $0x1c8] sm:$0xff]  ;;  %v405_v57 = vld [vmem:[#allocation3 + $0x1e0] sm:$0xff] }
  0x9a   : > { %324 = vst [vmem:[#allocation2 + $0x1f8] sm:$0x1] %v3511_v3  ;;  %325 = vst [vmem:[#allocation2 + $0x218] sm:$0x1] %v3511_v3  ;;  %v408_v63 = vld [vmem:[#allocation3 + $0x1f8] sm:$0xff] }
  0x9b   : > { %328 = vst [vmem:[#allocation2 + $0x278] sm:$0x1] %v3511_v3  ;;  %329 = vst [vmem:[#allocation2 + $0x298] sm:$0x1] %v3511_v3 }
  0x9c   : > { %330 = vst [vmem:[#allocation2 + $0x2b8] sm:$0x1] %v3511_v3  ;;  %331 = vst [vmem:[#allocation2 + $0x2d8] sm:$0x1] %v3511_v3 }
  0x9d   : > { %332 = vst [vmem:[#allocation2 + $0x2f8] sm:$0x1] %v3511_v3  ;;  %333 = vst [vmem:[#allocation2 + $0x318] sm:$0x1] %v3511_v3 }
  0x9e   : > { %334 = vst [vmem:[#allocation2 + $0x338] sm:$0x1] %v3511_v3  ;;  %335 = vst [vmem:[#allocation2 + $0x358] sm:$0x1] %v3511_v3 }
  0x9f   : > { %336 = vst [vmem:[#allocation2 + $0x378] sm:$0x1] %v3511_v3  ;;  %337 = vst [vmem:[#allocation2 + $0x398] sm:$0x1] %v3511_v3 }
  0xa0   : > { %338 = vst [vmem:[#allocation2 + $0x3b8] sm:$0x1] %v3511_v3  ;;  %339 = vst [vmem:[#allocation2 + $0x3d8] sm:$0x1] %v3511_v3 }
  0xa1   : > { %340 = vst [vmem:[#allocation2 + $0x3f8] sm:$0x1] %v3511_v3  ;;  %341 = vst [vmem:[#allocation2 + $0x418] sm:$0x1] %v3511_v3 }
  0xa2   : > { %342 = vst [vmem:[#allocation2 + $0x438] sm:$0x1] %v3511_v3  ;;  %343 = vst [vmem:[#allocation2 + $0x458] sm:$0x1] %v3511_v3 }
  0xa3   : > { %273 = vst [vmem:[#allocation2 + $0x7] sm:$0x1] %v3511_v3  ;;  %290 = vst [vmem:[#allocation2 + $0x227] sm:$0x1] %v3511_v3 }
  0xa4   : > { %291 = vst [vmem:[#allocation2 + $0x247] sm:$0x1] %v3511_v3  ;;  %308 = vst [vmem:[#allocation2 + $0x467] sm:$0x1] %v3511_v3 }
  0xa5   : > { %309 = vst [vmem:[#allocation2 + $0x18] sm:$0x1] %v3511_v3  ;;  %326 = vst [vmem:[#allocation2 + $0x238] sm:$0x1] %v3511_v3 }
  0xa6   : > { %327 = vst [vmem:[#allocation2 + $0x258] sm:$0x1] %v3511_v3  ;;  %344 = vst [vmem:[#allocation2 + $0x478] sm:$0x1] %v3511_v3  ;;  %v378_v3 = vld [vmem:[#allocation3 + $0x108] sm:$0xff] }
  0xa7   : > { %474 = vst [vmem:[#allocation2 + $0x28] sm:$0xff] %v409_v4  ;;  %475 = vst [vmem:[#allocation2 + $0x30] sm:$0xff] %v410_v5  ;;  %v379_v4 = vld [vmem:[#allocation3 + $0x110] sm:$0xff]  ;;  %v380_v5 = vld [vmem:[#allocation3 + $0x118] sm:$0xff] }
  0xa8   : > { %476 = vst [vmem:[#allocation2 + $0x48] sm:$0xff] %v411_v6  ;;  %477 = vst [vmem:[#allocation2 + $0x50] sm:$0xff] %v412_v10  ;;  %v442_v6 = vmax.f32 %v378_v3, 0.0  ;;  %v443_v7 = vmax.f32 %v379_v4, 0.0  ;;  %v444_v8 = vmax.f32 %v380_v5, 0.0  ;;  %v382_v10 = vld [vmem:[#allocation3 + $0x128] sm:$0xff] }
  0xa9   : > { %478 = vst [vmem:[#allocation2 + $0x68] sm:$0xff] %v413_v11  ;;  %479 = vst [vmem:[#allocation2 + $0x70] sm:$0xff] %v414_v12  ;;  %v383_v11 = vld [vmem:[#allocation3 + $0x130] sm:$0xff]  ;;  %v445_v12 = vmax.f32 %v381_v9, 0.0  ;;  %v446_v13 = vmax.f32 %v382_v10, 0.0 }
  0xaa   : > { %480 = vst [vmem:[#allocation2 + $0x88] sm:$0xff] %v415_v16  ;;  %481 = vst [vmem:[#allocation2 + $0x90] sm:$0xff] %v416_v17  ;;  %v447_v14 = vmax.f32 %v383_v11, 0.0  ;;  %v385_v16 = vld [vmem:[#allocation3 + $0x140] sm:$0xff]  ;;  %v386_v17 = vld [vmem:[#allocation3 + $0x148] sm:$0xff] }
  0xab   : > { %482 = vst [vmem:[#allocation2 + $0xa8] sm:$0xff] %v417_v18  ;;  %483 = vst [vmem:[#allocation2 + $0xb0] sm:$0xff] %v418_v22  ;;  %v448_v18 = vmax.f32 %v384_v15, 0.0  ;;  %v449_v19 = vmax.f32 %v385_v16, 0.0  ;;  %v450_v20 = vmax.f32 %v386_v17, 0.0  ;;  %v388_v22 = vld [vmem:[#allocation3 + $0x158] sm:$0xff] }
  0xac   : > { %484 = vst [vmem:[#allocation2 + $0xc8] sm:$0xff] %v419_v23  ;;  %485 = vst [vmem:[#allocation2 + $0xd0] sm:$0xff] %v420_v24  ;;  %v389_v23 = vld [vmem:[#allocation3 + $0x160] sm:$0xff]  ;;  %v451_v24 = vmax.f32 %v387_v21, 0.0  ;;  %v452_v25 = vmax.f32 %v388_v22, 0.0 }
  0xad   : > { %486 = vst [vmem:[#allocation2 + $0xe8] sm:$0xff] %v421_v28  ;;  %487 = vst [vmem:[#allocation2 + $0xf0] sm:$0xff] %v422_v29  ;;  %v453_v26 = vmax.f32 %v389_v23, 0.0  ;;  %v391_v28 = vld [vmem:[#allocation3 + $0x170] sm:$0xff]  ;;  %v392_v29 = vld [vmem:[#allocation3 + $0x178] sm:$0xff] }
  0xae   : > { %488 = vst [vmem:[#allocation2 + $0x108] sm:$0xff] %v423_v30  ;;  %489 = vst [vmem:[#allocation2 + $0x110] sm:$0xff] %v424_v34  ;;  %v454_v30 = vmax.f32 %v390_v27, 0.0  ;;  %v455_v31 = vmax.f32 %v391_v28, 0.0  ;;  %v456_v32 = vmax.f32 %v392_v29, 0.0  ;;  %v394_v34 = vld [vmem:[#allocation3 + $0x188] sm:$0xff] }
  0xaf   : > { %490 = vst [vmem:[#allocation2 + $0x128] sm:$0xff] %v425_v35  ;;  %491 = vst [vmem:[#allocation2 + $0x130] sm:$0xff] %v426_v36  ;;  %v395_v35 = vld [vmem:[#allocation3 + $0x190] sm:$0xff]  ;;  %v457_v36 = vmax.f32 %v393_v33, 0.0  ;;  %v458_v37 = vmax.f32 %v394_v34, 0.0 }
  0xb0   : > { %492 = vst [vmem:[#allocation2 + $0x148] sm:$0xff] %v427_v40  ;;  %493 = vst [vmem:[#allocation2 + $0x150] sm:$0xff] %v428_v41  ;;  %v459_v38 = vmax.f32 %v395_v35, 0.0  ;;  %v397_v40 = vld [vmem:[#allocation3 + $0x1a0] sm:$0xff]  ;;  %v398_v41 = vld [vmem:[#allocation3 + $0x1a8] sm:$0xff] }
  0xb1   : > { %494 = vst [vmem:[#allocation2 + $0x168] sm:$0xff] %v429_v42  ;;  %495 = vst [vmem:[#allocation2 + $0x170] sm:$0xff] %v430_v46  ;;  %v460_v42 = vmax.f32 %v396_v39, 0.0  ;;  %v461_v43 = vmax.f32 %v397_v40, 0.0  ;;  %v462_v44 = vmax.f32 %v398_v41, 0.0  ;;  %v400_v46 = vld [vmem:[#allocation3 + $0x1b8] sm:$0xff] }
  0xb2   : > { %496 = vst [vmem:[#allocation2 + $0x188] sm:$0xff] %v431_v47  ;;  %497 = vst [vmem:[#allocation2 + $0x190] sm:$0xff] %v432_v48  ;;  %v401_v47 = vld [vmem:[#allocation3 + $0x1c0] sm:$0xff]  ;;  %v463_v48 = vmax.f32 %v399_v45, 0.0  ;;  %v464_v49 = vmax.f32 %v400_v46, 0.0 }
  0xb3   : > { %498 = vst [vmem:[#allocation2 + $0x1a8] sm:$0xff] %v433_v52  ;;  %499 = vst [vmem:[#allocation2 + $0x1b0] sm:$0xff] %v434_v53  ;;  %v465_v50 = vmax.f32 %v401_v47, 0.0  ;;  %v403_v52 = vld [vmem:[#allocation3 + $0x1d0] sm:$0xff]  ;;  %v404_v53 = vld [vmem:[#allocation3 + $0x1d8] sm:$0xff] }
  0xb4   : > { %500 = vst [vmem:[#allocation2 + $0x1c8] sm:$0xff] %v435_v54  ;;  %501 = vst [vmem:[#allocation2 + $0x1d0] sm:$0xff] %v436_v58  ;;  %v466_v54 = vmax.f32 %v402_v51, 0.0  ;;  %v467_v55 = vmax.f32 %v403_v52, 0.0  ;;  %v468_v56 = vmax.f32 %v404_v53, 0.0  ;;  %v406_v58 = vld [vmem:[#allocation3 + $0x1e8] sm:$0xff] }
  0xb5   : > { %502 = vst [vmem:[#allocation2 + $0x1e8] sm:$0xff] %v437_v59  ;;  %503 = vst [vmem:[#allocation2 + $0x1f0] sm:$0xff] %v438_v60  ;;  %v407_v59 = vld [vmem:[#allocation3 + $0x1f0] sm:$0xff]  ;;  %v469_v60 = vmax.f32 %v405_v57, 0.0  ;;  %v470_v61 = vmax.f32 %v406_v58, 0.0 }
  0xb6   : > { %504 = vst [vmem:[#allocation2 + $0x208] sm:$0xff] %v439_v0  ;;  %505 = vst [vmem:[#allocation2 + $0x210] sm:$0xff] %v440_v1  ;;  %v471_v62 = vmax.f32 %v407_v59, 0.0  ;;  %v472_v0 = vmax.f32 %v408_v63, 0.0 }
  0xb7   : > { %506 = vst [vmem:[#allocation2 + $0x268] sm:$0xff] %v441_v2  ;;  %507 = vst [vmem:[#allocation2 + $0x270] sm:$0xff] %v442_v6 }
  0xb8   : > { %508 = vst [vmem:[#allocation2 + $0x288] sm:$0xff] %v443_v7  ;;  %509 = vst [vmem:[#allocation2 + $0x290] sm:$0xff] %v444_v8 }
  0xb9   : > { %510 = vst [vmem:[#allocation2 + $0x2a8] sm:$0xff] %v445_v12  ;;  %511 = vst [vmem:[#allocation2 + $0x2b0] sm:$0xff] %v446_v13 }
  0xba   : > { %512 = vst [vmem:[#allocation2 + $0x2c8] sm:$0xff] %v447_v14  ;;  %513 = vst [vmem:[#allocation2 + $0x2d0] sm:$0xff] %v448_v18 }
  0xbb   : > { %514 = vst [vmem:[#allocation2 + $0x2e8] sm:$0xff] %v449_v19  ;;  %515 = vst [vmem:[#allocation2 + $0x2f0] sm:$0xff] %v450_v20 }
  0xbc   : > { %516 = vst [vmem:[#allocation2 + $0x308] sm:$0xff] %v451_v24  ;;  %517 = vst [vmem:[#allocation2 + $0x310] sm:$0xff] %v452_v25 }
  0xbd   : > { %518 = vst [vmem:[#allocation2 + $0x328] sm:$0xff] %v453_v26  ;;  %519 = vst [vmem:[#allocation2 + $0x330] sm:$0xff] %v454_v30 }
  0xbe   : > { %520 = vst [vmem:[#allocation2 + $0x348] sm:$0xff] %v455_v31  ;;  %521 = vst [vmem:[#allocation2 + $0x350] sm:$0xff] %v456_v32 }
  0xbf   : > { %522 = vst [vmem:[#allocation2 + $0x368] sm:$0xff] %v457_v36  ;;  %523 = vst [vmem:[#allocation2 + $0x370] sm:$0xff] %v458_v37 }
  0xc0   : > { %524 = vst [vmem:[#allocation2 + $0x388] sm:$0xff] %v459_v38  ;;  %525 = vst [vmem:[#allocation2 + $0x390] sm:$0xff] %v460_v42 }
  0xc1   : > { %526 = vst [vmem:[#allocation2 + $0x3a8] sm:$0xff] %v461_v43  ;;  %527 = vst [vmem:[#allocation2 + $0x3b0] sm:$0xff] %v462_v44 }
  0xc2   : > { %528 = vst [vmem:[#allocation2 + $0x3c8] sm:$0xff] %v463_v48  ;;  %529 = vst [vmem:[#allocation2 + $0x3d0] sm:$0xff] %v464_v49 }
  0xc3   : > { %530 = vst [vmem:[#allocation2 + $0x3e8] sm:$0xff] %v465_v50  ;;  %531 = vst [vmem:[#allocation2 + $0x3f0] sm:$0xff] %v466_v54 }
  0xc4   : > { %532 = vst [vmem:[#allocation2 + $0x408] sm:$0xff] %v467_v55  ;;  %533 = vst [vmem:[#allocation2 + $0x410] sm:$0xff] %v468_v56 }
  0xc5   : > { %534 = vst [vmem:[#allocation2 + $0x428] sm:$0xff] %v469_v60  ;;  %535 = vst [vmem:[#allocation2 + $0x430] sm:$0xff] %v470_v61 }
  0xc6   : > { %536 = vst [vmem:[#allocation2 + $0x448] sm:$0xff] %v471_v62  ;;  %537 = vst [vmem:[#allocation2 + $0x450] sm:$0xff] %v472_v0 }
  0xc7 PF: > { %s3097_s21 = sshll.u32 %s3491_s15, 6  ;;  %v628_v1 = vlaneseq  ;;  %s538_s22 = smul.u32 12, %s3491_s15  ;;  %v564_v9 = vld [vmem:[#allocation2 + $0x7] sm:$0xff]  ;;  %v3822_v32 = vld [vmem:[#allocation2 + $0x2f] sm:$0xff] }
  0xc8   : > { %s3790_s23 = scalar_lea.vmem [#allocation8], %s3097_s21  ;;  %v565_v10 = vld [vmem:[#allocation2 + $0xf] sm:$0xff]  ;;  %v3820_v31 = vld [vmem:[#allocation2 + $0x27] sm:$0xff]  ;;  %s562_s26 = scalar_lea.vmem [#allocation9], %s3491_s15 }
  0xc9   : > { %v3315_v2 = vld [vmem:[%s3790_s23] sm:$0xff]   ;;  %v3316_v3 = vld [vmem:[%s3790_s23 + $0x8] sm:$0xff]   ;;  %v629_v4 = vshrl.u32 %v628_v1, 7  ;;  %v3317_v5 = vld [vmem:[%s3790_s23 + $0x10] sm:$0xff]   ;;  %s539_s7 = scalar_lea.vmem [#allocation6], %s538_s22  ;;  %p3091_p8 = scmp.ge.s32.totalorder %s3491_s15, 5 }
  0xca   : > { %3138 = vmatprep.subr.bf16.mxu0 %v3315_v2  ;;  %3218 = vmatprep.subr.bf16.mxu1 %v3315_v2  ;;  %v696_v11 = vld [vmem:[#allocation2 + $0x8] sm:$0xff]  ;;  %v3318_v12 = vld [vmem:[%s3790_s23 + $0x18] sm:$0xff]   ;;  %v540_v13 = vld [vmem:[%s539_s7] sm:$0x7] }
  0xcb   : > { %3139 = vmatpush3.bf16.msra.mxu0 %v3315_v2  ;;  %3226 = vmatpush3.bf16.msra.mxu1 %v3315_v2  ;;  %v630_v6 = vsub.s32 0, %v629_v4  ;;  %v762_v7 = vsub.s32 1, %v629_v4  ;;  %v3795_v8 = vsub.s32 2, %v629_v4  ;;  %v541_v14 = vld [vmem:[%s539_s7 + $0x4] sm:$0x7]  ;;  %v697_v17 = vld [vmem:[#allocation2 + $0x10] sm:$0xff] }
  0xcc   : > { %3140 = vmatprep.subr.bf16.mxu0 %v3316_v3  ;;  %3219 = vmatprep.subr.bf16.mxu1 %v3316_v3  ;;  %v542_v15 = vld [vmem:[%s539_s7 + $0x8] sm:$0x7]  ;;  %v893_v20 = vld [vmem:[#allocation2 + $0x11] sm:$0xff]  ;;  %v3319_v23 = vld [vmem:[%s3790_s23 + $0x20] sm:$0xff]  }
  0xcd   : > { %v3798_v16 = vrot.slane %v540_v13, %v630_v6  ;;  %v3800_v18 = vrot.slane %v540_v13, %v762_v7  ;;  %v892_v19 = vld [vmem:[#allocation2 + $0x9] sm:$0xff]  ;;  %v3803_v21 = vrot.slane %v540_v13, %v3795_v8  ;;  %v3805_v22 = vrot.slane %v541_v14, %v630_v6  ;;  %v3833_v39 = vld [vmem:[#allocation2 + $0x31] sm:$0xff] }
  0xce   : > { %v3808_v24 = vrot.slane %v541_v14, %v762_v7  ;;  %v3811_v25 = vrot.slane %v541_v14, %v3795_v8  ;;  %v3813_v26 = vrot.slane %v542_v15, %v630_v6  ;;  %v3815_v27 = vrot.slane %v542_v15, %v762_v7  ;;  %v3824_v33 = vld [vmem:[#allocation2 + $0x28] sm:$0xff]  ;;  %v3829_v37 = vld [vmem:[#allocation2 + $0x30] sm:$0xff] }
  0xcf   : > { %3141 = vmatpush3.bf16.msra.mxu0 %v3316_v3  ;;  %3227 = vmatpush3.bf16.msra.mxu1 %v3316_v3  ;;  %v632_v28 = vmul.f32 %v3798_v16, %v564_v9  ;;  %v633_v29 = vmul.f32 %v3798_v16, %v565_v10  ;;  %v764_v30 = vmul.f32 %v3800_v18, %v696_v11  ;;  %v3831_v38 = vld [vmem:[#allocation2 + $0x29] sm:$0xff]  ;;  %v3871_v6 = vld [vmem:[#allocation2 + $0x51] sm:$0xff] }
  0xd0   : > { %3142 = vmatprep.subr.bf16.mxu0 %v3317_v5  ;;  %3220 = vmatprep.subr.bf16.mxu1 %v3317_v5  ;;  %v765_v34 = vmul.f32 %v3800_v18, %v697_v17  ;;  %v960_v35 = vmul.f32 %v3803_v21, %v892_v19  ;;  %v961_v36 = vmul.f32 %v3803_v21, %v893_v20  ;;  %v3841_v44 = vld [vmem:[#allocation2 + $0x47] sm:$0xff]  ;;  %v3843_v45 = vld [vmem:[#allocation2 + $0x4f] sm:$0xff] }
  0xd1   : > { %v828_v40 = vadd.f32 %v764_v30, %v632_v28  ;;  %v1157_v41 = vmul.f32 %v3805_v22, %v3820_v31  ;;  %v1158_v42 = vmul.f32 %v3805_v22, %v3822_v32  ;;  %v1353_v43 = vmul.f32 %v3808_v24, %v3824_v33  ;;  %v3845_v46 = vld [vmem:[#allocation2 + $0x48] sm:$0xff]  ;;  %v3853_v51 = vld [vmem:[#allocation2 + $0x50] sm:$0xff] }
  0xd2   : > { %v829_v47 = vadd.f32 %v765_v34, %v633_v29  ;;  %v1354_v48 = vmul.f32 %v3808_v24, %v3829_v37  ;;  %v1549_v49 = vmul.f32 %v3811_v25, %v3831_v38  ;;  %v1550_v50 = vmul.f32 %v3811_v25, %v3833_v39  ;;  %v596_v52 = vld [vmem:[#allocation2 + $0x247] sm:$0xff]  ;;  %v597_v53 = vld [vmem:[#allocation2 + $0x24f] sm:$0xff] }
  0xd3   : > { %3143 = vmatpush3.bf16.msra.mxu0 %v3317_v5  ;;  %3228 = vmatpush3.bf16.msra.mxu1 %v3317_v5  ;;  %v1024_v54 = vadd.f32 %v960_v35, %v828_v40  ;;  %v1746_v55 = vmul.f32 %v3813_v26, %v3841_v44  ;;  %v1747_v56 = vmul.f32 %v3813_v26, %v3843_v45  ;;  %v728_v57 = vld [vmem:[#allocation2 + $0x248] sm:$0xff]  ;;  %v729_v58 = vld [vmem:[#allocation2 + $0x250] sm:$0xff] }
  0xd4   : > { %3144 = vmatprep.subr.bf16.mxu0 %v3318_v12  ;;  %3221 = vmatprep.subr.bf16.mxu1 %v3318_v12  ;;  %v924_v59 = vld [vmem:[#allocation2 + $0x249] sm:$0xff]  ;;  %v1025_v61 = vadd.f32 %v961_v36, %v829_v47  ;;  %v1942_v62 = vmul.f32 %v3815_v27, %v3845_v46  ;;  %v1943_v63 = vmul.f32 %v3815_v27, %v3853_v51  ;;  %v925_v10 = vld [vmem:[#allocation2 + $0x251] sm:$0xff] }
  0xd5   : > { %v3320_v60 = vld [vmem:[%s3790_s23 + $0x28] sm:$0xff]   ;;  %v1221_v0 = vadd.f32 %v1157_v41, %v1024_v54  ;;  %v3865_v1 = vrot.slane %v542_v15, %v3795_v8  ;;  %v664_v2 = vmul.f32 %v3798_v16, %v596_v52  ;;  %v665_v3 = vmul.f32 %v3798_v16, %v597_v53  ;;  %v3321_v14 = vld [vmem:[%s3790_s23 + $0x30] sm:$0xff]  }
  0xd6   : > { %v1222_v4 = vadd.f32 %v1158_v42, %v1025_v61  ;;  %v3869_v5 = vld [vmem:[#allocation2 + $0x49] sm:$0xff]  ;;  %v796_v7 = vmul.f32 %v3800_v18, %v728_v57  ;;  %v797_v9 = vmul.f32 %v3800_v18, %v729_v58  ;;  %v992_v11 = vmul.f32 %v3803_v21, %v924_v59  ;;  %v3900_v52 = vld [vmem:[#allocation2 + $0x271] sm:$0xff] }
  0xd7   : > { %3145 = vmatpush3.bf16.msra.mxu0 %v3318_v12  ;;  %3229 = vmatpush3.bf16.msra.mxu1 %v3318_v12  ;;  %v1417_v8 = vadd.f32 %v1353_v43, %v1221_v0  ;;  %v2138_v12 = vmul.f32 %v3865_v1, %v3869_v5  ;;  %v2139_v13 = vmul.f32 %v3865_v1, %v3871_v6  ;;  %v3881_v20 = vld [vmem:[#allocation2 + $0x267] sm:$0xff]  ;;  %v3883_v28 = vld [vmem:[#allocation2 + $0x26f] sm:$0xff] }
  0xd8   : > { %3146 = vmatprep.subr.bf16.mxu0 %v3319_v23  ;;  %3222 = vmatprep.subr.bf16.mxu1 %v3319_v23  ;;  %v1418_v15 = vadd.f32 %v1354_v48, %v1222_v4  ;;  %v860_v17 = vadd.f32 %v796_v7, %v664_v2  ;;  %v861_v19 = vadd.f32 %v797_v9, %v665_v3  ;;  %v3890_v35 = vld [vmem:[#allocation2 + $0x268] sm:$0xff]  ;;  %v3892_v36 = vld [vmem:[#allocation2 + $0x270] sm:$0xff] }
  0xd9   : > { %v1613_v29 = vadd.f32 %v1549_v49, %v1417_v8  ;;  %v1189_v30 = vmul.f32 %v3805_v22, %v3881_v20  ;;  %v1190_v34 = vmul.f32 %v3805_v22, %v3883_v28  ;;  %v1385_v42 = vmul.f32 %v3808_v24, %v3890_v35  ;;  %v3898_v47 = vld [vmem:[#allocation2 + $0x269] sm:$0xff] }
  0xda   : > { %v1614_v40 = vadd.f32 %v1550_v50, %v1418_v15  ;;  %v1056_v41 = vadd.f32 %v992_v11, %v860_v17  ;;  %v1386_v43 = vmul.f32 %v3808_v24, %v3892_v36  ;;  %v1581_v53 = vmul.f32 %v3811_v25, %v3898_v47  ;;  %v3322_v50 = vld [vmem:[%s3790_s23 + $0x38] sm:$0xff]   ;;  %v3907_v59 = vld [vmem:[#allocation2 + $0x287] sm:$0xff]  ;;  %v3909_v61 = vld [vmem:[#allocation2 + $0x28f] sm:$0xff] }
  0xdb   : > { %3147 = vmatpush3.bf16.msra.mxu0 %v3319_v23  ;;  %3230 = vmatpush3.bf16.msra.mxu1 %v3319_v23  ;;  %v993_v23 = vmul.f32 %v3803_v21, %v925_v10  ;;  %v1810_v48 = vadd.f32 %v1746_v55, %v1613_v29  ;;  %v1582_v58 = vmul.f32 %v3811_v25, %v3900_v52  ;;  %v3915_v3 = vld [vmem:[#allocation2 + $0x288] sm:$0xff]  ;;  %v3917_v4 = vld [vmem:[#allocation2 + $0x290] sm:$0xff] }
  0xdc   : > { %3148 = vmatprep.subr.bf16.mxu0 %v3320_v60  ;;  %3223 = vmatprep.subr.bf16.mxu1 %v3320_v60  ;;  %v1811_v54 = vadd.f32 %v1747_v56, %v1614_v40  ;;  %v1253_v57 = vadd.f32 %v1189_v30, %v1056_v41  ;;  %v1778_v0 = vmul.f32 %v3813_v26, %v3907_v59  ;;  %v3925_v15 = vld [vmem:[#allocation2 + $0x291] sm:$0xff] }
  0xdd   : > { %v1057_v49 = vadd.f32 %v993_v23, %v861_v19  ;;  %v1779_v2 = vmul.f32 %v3813_v26, %v3909_v61  ;;  %v1974_v9 = vmul.f32 %v3815_v27, %v3915_v3  ;;  %v1975_v10 = vmul.f32 %v3815_v27, %v3917_v4 }
  0xde   : > { %v2007_v56 = vadd.f32 %v1943_v63, %v1811_v54  ;;  %v1449_v7 = vadd.f32 %v1385_v42, %v1253_v57  ;;  %v2171_v29 = vmul.f32 %v3865_v1, %v3925_v15  ;;  %v634_v30 = vmul.f32 %v3820_v31, %v3798_v16 }
  0xdf   : > { %3149 = vmatpush3.bf16.msra.mxu0 %v3320_v60  ;;  %3231 = vmatpush3.bf16.msra.mxu1 %v3320_v60  ;;  %v2006_v60 = vadd.f32 %v1942_v62, %v1810_v48  ;;  %v1254_v55 = vadd.f32 %v1190_v34, %v1057_v49  ;;  %v3923_v62 = vld [vmem:[#allocation2 + $0x289] sm:$0xff]  ;;  %v767_v41 = vmul.f32 %v3829_v37, %v3800_v18 }
  0xe0   : > { %3150 = vmatprep.subr.bf16.mxu0 %v3321_v14  ;;  %3224 = vmatprep.subr.bf16.mxu1 %v3321_v14  ;;  %v2170_v17 = vmul.f32 %v3865_v1, %v3923_v62  ;;  %v2203_v63 = vadd.f32 %v2139_v13, %v2007_v56  ;;  %v1645_v19 = vadd.f32 %v1581_v53, %v1449_v7  ;;  %v3961_v7 = vld [vmem:[#allocation2 + $0x68] sm:$0xff] }
  0xe1   : > { %v2202_v11 = vadd.f32 %v2138_v12, %v2006_v60  ;;  %v1450_v8 = vadd.f32 %v1386_v43, %v1254_v55  ;;  %v635_v12 = vmul.f32 %v3822_v32, %v3798_v16  ;;  %v962_v13 = vmul.f32 %v3831_v38, %v3803_v21 }
  0xe2   : > { %v1842_v40 = vadd.f32 %v1778_v0, %v1645_v19  ;;  %v963_v31 = vmul.f32 %v3833_v39, %v3803_v21  ;;  %v1160_v49 = vmul.f32 %v3843_v45, %v3805_v22  ;;  %v1355_v38 = vmul.f32 %v3845_v46, %v3808_v24 }
  0xe3   : > { %3151 = vmatpush3.bf16.msra.mxu0 %v3321_v14  ;;  %3232 = vmatpush3.bf16.msra.mxu1 %v3321_v14  ;;  %v1646_v23 = vadd.f32 %v1582_v58, %v1450_v8  ;;  %v766_v14 = vmul.f32 %v3824_v33, %v3800_v18  ;;  %v2266_v34 = vpack.c.bf16 %v2203_v63, %v2202_v11  ;;  %v3953_v58 = vld [vmem:[#allocation2 + $0x67] sm:$0xff] }
  0xe4   : > { %3152 = vmatprep.subr.bf16.mxu0 %v3322_v50  ;;  %3225 = vmatprep.subr.bf16.mxu1 %v3322_v50  ;;  %v2038_v32 = vadd.f32 %v1974_v9, %v1842_v40  ;;  %v831_v48 = vadd.f32 %v767_v41, %v635_v12  ;;  %v1159_v33 = vmul.f32 %v3841_v44, %v3805_v22  ;;  %v3963_v9 = vld [vmem:[#allocation2 + $0x70] sm:$0xff] }
  0xe5   : > { %v1843_v42 = vadd.f32 %v1779_v2, %v1646_v23  ;;  %v830_v43 = vadd.f32 %v766_v14, %v634_v30  ;;  %3154 = vmatprep.mubr.bf16.mxu0 %v2266_v34  ;;  %v1356_v57 = vmul.f32 %v3853_v51, %v3808_v24  ;;  %v1551_v39 = vmul.f32 %v3869_v5, %v3811_v25  ;;  %v3957_v2 = vld [vmem:[#allocation2 + $0x6f] sm:$0xff] }
  0xe6   : > { %v1027_v54 = vadd.f32 %v963_v31, %v831_v48  ;;  %v1552_v0 = vmul.f32 %v3871_v6, %v3811_v25  ;;  %v1748_v56 = vmul.f32 %v3813_v26, %v3953_v58  ;;  %v1749_v11 = vmul.f32 %v3813_v26, %v3957_v2  ;;  %v3971_v63 = vld [vmem:[#allocation2 + $0x69] sm:$0xff]  ;;  %v3989_v31 = vld [vmem:[#allocation2 + $0x71] sm:$0xff] }
  0xe7   : > { %3153 = vmatpush3.bf16.msra.mxu0 %v3322_v50  ;;  %3233 = vmatpush3.bf16.msra.mxu1 %v3322_v50  ;;  %v2039_v37 = vadd.f32 %v1975_v10, %v1843_v42  ;;  %v1026_v53 = vadd.f32 %v962_v13, %v830_v43  ;;  %v2234_v50 = vadd.f32 %v2170_v17, %v2038_v32 }
  0xe8   : > { %v1224_v10 = vadd.f32 %v1160_v49, %v1027_v54  ;;  %v1944_v8 = vmul.f32 %v3815_v27, %v3961_v7  ;;  %v1945_v17 = vmul.f32 %v3815_v27, %v3963_v9  ;;  %v2140_v23 = vmul.f32 %v3865_v1, %v3971_v63 }
  0xe9   : > { %v2235_v60 = vadd.f32 %v2171_v29, %v2039_v37  ;;  %v1223_v55 = vadd.f32 %v1159_v33, %v1026_v53  ;;  %v666_v30 = vmul.f32 %v3881_v20, %v3798_v16  ;;  %v667_v14 = vmul.f32 %v3883_v28, %v3798_v16 }
  0xea   : > { %v1420_v12 = vadd.f32 %v1356_v57, %v1224_v10  ;;  %v798_v34 = vmul.f32 %v3890_v35, %v3800_v18  ;;  %v799_v40 = vmul.f32 %v3892_v36, %v3800_v18  ;;  %v994_v13 = vmul.f32 %v3898_v47, %v3803_v21 }
  0xeb   : > { %v2282_v19 = vpack.c.bf16 %v2235_v60, %v2234_v50  ;;  %v1419_v29 = vadd.f32 %v1355_v38, %v1223_v55  ;;  %v995_v42 = vmul.f32 %v3900_v52, %v3803_v21  ;;  %v1191_v20 = vmul.f32 %v3907_v59, %v3805_v22  ;;  %v4001_v38 = vld [vmem:[#allocation2 + $0x2a7] sm:$0xff]  ;;  %v4003_v50 = vld [vmem:[#allocation2 + $0x2af] sm:$0xff] }
  0xec   : > { %v1616_v43 = vadd.f32 %v1552_v0, %v1420_v12  ;;  %v862_v28 = vadd.f32 %v798_v34, %v666_v30  ;;  %v863_v32 = vadd.f32 %v799_v40, %v667_v14  ;;  %v1192_v35 = vmul.f32 %v3909_v61, %v3805_v22  ;;  %v4011_v55 = vld [vmem:[#allocation2 + $0x2a8] sm:$0xff] }
  0xed   : > { %3186 = vmatprep.mubr.bf16.mxu1 %v2282_v19  ;;  %v1615_v41 = vadd.f32 %v1551_v39, %v1419_v29  ;;  %v2141_v48 = vmul.f32 %v3865_v1, %v3989_v31  ;;  %v1387_v47 = vmul.f32 %v3915_v3, %v3808_v24  ;;  %v1388_v52 = vmul.f32 %v3917_v4, %v3808_v24 }
  0xee   : > { %v1813_v33 = vadd.f32 %v1749_v11, %v1616_v43  ;;  %v1058_v49 = vadd.f32 %v994_v13, %v862_v28  ;;  %v1059_v37 = vadd.f32 %v995_v42, %v863_v32  ;;  %v1583_v53 = vmul.f32 %v3923_v62, %v3811_v25  ;;  %v4013_v11 = vld [vmem:[#allocation2 + $0x2b0] sm:$0xff] }
  0xef   : > { %v1812_v36 = vadd.f32 %v1748_v56, %v1615_v41  ;;  %v1584_v57 = vmul.f32 %v3925_v15, %v3811_v25  ;;  %v1780_v39 = vmul.f32 %v3813_v26, %v4001_v38  ;;  %v1781_v60 = vmul.f32 %v3813_v26, %v4003_v50  ;;  %v4027_v13 = vld [vmem:[#allocation2 + $0x2b1] sm:$0xff] }
  0xf0   : > { %v2009_v0 = vadd.f32 %v1945_v17, %v1813_v33  ;;  %v1255_v56 = vadd.f32 %v1191_v20, %v1058_v49  ;;  %v1256_v10 = vadd.f32 %v1192_v35, %v1059_v37  ;;  %v1976_v19 = vmul.f32 %v3815_v27, %v4011_v55 }
  0xf1   : > { %v2008_v54 = vadd.f32 %v1944_v8, %v1812_v36  ;;  %v4017_v8 = vld [vmem:[#allocation2 + $0x2a9] sm:$0xff]  ;;  %v1977_v30 = vmul.f32 %v3815_v27, %v4013_v11  ;;  %v636_v14 = vmul.f32 %v3841_v44, %v3798_v16  ;;  %v637_v41 = vmul.f32 %v3843_v45, %v3798_v16 }
  0xf2   : > { %v2172_v12 = vmul.f32 %v3865_v1, %v4017_v8  ;;  %v2205_v17 = vadd.f32 %v2141_v48, %v2009_v0  ;;  %v1451_v34 = vadd.f32 %v1387_v47, %v1255_v56  ;;  %v1452_v40 = vadd.f32 %v1388_v52, %v1256_v10  ;;  %v4059_v56 = vld [vmem:[#allocation2 + $0x88] sm:$0xff]  ;;  %v4061_v10 = vld [vmem:[#allocation2 + $0x90] sm:$0xff] }
  0xf3   : > { %v2204_v29 = vadd.f32 %v2140_v23, %v2008_v54  ;;  %v768_v23 = vmul.f32 %v3845_v46, %v3800_v18  ;;  %v769_v42 = vmul.f32 %v3853_v51, %v3800_v18  ;;  %v964_v20 = vmul.f32 %v3869_v5, %v3803_v21  ;;  %v4053_v54 = vld [vmem:[#allocation2 + $0x8f] sm:$0xff] }
  0xf4   : > { %v965_v44 = vmul.f32 %v3871_v6, %v3803_v21  ;;  %v1647_v28 = vadd.f32 %v1583_v53, %v1451_v34  ;;  %v1648_v32 = vadd.f32 %v1584_v57, %v1452_v40  ;;  %v2173_v45 = vmul.f32 %v3865_v1, %v4027_v13  ;;  %v4051_v53 = vld [vmem:[#allocation2 + $0x87] sm:$0xff] }
  0xf5   : > { %v2267_v43 = vpack.c.bf16 %v2205_v17, %v2204_v29  ;;  %v832_v35 = vadd.f32 %v768_v23, %v636_v14  ;;  %v833_v36 = vadd.f32 %v769_v42, %v637_v41  ;;  %v1161_v46 = vmul.f32 %v3953_v58, %v3805_v22 }
  0xf6   : > { %v1162_v51 = vmul.f32 %v3957_v2, %v3805_v22  ;;  %v1844_v48 = vadd.f32 %v1780_v39, %v1647_v28  ;;  %v1845_v5 = vadd.f32 %v1781_v60, %v1648_v32  ;;  %v1357_v6 = vmul.f32 %v3961_v7, %v3808_v24 }
  0xf7   : > { %3155 = vmatmul.mubr.bf16.vlgmr.msra.gmra.mrb[0].mxu0 %v2267_v43  ;;  %v1358_v47 = vmul.f32 %v3963_v9, %v3808_v24  ;;  %v1028_v52 = vadd.f32 %v964_v20, %v832_v35  ;;  %v1029_v33 = vadd.f32 %v965_v44, %v833_v36  ;;  %v1553_v49 = vmul.f32 %v3971_v63, %v3811_v25  ;;  %v4083_v36 = vld [vmem:[#allocation2 + $0x91] sm:$0xff] }
  0xf8   : > { %v1554_v37 = vmul.f32 %v3989_v31, %v3811_v25  ;;  %v2040_v57 = vadd.f32 %v1976_v19, %v1844_v48  ;;  %v2041_v39 = vadd.f32 %v1977_v30, %v1845_v5  ;;  %v1750_v60 = vmul.f32 %v3813_v26, %v4051_v53  ;;  %v4067_v19 = vld [vmem:[#allocation2 + $0x89] sm:$0xff] }
  0xf9   : > { %v1751_v0 = vmul.f32 %v3813_v26, %v4053_v54  ;;  %v1225_v29 = vadd.f32 %v1161_v46, %v1028_v52  ;;  %v1226_v14 = vadd.f32 %v1162_v51, %v1029_v33  ;;  %v1946_v17 = vmul.f32 %v3815_v27, %v4059_v56 }
  0xfa   : > { %v1947_v34 = vmul.f32 %v3815_v27, %v4061_v10  ;;  %v2236_v30 = vadd.f32 %v2172_v12, %v2040_v57  ;;  %v2237_v40 = vadd.f32 %v2173_v45, %v2041_v39  ;;  %v2142_v41 = vmul.f32 %v3865_v1, %v4067_v19 }
  0xfb   : > { %v668_v23 = vmul.f32 %v3907_v59, %v3798_v16  ;;  %v1421_v42 = vadd.f32 %v1357_v6, %v1225_v29  ;;  %v1422_v20 = vadd.f32 %v1358_v47, %v1226_v14  ;;  %v669_v44 = vmul.f32 %v3909_v61, %v3798_v16  ;;  %v4095_v47 = vld [vmem:[#allocation2 + $0x2c7] sm:$0xff] }
  0xfc   : > { %v800_v43 = vmul.f32 %v3915_v3, %v3800_v18  ;;  %v2283_v28 = vpack.c.bf16 %v2237_v40, %v2236_v30  ;;  %v801_v32 = vmul.f32 %v3917_v4, %v3800_v18  ;;  %v996_v12 = vmul.f32 %v3923_v62, %v3803_v21  ;;  %v4107_v14 = vld [vmem:[#allocation2 + $0x2c8] sm:$0xff]  ;;  %v4109_v30 = vld [vmem:[#allocation2 + $0x2d0] sm:$0xff] }
  0xfd   : > { %v997_v45 = vmul.f32 %v3925_v15, %v3803_v21  ;;  %v1617_v35 = vadd.f32 %v1553_v49, %v1421_v42  ;;  %v1618_v59 = vadd.f32 %v1554_v37, %v1422_v20  ;;  %v1193_v61 = vmul.f32 %v4001_v38, %v3805_v22  ;;  %v4101_v37 = vld [vmem:[#allocation2 + $0x2cf] sm:$0xff] }
  0xfe   : > { %v864_v46 = vadd.f32 %v800_v43, %v668_v23  ;;  %3187 = vmatmul.mubr.bf16.vlgmr.msra.gmra.mrb[0].mxu1 %v2283_v28  ;;  %v2143_v3 = vmul.f32 %v3865_v1, %v4083_v36  ;;  %v865_v51 = vadd.f32 %v801_v32, %v669_v44  ;;  %v1194_v4 = vmul.f32 %v4003_v50, %v3805_v22  ;;  %v4111_v40 = vld [vmem:[#allocation2 + $0x2c9] sm:$0xff] }
  0xff   : > { %v1389_v62 = vmul.f32 %v4011_v55, %v3808_v24  ;;  %v1814_v15 = vadd.f32 %v1750_v60, %v1617_v35  ;;  %v1815_v48 = vadd.f32 %v1751_v0, %v1618_v59  ;;  %v1390_v6 = vmul.f32 %v4013_v11, %v3808_v24 }
 0x100   : > { %v1060_v5 = vadd.f32 %v996_v12, %v864_v46  ;;  %v1061_v52 = vadd.f32 %v997_v45, %v865_v51  ;;  %v1585_v33 = vmul.f32 %v4017_v8, %v3811_v25  ;;  %v1586_v49 = vmul.f32 %v4027_v13, %v3811_v25 }
 0x101   : > { %v1782_v57 = vmul.f32 %v3813_v26, %v4095_v47  ;;  %v2010_v39 = vadd.f32 %v1946_v17, %v1814_v15  ;;  %v2011_v60 = vadd.f32 %v1947_v34, %v1815_v48  ;;  %v1783_v29 = vmul.f32 %v3813_v26, %v4101_v37 }
 0x102   : > { %v1257_v0 = vadd.f32 %v1193_v61, %v1060_v5  ;;  %v1258_v23 = vadd.f32 %v1194_v4, %v1061_v52  ;;  %v1978_v42 = vmul.f32 %v3815_v27, %v4107_v14  ;;  %v1979_v20 = vmul.f32 %v3815_v27, %v4109_v30 }
 0x103   : > { %v2174_v17 = vmul.f32 %v3865_v1, %v4111_v40  ;;  %v2206_v34 = vadd.f32 %v2142_v41, %v2010_v39  ;;  %v2207_v44 = vadd.f32 %v2143_v3, %v2011_v60  ;;  %v638_v28 = vmul.f32 %v3953_v58, %v3798_v16  ;;  %v4131_v58 = vld [vmem:[#allocation2 + $0x2d1] sm:$0xff] }
 0x104   : > { %v1453_v43 = vadd.f32 %v1389_v62, %v1257_v0  ;;  %v1454_v32 = vadd.f32 %v1390_v6, %v1258_v23  ;;  %v639_v12 = vmul.f32 %v3957_v2, %v3798_v16  ;;  %v770_v45 = vmul.f32 %v3961_v7, %v3800_v18  ;;  %v4143_v6 = vld [vmem:[#allocation2 + $0xa7] sm:$0xff] }
 0x105   : > { %v771_v35 = vmul.f32 %v3963_v9, %v3800_v18  ;;  %v2268_v59 = vpack.c.bf16 %v2207_v44, %v2206_v34  ;;  %v966_v41 = vmul.f32 %v3971_v63, %v3803_v21  ;;  %v967_v61 = vmul.f32 %v3989_v31, %v3803_v21  ;;  %v4155_v34 = vld [vmem:[#allocation2 + $0xa8] sm:$0xff] }
 0x106   : > { %v1649_v46 = vadd.f32 %v1585_v33, %v1453_v43  ;;  %v1650_v3 = vadd.f32 %v1586_v49, %v1454_v32  ;;  %v834_v51 = vadd.f32 %v770_v45, %v638_v28  ;;  %v1163_v2 = vmul.f32 %v4051_v53, %v3805_v22  ;;  %v4159_v44 = vld [vmem:[#allocation2 + $0xa9] sm:$0xff] }
 0x107   : > { %v835_v4 = vadd.f32 %v771_v35, %v639_v12  ;;  %3158 = vmatprep.mubr.bf16.mxu0 %v2268_v59  ;;  %v2175_v9 = vmul.f32 %v3865_v1, %v4131_v58  ;;  %v1164_v62 = vmul.f32 %v4053_v54, %v3805_v22  ;;  %v1359_v63 = vmul.f32 %v4059_v56, %v3808_v24 }
 0x108   : > { %v1846_v7 = vadd.f32 %v1782_v57, %v1649_v46  ;;  %v1847_v31 = vadd.f32 %v1783_v29, %v1650_v3  ;;  %v1030_v15 = vadd.f32 %v966_v41, %v834_v51  ;;  %v1360_v5 = vmul.f32 %v4061_v10, %v3808_v24  ;;  %v4149_v57 = vld [vmem:[#allocation2 + $0xaf] sm:$0xff] }
 0x109   : > { %v1031_v48 = vadd.f32 %v967_v61, %v835_v4  ;;  %v1555_v33 = vmul.f32 %v4067_v19, %v3811_v25  ;;  %v1556_v49 = vmul.f32 %v4083_v36, %v3811_v25  ;;  %v1752_v39 = vmul.f32 %v3813_v26, %v4143_v6 }
 0x10a   : > { %v2042_v52 = vadd.f32 %v1978_v42, %v1846_v7  ;;  %v2043_v60 = vadd.f32 %v1979_v20, %v1847_v31  ;;  %v1227_v0 = vadd.f32 %v1163_v2, %v1030_v15  ;;  %v1753_v23 = vmul.f32 %v3813_v26, %v4149_v57  ;;  %v4157_v42 = vld [vmem:[#allocation2 + $0xb0] sm:$0xff] }
 0x10b   : > { %v1228_v29 = vadd.f32 %v1164_v62, %v1031_v48  ;;  %v1948_v28 = vmul.f32 %v3815_v27, %v4155_v34  ;;  %v1949_v32 = vmul.f32 %v3815_v27, %v4157_v42  ;;  %v2144_v20 = vmul.f32 %v3865_v1, %v4159_v44  ;;  %v4179_v7 = vld [vmem:[#allocation2 + $0xb1] sm:$0xff] }
 0x10c   : > { %v2238_v43 = vadd.f32 %v2174_v17, %v2042_v52  ;;  %v2239_v12 = vadd.f32 %v2175_v9, %v2043_v60  ;;  %v1423_v45 = vadd.f32 %v1359_v63, %v1227_v0  ;;  %v670_v59 = vmul.f32 %v4001_v38, %v3798_v16  ;;  %v4201_v0 = vld [vmem:[#allocation2 + $0x2e8] sm:$0xff] }
 0x10d   : > { %v1424_v35 = vadd.f32 %v1360_v5, %v1228_v29  ;;  %v671_v46 = vmul.f32 %v4003_v50, %v3798_v16  ;;  %v802_v17 = vmul.f32 %v4011_v55, %v3800_v18  ;;  %v803_v41 = vmul.f32 %v4013_v11, %v3800_v18  ;;  %v4193_v5 = vld [vmem:[#allocation2 + $0x2e7] sm:$0xff] }
 0x10e   : > { %v998_v61 = vmul.f32 %v4017_v8, %v3803_v21  ;;  %v2284_v3 = vpack.c.bf16 %v2239_v12, %v2238_v43  ;;  %v1619_v51 = vadd.f32 %v1555_v33, %v1423_v45  ;;  %v999_v2 = vmul.f32 %v4027_v13, %v3803_v21  ;;  %v4205_v12 = vld [vmem:[#allocation2 + $0x2f0] sm:$0xff] }
 0x10f   : > { %v1620_v4 = vadd.f32 %v1556_v49, %v1424_v35  ;;  %v866_v38 = vadd.f32 %v802_v17, %v670_v59  ;;  %v867_v9 = vadd.f32 %v803_v41, %v671_v46  ;;  %v1195_v50 = vmul.f32 %v4095_v47, %v3805_v22 }
 0x110   : > { %v1196_v55 = vmul.f32 %v4101_v37, %v3805_v22  ;;  %3190 = vmatprep.mubr.bf16.mxu1 %v2284_v3  ;;  %v1816_v11 = vadd.f32 %v1752_v39, %v1619_v51  ;;  %v2145_v8 = vmul.f32 %v3865_v1, %v4179_v7  ;;  %v1391_v63 = vmul.f32 %v4107_v14, %v3808_v24  ;;  %v4197_v39 = vld [vmem:[#allocation2 + $0x2ef] sm:$0xff] }
 0x111   : > { %v1817_v62 = vadd.f32 %v1753_v23, %v1620_v4  ;;  %v1062_v13 = vadd.f32 %v998_v61, %v866_v38  ;;  %v1063_v31 = vadd.f32 %v999_v2, %v867_v9  ;;  %v1392_v15 = vmul.f32 %v4109_v30, %v3808_v24  ;;  %v4219_v4 = vld [vmem:[#allocation2 + $0x2f1] sm:$0xff] }
 0x112   : > { %v1587_v48 = vmul.f32 %v4111_v40, %v3811_v25  ;;  %v2012_v52 = vadd.f32 %v1948_v28, %v1816_v11  ;;  %v1588_v49 = vmul.f32 %v4131_v58, %v3811_v25  ;;  %v1784_v60 = vmul.f32 %v3813_v26, %v4193_v5 }
 0x113   : > { %v2013_v33 = vadd.f32 %v1949_v32, %v1817_v62  ;;  %v1259_v29 = vadd.f32 %v1195_v50, %v1062_v13  ;;  %v1260_v23 = vadd.f32 %v1196_v55, %v1063_v31  ;;  %v1785_v43 = vmul.f32 %v3813_v26, %v4197_v39  ;;  %v4209_v32 = vld [vmem:[#allocation2 + $0x2e9] sm:$0xff] }
 0x114   : > { %v1980_v28 = vmul.f32 %v3815_v27, %v4201_v0  ;;  %v2208_v45 = vadd.f32 %v2144_v20, %v2012_v52  ;;  %v1981_v59 = vmul.f32 %v3815_v27, %v4205_v12  ;;  %v2176_v46 = vmul.f32 %v3865_v1, %v4209_v32  ;;  %v4245_v52 = vld [vmem:[#allocation2 + $0xcf] sm:$0xff] }
 0x115   : > { %v2209_v35 = vadd.f32 %v2145_v8, %v2013_v33  ;;  %v1455_v17 = vadd.f32 %v1391_v63, %v1259_v29  ;;  %v1456_v41 = vadd.f32 %v1392_v15, %v1260_v23  ;;  %v640_v61 = vmul.f32 %v4051_v53, %v3798_v16  ;;  %v4251_v23 = vld [vmem:[#allocation2 + $0xc8] sm:$0xff] }
 0x116   : > { %v641_v3 = vmul.f32 %v4053_v54, %v3798_v16  ;;  %v772_v20 = vmul.f32 %v4059_v56, %v3800_v18  ;;  %v773_v2 = vmul.f32 %v4061_v10, %v3800_v18  ;;  %v968_v38 = vmul.f32 %v4067_v19, %v3803_v21 }
 0x117   : > { %v2269_v51 = vpack.c.bf16 %v2209_v35, %v2208_v45  ;;  %v1651_v9 = vadd.f32 %v1587_v48, %v1455_v17  ;;  %v1652_v50 = vadd.f32 %v1588_v49, %v1456_v41  ;;  %v2177_v53 = vmul.f32 %v3865_v1, %v4219_v4  ;;  %v4243_v48 = vld [vmem:[#allocation2 + $0xc7] sm:$0xff] }
 0x118   : > { %v969_v54 = vmul.f32 %v4083_v36, %v3803_v21  ;;  %v836_v55 = vadd.f32 %v772_v20, %v640_v61  ;;  %v837_v11 = vadd.f32 %v773_v2, %v641_v3  ;;  %v1165_v56 = vmul.f32 %v4143_v6, %v3805_v22 }
 0x119   : > { %3159 = vmatmul.mubr.bf16.gmra.mrb[4].mxu0 %v2269_v51  ;;  %v1166_v10 = vmul.f32 %v4149_v57, %v3805_v22  ;;  %v1848_v62 = vadd.f32 %v1784_v60, %v1651_v9  ;;  %v1849_v8 = vadd.f32 %v1785_v43, %v1652_v50  ;;  %v1361_v19 = vmul.f32 %v4155_v34, %v3808_v24  ;;  %v4253_v43 = vld [vmem:[#allocation2 + $0xd0] sm:$0xff] }
 0x11a   : > { %v1362_v63 = vmul.f32 %v4157_v42, %v3808_v24  ;;  %v1032_v13 = vadd.f32 %v968_v38, %v836_v55  ;;  %v1033_v31 = vadd.f32 %v969_v54, %v837_v11  ;;  %v1557_v36 = vmul.f32 %v4159_v44, %v3811_v25  ;;  %v4275_v11 = vld [vmem:[#allocation2 + $0xd1] sm:$0xff] }
 0x11b   : > { %v1558_v15 = vmul.f32 %v4179_v7, %v3811_v25  ;;  %v2044_v33 = vadd.f32 %v1980_v28, %v1848_v62  ;;  %v2045_v49 = vadd.f32 %v1981_v59, %v1849_v8  ;;  %v1754_v60 = vmul.f32 %v3813_v26, %v4243_v48  ;;  %v4259_v28 = vld [vmem:[#allocation2 + $0xc9] sm:$0xff] }
 0x11c   : > { %v1755_v29 = vmul.f32 %v3813_v26, %v4245_v52  ;;  %v1229_v45 = vadd.f32 %v1165_v56, %v1032_v13  ;;  %v1230_v35 = vadd.f32 %v1166_v10, %v1033_v31  ;;  %v1950_v17 = vmul.f32 %v3815_v27, %v4251_v23 }
 0x11d   : > { %v1951_v41 = vmul.f32 %v3815_v27, %v4253_v43  ;;  %v2240_v59 = vadd.f32 %v2176_v46, %v2044_v33  ;;  %v2241_v61 = vadd.f32 %v2177_v53, %v2045_v49  ;;  %v2146_v3 = vmul.f32 %v3865_v1, %v4259_v28 }
 0x11e   : > { %v672_v51 = vmul.f32 %v4095_v47, %v3798_v16  ;;  %v1425_v20 = vadd.f32 %v1361_v19, %v1229_v45  ;;  %v1426_v2 = vadd.f32 %v1362_v63, %v1230_v35  ;;  %v673_v38 = vmul.f32 %v4101_v37, %v3798_v16  ;;  %v4287_v63 = vld [vmem:[#allocation2 + $0x307] sm:$0xff] }
 0x11f   : > { %v804_v9 = vmul.f32 %v4107_v14, %v3800_v18  ;;  %v2285_v50 = vpack.c.bf16 %v2241_v61, %v2240_v59  ;;  %v805_v54 = vmul.f32 %v4109_v30, %v3800_v18  ;;  %v1000_v46 = vmul.f32 %v4111_v40, %v3803_v21  ;;  %v4299_v35 = vld [vmem:[#allocation2 + $0x308] sm:$0xff]  ;;  %v4301_v59 = vld [vmem:[#allocation2 + $0x310] sm:$0xff] }
 0x120   : > { %v1001_v53 = vmul.f32 %v4131_v58, %v3803_v21  ;;  %v1621_v55 = vadd.f32 %v1557_v36, %v1425_v20  ;;  %v1622_v47 = vadd.f32 %v1558_v15, %v1426_v2  ;;  %v1197_v37 = vmul.f32 %v4193_v5, %v3805_v22  ;;  %v4293_v15 = vld [vmem:[#allocation2 + $0x30f] sm:$0xff] }
 0x121   : > { %v868_v56 = vadd.f32 %v804_v9, %v672_v51  ;;  %3191 = vmatmul.mubr.bf16.gmra.mrb[4].mxu1 %v2285_v50  ;;  %v2147_v14 = vmul.f32 %v3865_v1, %v4275_v11  ;;  %v869_v10 = vadd.f32 %v805_v54, %v673_v38  ;;  %v1198_v30 = vmul.f32 %v4197_v39, %v3805_v22  ;;  %v4303_v61 = vld [vmem:[#allocation2 + $0x309] sm:$0xff] }
 0x122   : > { %v1393_v40 = vmul.f32 %v4201_v0, %v3808_v24  ;;  %v1818_v58 = vadd.f32 %v1754_v60, %v1621_v55  ;;  %v1819_v62 = vadd.f32 %v1755_v29, %v1622_v47  ;;  %v1394_v19 = vmul.f32 %v4205_v12, %v3808_v24 }
 0x123   : > { %v1064_v8 = vadd.f32 %v1000_v46, %v868_v56  ;;  %v1065_v13 = vadd.f32 %v1001_v53, %v869_v10  ;;  %v1589_v31 = vmul.f32 %v4209_v32, %v3811_v25  ;;  %v1590_v36 = vmul.f32 %v4219_v4, %v3811_v25 }
 0x124   : > { %v1786_v33 = vmul.f32 %v3813_v26, %v4287_v63  ;;  %v2014_v49 = vadd.f32 %v1950_v17, %v1818_v58  ;;  %v2015_v60 = vadd.f32 %v1951_v41, %v1819_v62  ;;  %v1787_v45 = vmul.f32 %v3813_v26, %v4293_v15 }
 0x125   : > { %v1261_v29 = vadd.f32 %v1197_v37, %v1064_v8  ;;  %v1262_v51 = vadd.f32 %v1198_v30, %v1065_v13  ;;  %v1982_v20 = vmul.f32 %v3815_v27, %v4299_v35  ;;  %v1983_v2 = vmul.f32 %v3815_v27, %v4301_v59 }
 0x126   : > { %v2178_v17 = vmul.f32 %v3865_v1, %v4303_v61  ;;  %v2210_v41 = vadd.f32 %v2146_v3, %v2014_v49  ;;  %v2211_v38 = vadd.f32 %v2147_v14, %v2015_v60  ;;  %v642_v50 = vmul.f32 %v4143_v6, %v3798_v16  ;;  %v4323_v6 = vld [vmem:[#allocation2 + $0x311] sm:$0xff] }
 0x127   : > { %v1457_v9 = vadd.f32 %v1393_v40, %v1261_v29  ;;  %v1458_v54 = vadd.f32 %v1394_v19, %v1262_v51  ;;  %v643_v46 = vmul.f32 %v4149_v57, %v3798_v16  ;;  %v774_v53 = vmul.f32 %v4155_v34, %v3800_v18  ;;  %v4335_v19 = vld [vmem:[#allocation2 + $0xe7] sm:$0xff] }
 0x128   : > { %v775_v55 = vmul.f32 %v4157_v42, %v3800_v18  ;;  %v2270_v47 = vpack.c.bf16 %v2211_v38, %v2210_v41  ;;  %v970_v3 = vmul.f32 %v4159_v44, %v3803_v21  ;;  %v971_v37 = vmul.f32 %v4179_v7, %v3803_v21  ;;  %v4347_v41 = vld [vmem:[#allocation2 + $0xe8] sm:$0xff] }
 0x129   : > { %v1653_v56 = vadd.f32 %v1589_v31, %v1457_v9  ;;  %v1654_v14 = vadd.f32 %v1590_v36, %v1458_v54  ;;  %v838_v10 = vadd.f32 %v774_v53, %v642_v50  ;;  %v1167_v57 = vmul.f32 %v4243_v48, %v3805_v22  ;;  %v4351_v38 = vld [vmem:[#allocation2 + $0xe9] sm:$0xff] }
 0x12a   : > { %v839_v30 = vadd.f32 %v775_v55, %v643_v46  ;;  %3162 = vmatprep.mubr.bf16.mxu0 %v2270_v47  ;;  %v2179_v42 = vmul.f32 %v3865_v1, %v4323_v6  ;;  %v1168_v40 = vmul.f32 %v4245_v52, %v3805_v22  ;;  %v1363_v44 = vmul.f32 %v4251_v23, %v3808_v24 }
 0x12b   : > { %v1850_v34 = vadd.f32 %v1786_v33, %v1653_v56  ;;  %v1851_v7 = vadd.f32 %v1787_v45, %v1654_v14  ;;  %v1034_v58 = vadd.f32 %v970_v3, %v838_v10  ;;  %v1364_v8 = vmul.f32 %v4253_v43, %v3808_v24  ;;  %v4341_v33 = vld [vmem:[#allocation2 + $0xef] sm:$0xff] }
 0x12c   : > { %v1035_v62 = vadd.f32 %v971_v37, %v839_v30  ;;  %v1559_v31 = vmul.f32 %v4259_v28, %v3811_v25  ;;  %v1560_v36 = vmul.f32 %v4275_v11, %v3811_v25  ;;  %v1756_v49 = vmul.f32 %v3813_v26, %v4335_v19 }
 0x12d   : > { %v2046_v13 = vadd.f32 %v1982_v20, %v1850_v34  ;;  %v2047_v60 = vadd.f32 %v1983_v2, %v1851_v7  ;;  %v1231_v29 = vadd.f32 %v1167_v57, %v1034_v58  ;;  %v1757_v51 = vmul.f32 %v3813_v26, %v4341_v33  ;;  %v4349_v20 = vld [vmem:[#allocation2 + $0xf0] sm:$0xff] }
 0x12e   : > { %v1232_v45 = vadd.f32 %v1168_v40, %v1035_v62  ;;  %v1952_v50 = vmul.f32 %v3815_v27, %v4347_v41  ;;  %v1953_v54 = vmul.f32 %v3815_v27, %v4349_v20  ;;  %v2148_v2 = vmul.f32 %v3865_v1, %v4351_v38  ;;  %v4371_v34 = vld [vmem:[#allocation2 + $0xf1] sm:$0xff] }
 0x12f   : > { %v2242_v9 = vadd.f32 %v2178_v17, %v2046_v13  ;;  %v2243_v46 = vadd.f32 %v2179_v42, %v2047_v60  ;;  %v1427_v53 = vadd.f32 %v1363_v44, %v1231_v29  ;;  %v674_v47 = vmul.f32 %v4193_v5, %v3798_v16  ;;  %v4393_v29 = vld [vmem:[#allocation2 + $0x328] sm:$0xff] }
 0x130   : > { %v1428_v55 = vadd.f32 %v1364_v8, %v1232_v45  ;;  %v675_v56 = vmul.f32 %v4197_v39, %v3798_v16  ;;  %v806_v17 = vmul.f32 %v4201_v0, %v3800_v18  ;;  %v807_v3 = vmul.f32 %v4205_v12, %v3800_v18  ;;  %v4385_v8 = vld [vmem:[#allocation2 + $0x327] sm:$0xff] }
 0x131   : > { %v1002_v37 = vmul.f32 %v4209_v32, %v3803_v21  ;;  %v2286_v14 = vpack.c.bf16 %v2243_v46, %v2242_v9  ;;  %v1623_v10 = vadd.f32 %v1559_v31, %v1427_v53  ;;  %v1003_v57 = vmul.f32 %v4219_v4, %v3803_v21  ;;  %v4397_v46 = vld [vmem:[#allocation2 + $0x330] sm:$0xff] }
 0x132   : > { %v1624_v30 = vadd.f32 %v1560_v36, %v1428_v55  ;;  %v870_v5 = vadd.f32 %v806_v17, %v674_v47  ;;  %v871_v42 = vadd.f32 %v807_v3, %v675_v56  ;;  %v1199_v39 = vmul.f32 %v4287_v63, %v3805_v22 }
 0x133   : > { %v1200_v0 = vmul.f32 %v4293_v15, %v3805_v22  ;;  %3194 = vmatprep.mubr.bf16.mxu1 %v2286_v14  ;;  %v1820_v12 = vadd.f32 %v1756_v49, %v1623_v10  ;;  %v2149_v32 = vmul.f32 %v3865_v1, %v4371_v34  ;;  %v1395_v44 = vmul.f32 %v4299_v35, %v3808_v24  ;;  %v4389_v49 = vld [vmem:[#allocation2 + $0x32f] sm:$0xff] }
 0x134   : > { %v1821_v40 = vadd.f32 %v1757_v51, %v1624_v30  ;;  %v1066_v4 = vadd.f32 %v1002_v37, %v870_v5  ;;  %v1067_v7 = vadd.f32 %v1003_v57, %v871_v42  ;;  %v1396_v58 = vmul.f32 %v4301_v59, %v3808_v24  ;;  %v4411_v30 = vld [vmem:[#allocation2 + $0x331] sm:$0xff] }
 0x135   : > { %v1591_v62 = vmul.f32 %v4303_v61, %v3811_v25  ;;  %v2016_v13 = vadd.f32 %v1952_v50, %v1820_v12  ;;  %v1592_v36 = vmul.f32 %v4323_v6, %v3811_v25  ;;  %v1788_v60 = vmul.f32 %v3813_v26, %v4385_v8 }
 0x136   : > { %v2017_v31 = vadd.f32 %v1953_v54, %v1821_v40  ;;  %v1263_v45 = vadd.f32 %v1199_v39, %v1066_v4  ;;  %v1264_v51 = vadd.f32 %v1200_v0, %v1067_v7  ;;  %v1789_v9 = vmul.f32 %v3813_v26, %v4389_v49  ;;  %v4401_v54 = vld [vmem:[#allocation2 + $0x329] sm:$0xff] }
 0x137   : > { %v1984_v50 = vmul.f32 %v3815_v27, %v4393_v29  ;;  %v2212_v53 = vadd.f32 %v2148_v2, %v2016_v13  ;;  %v1985_v47 = vmul.f32 %v3815_v27, %v4397_v46  ;;  %v2180_v56 = vmul.f32 %v3865_v1, %v4401_v54  ;;  %v4437_v13 = vld [vmem:[#allocation2 + $0x10f] sm:$0xff] }
 0x138   : > { %v2213_v55 = vadd.f32 %v2149_v32, %v2017_v31  ;;  %v1459_v17 = vadd.f32 %v1395_v44, %v1263_v45  ;;  %v1460_v3 = vadd.f32 %v1396_v58, %v1264_v51  ;;  %v644_v37 = vmul.f32 %v4243_v48, %v3798_v16  ;;  %v4443_v51 = vld [vmem:[#allocation2 + $0x108] sm:$0xff] }
 0x139   : > { %v645_v14 = vmul.f32 %v4245_v52, %v3798_v16  ;;  %v776_v2 = vmul.f32 %v4251_v23, %v3800_v18  ;;  %v777_v57 = vmul.f32 %v4253_v43, %v3800_v18  ;;  %v972_v5 = vmul.f32 %v4259_v28, %v3803_v21 }
 0x13a   : > { %v2271_v10 = vpack.c.bf16 %v2213_v55, %v2212_v53  ;;  %v1655_v42 = vadd.f32 %v1591_v62, %v1459_v17  ;;  %v1656_v39 = vadd.f32 %v1592_v36, %v1460_v3  ;;  %v2181_v48 = vmul.f32 %v3865_v1, %v4411_v30  ;;  %v4435_v62 = vld [vmem:[#allocation2 + $0x107] sm:$0xff] }
 0x13b   : > { %v973_v52 = vmul.f32 %v4275_v11, %v3803_v21  ;;  %v840_v0 = vadd.f32 %v776_v2, %v644_v37  ;;  %v841_v12 = vadd.f32 %v777_v57, %v645_v14  ;;  %v1169_v23 = vmul.f32 %v4335_v19, %v3805_v22 }
 0x13c   : > { %3163 = vmatmul.mubr.bf16.gmra.mrb[8].mxu0 %v2271_v10  ;;  %v1170_v43 = vmul.f32 %v4341_v33, %v3805_v22  ;;  %v1852_v40 = vadd.f32 %v1788_v60, %v1655_v42  ;;  %v1853_v32 = vadd.f32 %v1789_v9, %v1656_v39  ;;  %v1365_v28 = vmul.f32 %v4347_v41, %v3808_v24  ;;  %v4445_v9 = vld [vmem:[#allocation2 + $0x110] sm:$0xff] }
 0x13d   : > { %v1366_v44 = vmul.f32 %v4349_v20, %v3808_v24  ;;  %v1036_v4 = vadd.f32 %v972_v5, %v840_v0  ;;  %v1037_v7 = vadd.f32 %v973_v52, %v841_v12  ;;  %v1561_v11 = vmul.f32 %v4351_v38, %v3811_v25  ;;  %v4467_v12 = vld [vmem:[#allocation2 + $0x111] sm:$0xff] }
 0x13e   : > { %v1562_v58 = vmul.f32 %v4371_v34, %v3811_v25  ;;  %v2048_v31 = vadd.f32 %v1984_v50, %v1852_v40  ;;  %v2049_v36 = vadd.f32 %v1985_v47, %v1853_v32  ;;  %v1758_v60 = vmul.f32 %v3813_v26, %v4435_v62  ;;  %v4451_v50 = vld [vmem:[#allocation2 + $0x109] sm:$0xff] }
 0x13f   : > { %v1759_v45 = vmul.f32 %v3813_v26, %v4437_v13  ;;  %v1233_v53 = vadd.f32 %v1169_v23, %v1036_v4  ;;  %v1234_v55 = vadd.f32 %v1170_v43, %v1037_v7  ;;  %v1954_v17 = vmul.f32 %v3815_v27, %v4443_v51 }
 0x140   : > { %v1955_v3 = vmul.f32 %v3815_v27, %v4445_v9  ;;  %v2244_v47 = vadd.f32 %v2180_v56, %v2048_v31  ;;  %v2245_v37 = vadd.f32 %v2181_v48, %v2049_v36  ;;  %v2150_v14 = vmul.f32 %v3865_v1, %v4451_v50 }
 0x141   : > { %v676_v10 = vmul.f32 %v4287_v63, %v3798_v16  ;;  %v1429_v2 = vadd.f32 %v1365_v28, %v1233_v53  ;;  %v1430_v57 = vadd.f32 %v1366_v44, %v1234_v55  ;;  %v677_v5 = vmul.f32 %v4293_v15, %v3798_v16  ;;  %v4479_v44 = vld [vmem:[#allocation2 + $0x347] sm:$0xff] }
 0x142   : > { %v808_v42 = vmul.f32 %v4299_v35, %v3800_v18  ;;  %v2287_v39 = vpack.c.bf16 %v2245_v37, %v2244_v47  ;;  %v809_v52 = vmul.f32 %v4301_v59, %v3800_v18  ;;  %v1004_v56 = vmul.f32 %v4303_v61, %v3803_v21  ;;  %v4491_v55 = vld [vmem:[#allocation2 + $0x348] sm:$0xff]  ;;  %v4493_v47 = vld [vmem:[#allocation2 + $0x350] sm:$0xff] }
 0x143   : > { %v1005_v48 = vmul.f32 %v4323_v6, %v3803_v21  ;;  %v1625_v0 = vadd.f32 %v1561_v11, %v1429_v2  ;;  %v1626_v63 = vadd.f32 %v1562_v58, %v1430_v57  ;;  %v1201_v15 = vmul.f32 %v4385_v8, %v3805_v22  ;;  %v4485_v58 = vld [vmem:[#allocation2 + $0x34f] sm:$0xff] }
 0x144   : > { %v872_v23 = vadd.f32 %v808_v42, %v676_v10  ;;  %3195 = vmatmul.mubr.bf16.gmra.mrb[8].mxu1 %v2287_v39  ;;  %v2151_v35 = vmul.f32 %v3865_v1, %v4467_v12  ;;  %v873_v43 = vadd.f32 %v809_v52, %v677_v5  ;;  %v1202_v59 = vmul.f32 %v4389_v49, %v3805_v22  ;;  %v4495_v37 = vld [vmem:[#allocation2 + $0x349] sm:$0xff] }
 0x145   : > { %v1397_v61 = vmul.f32 %v4393_v29, %v3808_v24  ;;  %v1822_v6 = vadd.f32 %v1758_v60, %v1625_v0  ;;  %v1823_v40 = vadd.f32 %v1759_v45, %v1626_v63  ;;  %v1398_v28 = vmul.f32 %v4397_v46, %v3808_v24 }
 0x146   : > { %v1068_v32 = vadd.f32 %v1004_v56, %v872_v23  ;;  %v1069_v4 = vadd.f32 %v1005_v48, %v873_v43  ;;  %v1593_v7 = vmul.f32 %v4401_v54, %v3811_v25  ;;  %v1594_v11 = vmul.f32 %v4411_v30, %v3811_v25 }
 0x147   : > { %v1790_v31 = vmul.f32 %v3813_v26, %v4479_v44  ;;  %v2018_v36 = vadd.f32 %v1954_v17, %v1822_v6  ;;  %v2019_v60 = vadd.f32 %v1955_v3, %v1823_v40  ;;  %v1791_v53 = vmul.f32 %v3813_v26, %v4485_v58 }
 0x148   : > { %v1265_v45 = vadd.f32 %v1201_v15, %v1068_v32  ;;  %v1266_v10 = vadd.f32 %v1202_v59, %v1069_v4  ;;  %v1986_v2 = vmul.f32 %v3815_v27, %v4491_v55  ;;  %v1987_v57 = vmul.f32 %v3815_v27, %v4493_v47 }
 0x149   : > { %v2182_v17 = vmul.f32 %v3865_v1, %v4495_v37  ;;  %v2214_v3 = vadd.f32 %v2150_v14, %v2018_v36  ;;  %v2215_v5 = vadd.f32 %v2151_v35, %v2019_v60  ;;  %v646_v39 = vmul.f32 %v4335_v19, %v3798_v16  ;;  %v4515_v19 = vld [vmem:[#allocation2 + $0x351] sm:$0xff] }
 0x14a   : > { %v1461_v42 = vadd.f32 %v1397_v61, %v1265_v45  ;;  %v1462_v52 = vadd.f32 %v1398_v28, %v1266_v10  ;;  %v647_v56 = vmul.f32 %v4341_v33, %v3798_v16  ;;  %v778_v48 = vmul.f32 %v4347_v41, %v3800_v18  ;;  %v4527_v28 = vld [vmem:[#allocation2 + $0x127] sm:$0xff] }
 0x14b   : > { %v779_v0 = vmul.f32 %v4349_v20, %v3800_v18  ;;  %v2272_v63 = vpack.c.bf16 %v2215_v5, %v2214_v3  ;;  %v974_v14 = vmul.f32 %v4351_v38, %v3803_v21  ;;  %v975_v15 = vmul.f32 %v4371_v34, %v3803_v21  ;;  %v4539_v3 = vld [vmem:[#allocation2 + $0x128] sm:$0xff] }
 0x14c   : > { %v1657_v23 = vadd.f32 %v1593_v7, %v1461_v42  ;;  %v1658_v35 = vadd.f32 %v1594_v11, %v1462_v52  ;;  %v842_v43 = vadd.f32 %v778_v48, %v646_v39  ;;  %v1171_v33 = vmul.f32 %v4435_v62, %v3805_v22  ;;  %v4543_v5 = vld [vmem:[#allocation2 + $0x129] sm:$0xff] }
 0x14d   : > { %v843_v59 = vadd.f32 %v779_v0, %v647_v56  ;;  %3166 = vmatprep.mubr.bf16.mxu0 %v2272_v63  ;;  %v2183_v20 = vmul.f32 %v3865_v1, %v4515_v19  ;;  %v1172_v61 = vmul.f32 %v4437_v13, %v3805_v22  ;;  %v1367_v38 = vmul.f32 %v4443_v51, %v3808_v24 }
 0x14e   : > { %v1854_v41 = vadd.f32 %v1790_v31, %v1657_v23  ;;  %v1855_v34 = vadd.f32 %v1791_v53, %v1658_v35  ;;  %v1038_v6 = vadd.f32 %v974_v14, %v842_v43  ;;  %v1368_v32 = vmul.f32 %v4445_v9, %v3808_v24  ;;  %v4533_v31 = vld [vmem:[#allocation2 + $0x12f] sm:$0xff] }
 0x14f   : > { %v1039_v40 = vadd.f32 %v975_v15, %v843_v59  ;;  %v1563_v7 = vmul.f32 %v4451_v50, %v3811_v25  ;;  %v1564_v11 = vmul.f32 %v4467_v12, %v3811_v25  ;;  %v1760_v36 = vmul.f32 %v3813_v26, %v4527_v28 }
 0x150   : > { %v2050_v4 = vadd.f32 %v1986_v2, %v1854_v41  ;;  %v2051_v60 = vadd.f32 %v1987_v57, %v1855_v34  ;;  %v1235_v45 = vadd.f32 %v1171_v33, %v1038_v6  ;;  %v1761_v10 = vmul.f32 %v3813_v26, %v4533_v31  ;;  %v4541_v2 = vld [vmem:[#allocation2 + $0x130] sm:$0xff] }
 0x151   : > { %v1236_v53 = vadd.f32 %v1172_v61, %v1039_v40  ;;  %v1956_v39 = vmul.f32 %v3815_v27, %v4539_v3  ;;  %v1957_v52 = vmul.f32 %v3815_v27, %v4541_v2  ;;  %v2152_v57 = vmul.f32 %v3865_v1, %v4543_v5  ;;  %v4563_v41 = vld [vmem:[#allocation2 + $0x131] sm:$0xff] }
 0x152   : > { %v2246_v42 = vadd.f32 %v2182_v17, %v2050_v4  ;;  %v2247_v56 = vadd.f32 %v2183_v20, %v2051_v60  ;;  %v1431_v48 = vadd.f32 %v1367_v38, %v1235_v45  ;;  %v678_v63 = vmul.f32 %v4385_v8, %v3798_v16  ;;  %v4585_v45 = vld [vmem:[#allocation2 + $0x368] sm:$0xff] }
 0x153   : > { %v1432_v0 = vadd.f32 %v1368_v32, %v1236_v53  ;;  %v679_v23 = vmul.f32 %v4389_v49, %v3798_v16  ;;  %v810_v17 = vmul.f32 %v4393_v29, %v3800_v18  ;;  %v811_v14 = vmul.f32 %v4397_v46, %v3800_v18  ;;  %v4577_v32 = vld [vmem:[#allocation2 + $0x367] sm:$0xff] }
 0x154   : > { %v1006_v15 = vmul.f32 %v4401_v54, %v3803_v21  ;;  %v2288_v35 = vpack.c.bf16 %v2247_v56, %v2246_v42  ;;  %v1627_v43 = vadd.f32 %v1563_v7, %v1431_v48  ;;  %v1007_v33 = vmul.f32 %v4411_v30, %v3803_v21  ;;  %v4589_v56 = vld [vmem:[#allocation2 + $0x370] sm:$0xff] }
 0x155   : > { %v1628_v59 = vadd.f32 %v1564_v11, %v1432_v0  ;;  %v874_v8 = vadd.f32 %v810_v17, %v678_v63  ;;  %v875_v20 = vadd.f32 %v811_v14, %v679_v23  ;;  %v1203_v49 = vmul.f32 %v4479_v44, %v3805_v22 }
 0x156   : > { %v1204_v29 = vmul.f32 %v4485_v58, %v3805_v22  ;;  %3198 = vmatprep.mubr.bf16.mxu1 %v2288_v35  ;;  %v1824_v46 = vadd.f32 %v1760_v36, %v1627_v43  ;;  %v2153_v54 = vmul.f32 %v3865_v1, %v4563_v41  ;;  %v1399_v38 = vmul.f32 %v4491_v55, %v3808_v24  ;;  %v4581_v36 = vld [vmem:[#allocation2 + $0x36f] sm:$0xff] }
 0x157   : > { %v1825_v61 = vadd.f32 %v1761_v10, %v1628_v59  ;;  %v1070_v30 = vadd.f32 %v1006_v15, %v874_v8  ;;  %v1071_v34 = vadd.f32 %v1007_v33, %v875_v20  ;;  %v1400_v6 = vmul.f32 %v4493_v47, %v3808_v24  ;;  %v4603_v59 = vld [vmem:[#allocation2 + $0x371] sm:$0xff] }
 0x158   : > { %v1595_v40 = vmul.f32 %v4495_v37, %v3811_v25  ;;  %v2020_v4 = vadd.f32 %v1956_v39, %v1824_v46  ;;  %v1596_v11 = vmul.f32 %v4515_v19, %v3811_v25  ;;  %v1792_v60 = vmul.f32 %v3813_v26, %v4577_v32 }
 0x159   : > { %v2021_v7 = vadd.f32 %v1957_v52, %v1825_v61  ;;  %v1267_v53 = vadd.f32 %v1203_v49, %v1070_v30  ;;  %v1268_v10 = vadd.f32 %v1204_v29, %v1071_v34  ;;  %v1793_v42 = vmul.f32 %v3813_v26, %v4581_v36  ;;  %v4593_v52 = vld [vmem:[#allocation2 + $0x369] sm:$0xff] }
 0x15a   : > { %v1988_v39 = vmul.f32 %v3815_v27, %v4585_v45  ;;  %v2216_v48 = vadd.f32 %v2152_v57, %v2020_v4  ;;  %v1989_v63 = vmul.f32 %v3815_v27, %v4589_v56  ;;  %v2184_v23 = vmul.f32 %v3865_v1, %v4593_v52  ;;  %v4629_v4 = vld [vmem:[#allocation2 + $0x14f] sm:$0xff] }
 0x15b   : > { %v2217_v0 = vadd.f32 %v2153_v54, %v2021_v7  ;;  %v1463_v17 = vadd.f32 %v1399_v38, %v1267_v53  ;;  %v1464_v14 = vadd.f32 %v1400_v6, %v1268_v10  ;;  %v648_v15 = vmul.f32 %v4435_v62, %v3798_v16  ;;  %v4635_v10 = vld [vmem:[#allocation2 + $0x148] sm:$0xff] }
 0x15c   : > { %v649_v35 = vmul.f32 %v4437_v13, %v3798_v16  ;;  %v780_v57 = vmul.f32 %v4443_v51, %v3800_v18  ;;  %v781_v33 = vmul.f32 %v4445_v9, %v3800_v18  ;;  %v976_v8 = vmul.f32 %v4451_v50, %v3803_v21 }
 0x15d   : > { %v2273_v43 = vpack.c.bf16 %v2217_v0, %v2216_v48  ;;  %v1659_v20 = vadd.f32 %v1595_v40, %v1463_v17  ;;  %v1660_v49 = vadd.f32 %v1596_v11, %v1464_v14  ;;  %v2185_v62 = vmul.f32 %v3865_v1, %v4603_v59  ;;  %v4627_v40 = vld [vmem:[#allocation2 + $0x147] sm:$0xff] }
 0x15e   : > { %v977_v13 = vmul.f32 %v4467_v12, %v3803_v21  ;;  %v844_v29 = vadd.f32 %v780_v57, %v648_v15  ;;  %v845_v46 = vadd.f32 %v781_v33, %v649_v35  ;;  %v1173_v51 = vmul.f32 %v4527_v28, %v3805_v22 }
 0x15f   : > { %3167 = vmatmul.mubr.bf16.gmra.mrb[12].mxu0 %v2273_v43  ;;  %v1174_v9 = vmul.f32 %v4533_v31, %v3805_v22  ;;  %v1856_v61 = vadd.f32 %v1792_v60, %v1659_v20  ;;  %v1857_v54 = vadd.f32 %v1793_v42, %v1660_v49  ;;  %v1369_v50 = vmul.f32 %v4539_v3, %v3808_v24  ;;  %v4637_v42 = vld [vmem:[#allocation2 + $0x150] sm:$0xff] }
 0x160   : > { %v1370_v38 = vmul.f32 %v4541_v2, %v3808_v24  ;;  %v1040_v30 = vadd.f32 %v976_v8, %v844_v29  ;;  %v1041_v34 = vadd.f32 %v977_v13, %v845_v46  ;;  %v1565_v12 = vmul.f32 %v4543_v5, %v3811_v25  ;;  %v4659_v46 = vld [vmem:[#allocation2 + $0x151] sm:$0xff] }
 0x161   : > { %v1566_v6 = vmul.f32 %v4563_v41, %v3811_v25  ;;  %v2052_v7 = vadd.f32 %v1988_v39, %v1856_v61  ;;  %v2053_v11 = vadd.f32 %v1989_v63, %v1857_v54  ;;  %v1762_v60 = vmul.f32 %v3813_v26, %v4627_v40  ;;  %v4643_v39 = vld [vmem:[#allocation2 + $0x149] sm:$0xff] }
 0x162   : > { %v1763_v53 = vmul.f32 %v3813_v26, %v4629_v4  ;;  %v1237_v48 = vadd.f32 %v1173_v51, %v1040_v30  ;;  %v1238_v0 = vadd.f32 %v1174_v9, %v1041_v34  ;;  %v1958_v17 = vmul.f32 %v3815_v27, %v4635_v10 }
 0x163   : > { %v1959_v14 = vmul.f32 %v3815_v27, %v4637_v42  ;;  %v2248_v63 = vadd.f32 %v2184_v23, %v2052_v7  ;;  %v2249_v15 = vadd.f32 %v2185_v62, %v2053_v11  ;;  %v2154_v35 = vmul.f32 %v3865_v1, %v4643_v39 }
 0x164   : > { %v680_v43 = vmul.f32 %v4479_v44, %v3798_v16  ;;  %v1433_v57 = vadd.f32 %v1369_v50, %v1237_v48  ;;  %v1434_v33 = vadd.f32 %v1370_v38, %v1238_v0  ;;  %v681_v8 = vmul.f32 %v4485_v58, %v3798_v16  ;;  %v4671_v38 = vld [vmem:[#allocation2 + $0x387] sm:$0xff] }
 0x165   : > { %v812_v20 = vmul.f32 %v4491_v55, %v3800_v18  ;;  %v2289_v49 = vpack.c.bf16 %v2249_v15, %v2248_v63  ;;  %v813_v13 = vmul.f32 %v4493_v47, %v3800_v18  ;;  %v1008_v23 = vmul.f32 %v4495_v37, %v3803_v21  ;;  %v4683_v0 = vld [vmem:[#allocation2 + $0x388] sm:$0xff]  ;;  %v4685_v63 = vld [vmem:[#allocation2 + $0x390] sm:$0xff] }
 0x166   : > { %v1009_v62 = vmul.f32 %v4515_v19, %v3803_v21  ;;  %v1629_v29 = vadd.f32 %v1565_v12, %v1433_v57  ;;  %v1630_v44 = vadd.f32 %v1566_v6, %v1434_v33  ;;  %v1205_v58 = vmul.f32 %v4577_v32, %v3805_v22  ;;  %v4677_v6 = vld [vmem:[#allocation2 + $0x38f] sm:$0xff] }
 0x167   : > { %v876_v51 = vadd.f32 %v812_v20, %v680_v43  ;;  %3199 = vmatmul.mubr.bf16.gmra.mrb[12].mxu1 %v2289_v49  ;;  %v2155_v55 = vmul.f32 %v3865_v1, %v4659_v46  ;;  %v877_v9 = vadd.f32 %v813_v13, %v681_v8  ;;  %v1206_v47 = vmul.f32 %v4581_v36, %v3805_v22  ;;  %v4687_v15 = vld [vmem:[#allocation2 + $0x389] sm:$0xff] }
 0x168   : > { %v1401_v37 = vmul.f32 %v4585_v45, %v3808_v24  ;;  %v1826_v19 = vadd.f32 %v1762_v60, %v1629_v29  ;;  %v1827_v61 = vadd.f32 %v1763_v53, %v1630_v44  ;;  %v1402_v50 = vmul.f32 %v4589_v56, %v3808_v24 }
 0x169   : > { %v1072_v54 = vadd.f32 %v1008_v23, %v876_v51  ;;  %v1073_v30 = vadd.f32 %v1009_v62, %v877_v9  ;;  %v1597_v34 = vmul.f32 %v4593_v52, %v3811_v25  ;;  %v1598_v12 = vmul.f32 %v4603_v59, %v3811_v25 }
 0x16a   : > { %v1794_v7 = vmul.f32 %v3813_v26, %v4671_v38  ;;  %v2022_v11 = vadd.f32 %v1958_v17, %v1826_v19  ;;  %v2023_v60 = vadd.f32 %v1959_v14, %v1827_v61  ;;  %v1795_v48 = vmul.f32 %v3813_v26, %v4677_v6 }
 0x16b   : > { %v1269_v53 = vadd.f32 %v1205_v58, %v1072_v54  ;;  %v1270_v43 = vadd.f32 %v1206_v47, %v1073_v30  ;;  %v1990_v57 = vmul.f32 %v3815_v27, %v4683_v0  ;;  %v1991_v33 = vmul.f32 %v3815_v27, %v4685_v63 }
 0x16c   : > { %v2186_v17 = vmul.f32 %v3865_v1, %v4687_v15  ;;  %v2218_v14 = vadd.f32 %v2154_v35, %v2022_v11  ;;  %v2219_v8 = vadd.f32 %v2155_v55, %v2023_v60  ;;  %v650_v49 = vmul.f32 %v4527_v28, %v3798_v16  ;;  %v4707_v28 = vld [vmem:[#allocation2 + $0x391] sm:$0xff] }
 0x16d   : > { %v1465_v20 = vadd.f32 %v1401_v37, %v1269_v53  ;;  %v1466_v13 = vadd.f32 %v1402_v50, %v1270_v43  ;;  %v651_v23 = vmul.f32 %v4533_v31, %v3798_v16  ;;  %v782_v62 = vmul.f32 %v4539_v3, %v3800_v18  ;;  %v4719_v50 = vld [vmem:[#allocation2 + $0x167] sm:$0xff] }
 0x16e   : > { %v783_v29 = vmul.f32 %v4541_v2, %v3800_v18  ;;  %v2274_v44 = vpack.c.bf16 %v2219_v8, %v2218_v14  ;;  %v978_v35 = vmul.f32 %v4543_v5, %v3803_v21  ;;  %v979_v58 = vmul.f32 %v4563_v41, %v3803_v21  ;;  %v4731_v14 = vld [vmem:[#allocation2 + $0x168] sm:$0xff] }
 0x16f   : > { %v1661_v51 = vadd.f32 %v1597_v34, %v1465_v20  ;;  %v1662_v55 = vadd.f32 %v1598_v12, %v1466_v13  ;;  %v846_v9 = vadd.f32 %v782_v62, %v650_v49  ;;  %v1175_v31 = vmul.f32 %v4627_v40, %v3805_v22  ;;  %v4735_v8 = vld [vmem:[#allocation2 + $0x169] sm:$0xff] }
 0x170   : > { %v847_v47 = vadd.f32 %v783_v29, %v651_v23  ;;  %3170 = vmatprep.mubr.bf16.mxu0 %v2274_v44  ;;  %v2187_v2 = vmul.f32 %v3865_v1, %v4707_v28  ;;  %v1176_v37 = vmul.f32 %v4629_v4, %v3805_v22  ;;  %v1371_v5 = vmul.f32 %v4635_v10, %v3808_v24 }
 0x171   : > { %v1858_v3 = vadd.f32 %v1794_v7, %v1661_v51  ;;  %v1859_v41 = vadd.f32 %v1795_v48, %v1662_v55  ;;  %v1042_v19 = vadd.f32 %v978_v35, %v846_v9  ;;  %v1372_v54 = vmul.f32 %v4637_v42, %v3808_v24  ;;  %v4725_v7 = vld [vmem:[#allocation2 + $0x16f] sm:$0xff] }
 0x172   : > { %v1043_v61 = vadd.f32 %v979_v58, %v847_v47  ;;  %v1567_v34 = vmul.f32 %v4643_v39, %v3811_v25  ;;  %v1568_v12 = vmul.f32 %v4659_v46, %v3811_v25  ;;  %v1764_v11 = vmul.f32 %v3813_v26, %v4719_v50 }
 0x173   : > { %v2054_v30 = vadd.f32 %v1990_v57, %v1858_v3  ;;  %v2055_v60 = vadd.f32 %v1991_v33, %v1859_v41  ;;  %v1239_v53 = vadd.f32 %v1175_v31, %v1042_v19  ;;  %v1765_v43 = vmul.f32 %v3813_v26, %v4725_v7  ;;  %v4733_v57 = vld [vmem:[#allocation2 + $0x170] sm:$0xff] }
 0x174   : > { %v1240_v48 = vadd.f32 %v1176_v37, %v1043_v61  ;;  %v1960_v49 = vmul.f32 %v3815_v27, %v4731_v14  ;;  %v1961_v13 = vmul.f32 %v3815_v27, %v4733_v57  ;;  %v2156_v33 = vmul.f32 %v3865_v1, %v4735_v8  ;;  %v4755_v3 = vld [vmem:[#allocation2 + $0x171] sm:$0xff] }
 0x175   : > { %v2250_v20 = vadd.f32 %v2186_v17, %v2054_v30  ;;  %v2251_v23 = vadd.f32 %v2187_v2, %v2055_v60  ;;  %v1435_v62 = vadd.f32 %v1371_v5, %v1239_v53  ;;  %v682_v44 = vmul.f32 %v4577_v32, %v3798_v16  ;;  %v4777_v53 = vld [vmem:[#allocation2 + $0x3a8] sm:$0xff] }
 0x176   : > { %v1436_v29 = vadd.f32 %v1372_v54, %v1240_v48  ;;  %v683_v51 = vmul.f32 %v4581_v36, %v3798_v16  ;;  %v814_v17 = vmul.f32 %v4585_v45, %v3800_v18  ;;  %v815_v35 = vmul.f32 %v4589_v56, %v3800_v18  ;;  %v4769_v54 = vld [vmem:[#allocation2 + $0x3a7] sm:$0xff] }
 0x177   : > { %v1010_v58 = vmul.f32 %v4593_v52, %v3803_v21  ;;  %v2290_v55 = vpack.c.bf16 %v2251_v23, %v2250_v20  ;;  %v1631_v9 = vadd.f32 %v1567_v34, %v1435_v62  ;;  %v1011_v31 = vmul.f32 %v4603_v59, %v3803_v21  ;;  %v4781_v23 = vld [vmem:[#allocation2 + $0x3b0] sm:$0xff] }
 0x178   : > { %v1632_v47 = vadd.f32 %v1568_v12, %v1436_v29  ;;  %v878_v32 = vadd.f32 %v814_v17, %v682_v44  ;;  %v879_v2 = vadd.f32 %v815_v35, %v683_v51  ;;  %v1207_v36 = vmul.f32 %v4671_v38, %v3805_v22 }
 0x179   : > { %v1208_v45 = vmul.f32 %v4677_v6, %v3805_v22  ;;  %3202 = vmatprep.mubr.bf16.mxu1 %v2290_v55  ;;  %v1828_v56 = vadd.f32 %v1764_v11, %v1631_v9  ;;  %v2157_v52 = vmul.f32 %v3865_v1, %v4755_v3  ;;  %v1403_v5 = vmul.f32 %v4683_v0, %v3808_v24  ;;  %v4773_v11 = vld [vmem:[#allocation2 + $0x3af] sm:$0xff] }
 0x17a   : > { %v1829_v37 = vadd.f32 %v1765_v43, %v1632_v47  ;;  %v1074_v59 = vadd.f32 %v1010_v58, %v878_v32  ;;  %v1075_v41 = vadd.f32 %v1011_v31, %v879_v2  ;;  %v1404_v19 = vmul.f32 %v4685_v63, %v3808_v24  ;;  %v4795_v47 = vld [vmem:[#allocation2 + $0x3b1] sm:$0xff] }
 0x17b   : > { %v1599_v61 = vmul.f32 %v4687_v15, %v3811_v25  ;;  %v2024_v30 = vadd.f32 %v1960_v49, %v1828_v56  ;;  %v1600_v12 = vmul.f32 %v4707_v28, %v3811_v25  ;;  %v1796_v60 = vmul.f32 %v3813_v26, %v4769_v54 }
 0x17c   : > { %v2025_v34 = vadd.f32 %v1961_v13, %v1829_v37  ;;  %v1271_v48 = vadd.f32 %v1207_v36, %v1074_v59  ;;  %v1272_v43 = vadd.f32 %v1208_v45, %v1075_v41  ;;  %v1797_v20 = vmul.f32 %v3813_v26, %v4773_v11  ;;  %v4785_v13 = vld [vmem:[#allocation2 + $0x3a9] sm:$0xff] }
 0x17d   : > { %v1992_v49 = vmul.f32 %v3815_v27, %v4777_v53  ;;  %v2220_v62 = vadd.f32 %v2156_v33, %v2024_v30  ;;  %v1993_v44 = vmul.f32 %v3815_v27, %v4781_v23  ;;  %v2188_v51 = vmul.f32 %v3865_v1, %v4785_v13  ;;  %v4821_v30 = vld [vmem:[#allocation2 + $0x18f] sm:$0xff] }
 0x17e   : > { %v2221_v29 = vadd.f32 %v2157_v52, %v2025_v34  ;;  %v1467_v17 = vadd.f32 %v1403_v5, %v1271_v48  ;;  %v1468_v35 = vadd.f32 %v1404_v19, %v1272_v43  ;;  %v652_v58 = vmul.f32 %v4627_v40, %v3798_v16  ;;  %v4827_v43 = vld [vmem:[#allocation2 + $0x188] sm:$0xff] }
 0x17f   : > { %v653_v55 = vmul.f32 %v4629_v4, %v3798_v16  ;;  %v784_v33 = vmul.f32 %v4635_v10, %v3800_v18  ;;  %v785_v31 = vmul.f32 %v4637_v42, %v3800_v18  ;;  %v980_v32 = vmul.f32 %v4643_v39, %v3803_v21 }
 0x180   : > { %v2275_v9 = vpack.c.bf16 %v2221_v29, %v2220_v62  ;;  %v1663_v2 = vadd.f32 %v1599_v61, %v1467_v17  ;;  %v1664_v36 = vadd.f32 %v1600_v12, %v1468_v35  ;;  %v2189_v40 = vmul.f32 %v3865_v1, %v4795_v47  ;;  %v4819_v61 = vld [vmem:[#allocation2 + $0x187] sm:$0xff] }
 0x181   : > { %v981_v4 = vmul.f32 %v4659_v46, %v3803_v21  ;;  %v848_v45 = vadd.f32 %v784_v33, %v652_v58  ;;  %v849_v56 = vadd.f32 %v785_v31, %v653_v55  ;;  %v1177_v10 = vmul.f32 %v4719_v50, %v3805_v22 }
 0x182   : > { %3171 = vmatmul.mubr.bf16.gmra.mrb[16].mxu0 %v2275_v9  ;;  %v1178_v42 = vmul.f32 %v4725_v7, %v3805_v22  ;;  %v1860_v37 = vadd.f32 %v1796_v60, %v1663_v2  ;;  %v1861_v52 = vadd.f32 %v1797_v20, %v1664_v36  ;;  %v1373_v39 = vmul.f32 %v4731_v14, %v3808_v24  ;;  %v4829_v20 = vld [vmem:[#allocation2 + $0x190] sm:$0xff] }
 0x183   : > { %v1374_v5 = vmul.f32 %v4733_v57, %v3808_v24  ;;  %v1044_v59 = vadd.f32 %v980_v32, %v848_v45  ;;  %v1045_v41 = vadd.f32 %v981_v4, %v849_v56  ;;  %v1569_v46 = vmul.f32 %v4735_v8, %v3811_v25  ;;  %v4851_v56 = vld [vmem:[#allocation2 + $0x191] sm:$0xff] }
 0x184   : > { %v1570_v19 = vmul.f32 %v4755_v3, %v3811_v25  ;;  %v2056_v34 = vadd.f32 %v1992_v49, %v1860_v37  ;;  %v2057_v12 = vadd.f32 %v1993_v44, %v1861_v52  ;;  %v1766_v60 = vmul.f32 %v3813_v26, %v4819_v61  ;;  %v4835_v49 = vld [vmem:[#allocation2 + $0x189] sm:$0xff] }
 0x185   : > { %v1767_v48 = vmul.f32 %v3813_v26, %v4821_v30  ;;  %v1241_v62 = vadd.f32 %v1177_v10, %v1044_v59  ;;  %v1242_v29 = vadd.f32 %v1178_v42, %v1045_v41  ;;  %v1962_v17 = vmul.f32 %v3815_v27, %v4827_v43 }
 0x186   : > { %v1963_v35 = vmul.f32 %v3815_v27, %v4829_v20  ;;  %v2252_v44 = vadd.f32 %v2188_v51, %v2056_v34  ;;  %v2253_v58 = vadd.f32 %v2189_v40, %v2057_v12  ;;  %v2158_v55 = vmul.f32 %v3865_v1, %v4835_v49 }
 0x187   : > { %v684_v9 = vmul.f32 %v4671_v38, %v3798_v16  ;;  %v1437_v33 = vadd.f32 %v1373_v39, %v1241_v62  ;;  %v1438_v31 = vadd.f32 %v1374_v5, %v1242_v29  ;;  %v685_v32 = vmul.f32 %v4677_v6, %v3798_v16  ;;  %v4863_v5 = vld [vmem:[#allocation2 + $0x3c7] sm:$0xff] }
 0x188   : > { %v816_v2 = vmul.f32 %v4683_v0, %v3800_v18  ;;  %v2291_v36 = vpack.c.bf16 %v2253_v58, %v2252_v44  ;;  %v817_v4 = vmul.f32 %v4685_v63, %v3800_v18  ;;  %v1012_v51 = vmul.f32 %v4687_v15, %v3803_v21  ;;  %v4875_v29 = vld [vmem:[#allocation2 + $0x3c8] sm:$0xff]  ;;  %v4877_v44 = vld [vmem:[#allocation2 + $0x3d0] sm:$0xff] }
 0x189   : > { %v1013_v40 = vmul.f32 %v4707_v28, %v3803_v21  ;;  %v1633_v45 = vadd.f32 %v1569_v46, %v1437_v33  ;;  %v1634_v38 = vadd.f32 %v1570_v19, %v1438_v31  ;;  %v1209_v6 = vmul.f32 %v4769_v54, %v3805_v22  ;;  %v4869_v19 = vld [vmem:[#allocation2 + $0x3cf] sm:$0xff] }
 0x18a   : > { %v880_v10 = vadd.f32 %v816_v2, %v684_v9  ;;  %3203 = vmatmul.mubr.bf16.gmra.mrb[16].mxu1 %v2291_v36  ;;  %v2159_v0 = vmul.f32 %v3865_v1, %v4851_v56  ;;  %v881_v42 = vadd.f32 %v817_v4, %v685_v32  ;;  %v1210_v63 = vmul.f32 %v4773_v11, %v3805_v22  ;;  %v4879_v58 = vld [vmem:[#allocation2 + $0x3c9] sm:$0xff] }
 0x18b   : > { %v1405_v15 = vmul.f32 %v4777_v53, %v3808_v24  ;;  %v1830_v28 = vadd.f32 %v1766_v60, %v1633_v45  ;;  %v1831_v37 = vadd.f32 %v1767_v48, %v1634_v38  ;;  %v1406_v39 = vmul.f32 %v4781_v23, %v3808_v24 }
 0x18c   : > { %v1076_v52 = vadd.f32 %v1012_v51, %v880_v10  ;;  %v1077_v59 = vadd.f32 %v1013_v40, %v881_v42  ;;  %v1601_v41 = vmul.f32 %v4785_v13, %v3811_v25  ;;  %v1602_v46 = vmul.f32 %v4795_v47, %v3811_v25 }
 0x18d   : > { %v1798_v34 = vmul.f32 %v3813_v26, %v4863_v5  ;;  %v2026_v12 = vadd.f32 %v1962_v17, %v1830_v28  ;;  %v2027_v60 = vadd.f32 %v1963_v35, %v1831_v37  ;;  %v1799_v62 = vmul.f32 %v3813_v26, %v4869_v19 }
 0x18e   : > { %v1273_v48 = vadd.f32 %v1209_v6, %v1076_v52  ;;  %v1274_v9 = vadd.f32 %v1210_v63, %v1077_v59  ;;  %v1994_v33 = vmul.f32 %v3815_v27, %v4875_v29  ;;  %v1995_v31 = vmul.f32 %v3815_v27, %v4877_v44 }
 0x18f   : > { %v2190_v17 = vmul.f32 %v3865_v1, %v4879_v58  ;;  %v2222_v35 = vadd.f32 %v2158_v55, %v2026_v12  ;;  %v2223_v32 = vadd.f32 %v2159_v0, %v2027_v60  ;;  %v654_v36 = vmul.f32 %v4719_v50, %v3798_v16  ;;  %v4899_v50 = vld [vmem:[#allocation2 + $0x3d1] sm:$0xff] }
 0x190   : > { %v1469_v2 = vadd.f32 %v1405_v15, %v1273_v48  ;;  %v1470_v4 = vadd.f32 %v1406_v39, %v1274_v9  ;;  %v655_v51 = vmul.f32 %v4725_v7, %v3798_v16  ;;  %v786_v40 = vmul.f32 %v4731_v14, %v3800_v18  ;;  %v4911_v39 = vld [vmem:[#allocation2 + $0x1a7] sm:$0xff] }
 0x191   : > { %v787_v45 = vmul.f32 %v4733_v57, %v3800_v18  ;;  %v2276_v38 = vpack.c.bf16 %v2223_v32, %v2222_v35  ;;  %v982_v55 = vmul.f32 %v4735_v8, %v3803_v21  ;;  %v983_v6 = vmul.f32 %v4755_v3, %v3803_v21  ;;  %v4923_v35 = vld [vmem:[#allocation2 + $0x1a8] sm:$0xff] }
 0x192   : > { %v1665_v10 = vadd.f32 %v1601_v41, %v1469_v2  ;;  %v1666_v0 = vadd.f32 %v1602_v46, %v1470_v4  ;;  %v850_v42 = vadd.f32 %v786_v40, %v654_v36  ;;  %v1179_v7 = vmul.f32 %v4819_v61, %v3805_v22  ;;  %v4927_v32 = vld [vmem:[#allocation2 + $0x1a9] sm:$0xff] }
 0x193   : > { %v851_v63 = vadd.f32 %v787_v45, %v655_v51  ;;  %3174 = vmatprep.mubr.bf16.mxu0 %v2276_v38  ;;  %v2191_v57 = vmul.f32 %v3865_v1, %v4899_v50  ;;  %v1180_v15 = vmul.f32 %v4821_v30, %v3805_v22  ;;  %v1375_v8 = vmul.f32 %v4827_v43, %v3808_v24 }
 0x194   : > { %v1862_v14 = vadd.f32 %v1798_v34, %v1665_v10  ;;  %v1863_v3 = vadd.f32 %v1799_v62, %v1666_v0  ;;  %v1046_v28 = vadd.f32 %v982_v55, %v850_v42  ;;  %v1376_v52 = vmul.f32 %v4829_v20, %v3808_v24  ;;  %v4917_v34 = vld [vmem:[#allocation2 + $0x1af] sm:$0xff] }
 0x195   : > { %v1047_v37 = vadd.f32 %v983_v6, %v851_v63  ;;  %v1571_v41 = vmul.f32 %v4835_v49, %v3811_v25  ;;  %v1572_v46 = vmul.f32 %v4851_v56, %v3811_v25  ;;  %v1768_v12 = vmul.f32 %v3813_v26, %v4911_v39 }
 0x196   : > { %v2058_v59 = vadd.f32 %v1994_v33, %v1862_v14  ;;  %v2059_v60 = vadd.f32 %v1995_v31, %v1863_v3  ;;  %v1243_v48 = vadd.f32 %v1179_v7, %v1046_v28  ;;  %v1769_v9 = vmul.f32 %v3813_v26, %v4917_v34  ;;  %v4925_v33 = vld [vmem:[#allocation2 + $0x1b0] sm:$0xff] }
 0x197   : > { %v1244_v62 = vadd.f32 %v1180_v15, %v1047_v37  ;;  %v1964_v36 = vmul.f32 %v3815_v27, %v4923_v35  ;;  %v1965_v4 = vmul.f32 %v3815_v27, %v4925_v33  ;;  %v2160_v31 = vmul.f32 %v3865_v1, %v4927_v32  ;;  %v4947_v14 = vld [vmem:[#allocation2 + $0x1b1] sm:$0xff] }
 0x198   : > { %v2254_v2 = vadd.f32 %v2190_v17, %v2058_v59  ;;  %v2255_v51 = vadd.f32 %v2191_v57, %v2059_v60  ;;  %v1439_v40 = vadd.f32 %v1375_v8, %v1243_v48  ;;  %v686_v38 = vmul.f32 %v4769_v54, %v3798_v16  ;;  %v4969_v48 = vld [vmem:[#allocation2 + $0x3e8] sm:$0xff] }
 0x199   : > { %v1440_v45 = vadd.f32 %v1376_v52, %v1244_v62  ;;  %v687_v10 = vmul.f32 %v4773_v11, %v3798_v16  ;;  %v818_v17 = vmul.f32 %v4777_v53, %v3800_v18  ;;  %v819_v55 = vmul.f32 %v4781_v23, %v3800_v18  ;;  %v4961_v52 = vld [vmem:[#allocation2 + $0x3e7] sm:$0xff] }
 0x19a   : > { %v1014_v6 = vmul.f32 %v4785_v13, %v3803_v21  ;;  %v2292_v0 = vpack.c.bf16 %v2255_v51, %v2254_v2  ;;  %v1635_v42 = vadd.f32 %v1571_v41, %v1439_v40  ;;  %v1015_v7 = vmul.f32 %v4795_v47, %v3803_v21  ;;  %v4973_v51 = vld [vmem:[#allocation2 + $0x3f0] sm:$0xff] }
 0x19b   : > { %v1636_v63 = vadd.f32 %v1572_v46, %v1440_v45  ;;  %v882_v54 = vadd.f32 %v818_v17, %v686_v38  ;;  %v883_v57 = vadd.f32 %v819_v55, %v687_v10  ;;  %v1211_v11 = vmul.f32 %v4863_v5, %v3805_v22 }
 0x19c   : > { %v1212_v53 = vmul.f32 %v4869_v19, %v3805_v22  ;;  %3206 = vmatprep.mubr.bf16.mxu1 %v2292_v0  ;;  %v1832_v23 = vadd.f32 %v1768_v12, %v1635_v42  ;;  %v2161_v13 = vmul.f32 %v3865_v1, %v4947_v14  ;;  %v1407_v8 = vmul.f32 %v4875_v29, %v3808_v24  ;;  %v4965_v12 = vld [vmem:[#allocation2 + $0x3ef] sm:$0xff] }
 0x19d   : > { %v1833_v15 = vadd.f32 %v1769_v9, %v1636_v63  ;;  %v1078_v47 = vadd.f32 %v1014_v6, %v882_v54  ;;  %v1079_v3 = vadd.f32 %v1015_v7, %v883_v57  ;;  %v1408_v28 = vmul.f32 %v4877_v44, %v3808_v24  ;;  %v4987_v63 = vld [vmem:[#allocation2 + $0x3f1] sm:$0xff] }
 0x19e   : > { %v1603_v37 = vmul.f32 %v4879_v58, %v3811_v25  ;;  %v2028_v59 = vadd.f32 %v1964_v36, %v1832_v23  ;;  %v1604_v46 = vmul.f32 %v4899_v50, %v3811_v25  ;;  %v1800_v60 = vmul.f32 %v3813_v26, %v4961_v52 }
 0x19f   : > { %v2029_v41 = vadd.f32 %v1965_v4, %v1833_v15  ;;  %v1275_v62 = vadd.f32 %v1211_v11, %v1078_v47  ;;  %v1276_v9 = vadd.f32 %v1212_v53, %v1079_v3  ;;  %v1801_v2 = vmul.f32 %v3813_v26, %v4965_v12  ;;  %v4977_v4 = vld [vmem:[#allocation2 + $0x3e9] sm:$0xff] }
 0x1a0   : > { %v1996_v36 = vmul.f32 %v3815_v27, %v4969_v48  ;;  %v2224_v40 = vadd.f32 %v2160_v31, %v2028_v59  ;;  %v1997_v38 = vmul.f32 %v3815_v27, %v4973_v51  ;;  %v2192_v10 = vmul.f32 %v3865_v1, %v4977_v4  ;;  %v5013_v59 = vld [vmem:[#allocation2 + $0x1cf] sm:$0xff] }
 0x1a1   : > { %v2225_v45 = vadd.f32 %v2161_v13, %v2029_v41  ;;  %v1471_v17 = vadd.f32 %v1407_v8, %v1275_v62  ;;  %v1472_v55 = vadd.f32 %v1408_v28, %v1276_v9  ;;  %v656_v6 = vmul.f32 %v4819_v61, %v3798_v16  ;;  %v5019_v9 = vld [vmem:[#allocation2 + $0x1c8] sm:$0xff] }
 0x1a2   : > { %v657_v0 = vmul.f32 %v4821_v30, %v3798_v16  ;;  %v788_v31 = vmul.f32 %v4827_v43, %v3800_v18  ;;  %v789_v7 = vmul.f32 %v4829_v20, %v3800_v18  ;;  %v984_v54 = vmul.f32 %v4835_v49, %v3803_v21 }
 0x1a3   : > { %v2277_v42 = vpack.c.bf16 %v2225_v45, %v2224_v40  ;;  %v1667_v57 = vadd.f32 %v1603_v37, %v1471_v17  ;;  %v1668_v11 = vadd.f32 %v1604_v46, %v1472_v55  ;;  %v2193_v61 = vmul.f32 %v3865_v1, %v4987_v63  ;;  %v5011_v37 = vld [vmem:[#allocation2 + $0x1c7] sm:$0xff] }
 0x1a4   : > { %v985_v30 = vmul.f32 %v4851_v56, %v3803_v21  ;;  %v852_v53 = vadd.f32 %v788_v31, %v656_v6  ;;  %v853_v23 = vadd.f32 %v789_v7, %v657_v0  ;;  %v1181_v43 = vmul.f32 %v4911_v39, %v3805_v22 }
 0x1a5   : > { %3175 = vmatmul.mubr.bf16.gmra.mrb[20].mxu0 %v2277_v42  ;;  %v1182_v20 = vmul.f32 %v4917_v34, %v3805_v22  ;;  %v1864_v15 = vadd.f32 %v1800_v60, %v1667_v57  ;;  %v1865_v13 = vadd.f32 %v1801_v2, %v1668_v11  ;;  %v1377_v49 = vmul.f32 %v4923_v35, %v3808_v24  ;;  %v5021_v2 = vld [vmem:[#allocation2 + $0x1d0] sm:$0xff] }
 0x1a6   : > { %v1378_v8 = vmul.f32 %v4925_v33, %v3808_v24  ;;  %v1048_v47 = vadd.f32 %v984_v54, %v852_v53  ;;  %v1049_v3 = vadd.f32 %v985_v30, %v853_v23  ;;  %v1573_v56 = vmul.f32 %v4927_v32, %v3811_v25  ;;  %v5043_v23 = vld [vmem:[#allocation2 + $0x1d1] sm:$0xff] }
 0x1a7   : > { %v1574_v28 = vmul.f32 %v4947_v14, %v3811_v25  ;;  %v2060_v41 = vadd.f32 %v1996_v36, %v1864_v15  ;;  %v2061_v46 = vadd.f32 %v1997_v38, %v1865_v13  ;;  %v1770_v60 = vmul.f32 %v3813_v26, %v5011_v37  ;;  %v5027_v36 = vld [vmem:[#allocation2 + $0x1c9] sm:$0xff] }
 0x1a8   : > { %v1771_v62 = vmul.f32 %v3813_v26, %v5013_v59  ;;  %v1245_v40 = vadd.f32 %v1181_v43, %v1048_v47  ;;  %v1246_v45 = vadd.f32 %v1182_v20, %v1049_v3  ;;  %v1966_v17 = vmul.f32 %v3815_v27, %v5019_v9 }
 0x1a9   : > { %v1967_v55 = vmul.f32 %v3815_v27, %v5021_v2  ;;  %v2256_v38 = vadd.f32 %v2192_v10, %v2060_v41  ;;  %v2257_v6 = vadd.f32 %v2193_v61, %v2061_v46  ;;  %v2162_v0 = vmul.f32 %v3865_v1, %v5027_v36 }
 0x1aa   : > { %v688_v42 = vmul.f32 %v4863_v5, %v3798_v16  ;;  %v1441_v31 = vadd.f32 %v1377_v49, %v1245_v40  ;;  %v1442_v7 = vadd.f32 %v1378_v8, %v1246_v45  ;;  %v689_v54 = vmul.f32 %v4869_v19, %v3798_v16  ;;  %v5055_v8 = vld [vmem:[#allocation2 + $0x407] sm:$0xff] }
 0x1ab   : > { %v820_v57 = vmul.f32 %v4875_v29, %v3800_v18  ;;  %v2293_v11 = vpack.c.bf16 %v2257_v6, %v2256_v38  ;;  %v821_v30 = vmul.f32 %v4877_v44, %v3800_v18  ;;  %v1016_v10 = vmul.f32 %v4879_v58, %v3803_v21  ;;  %v5067_v45 = vld [vmem:[#allocation2 + $0x408] sm:$0xff]  ;;  %v5069_v38 = vld [vmem:[#allocation2 + $0x410] sm:$0xff] }
 0x1ac   : > { %v1017_v61 = vmul.f32 %v4899_v50, %v3803_v21  ;;  %v1637_v53 = vadd.f32 %v1573_v56, %v1441_v31  ;;  %v1638_v5 = vadd.f32 %v1574_v28, %v1442_v7  ;;  %v1213_v19 = vmul.f32 %v4961_v52, %v3805_v22  ;;  %v5061_v28 = vld [vmem:[#allocation2 + $0x40f] sm:$0xff] }
 0x1ad   : > { %v884_v43 = vadd.f32 %v820_v57, %v688_v42  ;;  %3207 = vmatmul.mubr.bf16.gmra.mrb[20].mxu1 %v2293_v11  ;;  %v2163_v29 = vmul.f32 %v3865_v1, %v5043_v23  ;;  %v885_v20 = vadd.f32 %v821_v30, %v689_v54  ;;  %v1214_v44 = vmul.f32 %v4965_v12, %v3805_v22  ;;  %v5071_v6 = vld [vmem:[#allocation2 + $0x409] sm:$0xff] }
 0x1ae   : > { %v1409_v58 = vmul.f32 %v4969_v48, %v3808_v24  ;;  %v1834_v50 = vadd.f32 %v1770_v60, %v1637_v53  ;;  %v1835_v15 = vadd.f32 %v1771_v62, %v1638_v5  ;;  %v1410_v49 = vmul.f32 %v4973_v51, %v3808_v24 }
 0x1af   : > { %v1080_v13 = vadd.f32 %v1016_v10, %v884_v43  ;;  %v1081_v47 = vadd.f32 %v1017_v61, %v885_v20  ;;  %v1605_v3 = vmul.f32 %v4977_v4, %v3811_v25  ;;  %v1606_v56 = vmul.f32 %v4987_v63, %v3811_v25 }
 0x1b0   : > { %v1802_v41 = vmul.f32 %v3813_v26, %v5055_v8  ;;  %v2030_v46 = vadd.f32 %v1966_v17, %v1834_v50  ;;  %v2031_v60 = vadd.f32 %v1967_v55, %v1835_v15  ;;  %v1803_v40 = vmul.f32 %v3813_v26, %v5061_v28 }
 0x1b1   : > { %v1277_v62 = vadd.f32 %v1213_v19, %v1080_v13  ;;  %v1278_v42 = vadd.f32 %v1214_v44, %v1081_v47  ;;  %v1998_v31 = vmul.f32 %v3815_v27, %v5067_v45  ;;  %v1999_v7 = vmul.f32 %v3815_v27, %v5069_v38 }
 0x1b2   : > { %v2194_v17 = vmul.f32 %v3865_v1, %v5071_v6  ;;  %v2226_v55 = vadd.f32 %v2162_v0, %v2030_v46  ;;  %v2227_v54 = vadd.f32 %v2163_v29, %v2031_v60  ;;  %v658_v11 = vmul.f32 %v4911_v39, %v3798_v16  ;;  %v5091_v39 = vld [vmem:[#allocation2 + $0x411] sm:$0xff] }
 0x1b3   : > { %v1473_v57 = vadd.f32 %v1409_v58, %v1277_v62  ;;  %v1474_v30 = vadd.f32 %v1410_v49, %v1278_v42  ;;  %v659_v10 = vmul.f32 %v4917_v34, %v3798_v16  ;;  %v790_v61 = vmul.f32 %v4923_v35, %v3800_v18  ;;  %v5103_v49 = vld [vmem:[#allocation2 + $0x1e7] sm:$0xff] }
 0x1b4   : > { %v791_v53 = vmul.f32 %v4925_v33, %v3800_v18  ;;  %v2278_v5 = vpack.c.bf16 %v2227_v54, %v2226_v55  ;;  %v986_v0 = vmul.f32 %v4927_v32, %v3803_v21  ;;  %v987_v19 = vmul.f32 %v4947_v14, %v3803_v21  ;;  %v5115_v55 = vld [vmem:[#allocation2 + $0x1e8] sm:$0xff] }
 0x1b5   : > { %v1669_v43 = vadd.f32 %v1605_v3, %v1473_v57  ;;  %v1670_v29 = vadd.f32 %v1606_v56, %v1474_v30  ;;  %v854_v20 = vadd.f32 %v790_v61, %v658_v11  ;;  %v1183_v34 = vmul.f32 %v5011_v37, %v3805_v22  ;;  %v5119_v54 = vld [vmem:[#allocation2 + $0x1e9] sm:$0xff] }
 0x1b6   : > { %v855_v44 = vadd.f32 %v791_v53, %v659_v10  ;;  %3178 = vmatprep.mubr.bf16.mxu0 %v2278_v5  ;;  %v2195_v33 = vmul.f32 %v3865_v1, %v5091_v39  ;;  %v1184_v58 = vmul.f32 %v5013_v59, %v3805_v22  ;;  %v1379_v32 = vmul.f32 %v5019_v9, %v3808_v24 }
 0x1b7   : > { %v1866_v35 = vadd.f32 %v1802_v41, %v1669_v43  ;;  %v1867_v14 = vadd.f32 %v1803_v40, %v1670_v29  ;;  %v1050_v50 = vadd.f32 %v986_v0, %v854_v20  ;;  %v1380_v13 = vmul.f32 %v5021_v2, %v3808_v24  ;;  %v5109_v41 = vld [vmem:[#allocation2 + $0x1ef] sm:$0xff] }
 0x1b8   : > { %v1051_v15 = vadd.f32 %v987_v19, %v855_v44  ;;  %v1575_v3 = vmul.f32 %v5027_v36, %v3811_v25  ;;  %v1576_v56 = vmul.f32 %v5043_v23, %v3811_v25  ;;  %v1772_v46 = vmul.f32 %v3813_v26, %v5103_v49 }
 0x1b9   : > { %v2062_v47 = vadd.f32 %v1998_v31, %v1866_v35  ;;  %v2063_v60 = vadd.f32 %v1999_v7, %v1867_v14  ;;  %v1247_v62 = vadd.f32 %v1183_v34, %v1050_v50  ;;  %v1773_v42 = vmul.f32 %v3813_v26, %v5109_v41  ;;  %v5117_v31 = vld [vmem:[#allocation2 + $0x1f0] sm:$0xff] }
 0x1ba   : > { %v1248_v40 = vadd.f32 %v1184_v58, %v1051_v15  ;;  %v1968_v11 = vmul.f32 %v3815_v27, %v5115_v55  ;;  %v1969_v30 = vmul.f32 %v3815_v27, %v5117_v31  ;;  %v2164_v7 = vmul.f32 %v3865_v1, %v5119_v54  ;;  %v5139_v35 = vld [vmem:[#allocation2 + $0x1f1] sm:$0xff] }
 0x1bb   : > { %v2258_v57 = vadd.f32 %v2194_v17, %v2062_v47  ;;  %v2259_v10 = vadd.f32 %v2195_v33, %v2063_v60  ;;  %v1443_v61 = vadd.f32 %v1379_v32, %v1247_v62  ;;  %v690_v5 = vmul.f32 %v4961_v52, %v3798_v16  ;;  %v5161_v62 = vld [vmem:[#allocation2 + $0x428] sm:$0xff] }
 0x1bc   : > { %v1444_v53 = vadd.f32 %v1380_v13, %v1248_v40  ;;  %v691_v43 = vmul.f32 %v4965_v12, %v3798_v16  ;;  %v822_v17 = vmul.f32 %v4969_v48, %v3800_v18  ;;  %v823_v0 = vmul.f32 %v4973_v51, %v3800_v18  ;;  %v5153_v13 = vld [vmem:[#allocation2 + $0x427] sm:$0xff] }
 0x1bd   : > { %v1018_v19 = vmul.f32 %v4977_v4, %v3803_v21  ;;  %v2294_v29 = vpack.c.bf16 %v2259_v10, %v2258_v57  ;;  %v1639_v20 = vadd.f32 %v1575_v3, %v1443_v61  ;;  %v1019_v34 = vmul.f32 %v4987_v63, %v3803_v21  ;;  %v5165_v10 = vld [vmem:[#allocation2 + $0x430] sm:$0xff] }
 0x1be   : > { %v1640_v44 = vadd.f32 %v1576_v56, %v1444_v53  ;;  %v886_v52 = vadd.f32 %v822_v17, %v690_v5  ;;  %v887_v33 = vadd.f32 %v823_v0, %v691_v43  ;;  %v1215_v12 = vmul.f32 %v5055_v8, %v3805_v22 }
 0x1bf   : > { %v1216_v48 = vmul.f32 %v5061_v28, %v3805_v22  ;;  %3210 = vmatprep.mubr.bf16.mxu1 %v2294_v29  ;;  %v1836_v51 = vadd.f32 %v1772_v46, %v1639_v20  ;;  %v2165_v4 = vmul.f32 %v3865_v1, %v5139_v35  ;;  %v1411_v32 = vmul.f32 %v5067_v45, %v3808_v24  ;;  %v5157_v46 = vld [vmem:[#allocation2 + $0x42f] sm:$0xff] }
 0x1c0   : > { %v1837_v58 = vadd.f32 %v1773_v42, %v1640_v44  ;;  %v1082_v63 = vadd.f32 %v1018_v19, %v886_v52  ;;  %v1083_v14 = vadd.f32 %v1019_v34, %v887_v33  ;;  %v1412_v50 = vmul.f32 %v5069_v38, %v3808_v24  ;;  %v5179_v44 = vld [vmem:[#allocation2 + $0x431] sm:$0xff] }
 0x1c1   : > { %v1607_v15 = vmul.f32 %v5071_v6, %v3811_v25  ;;  %v2032_v47 = vadd.f32 %v1968_v11, %v1836_v51  ;;  %v1608_v56 = vmul.f32 %v5091_v39, %v3811_v25  ;;  %v1804_v60 = vmul.f32 %v3813_v26, %v5153_v13 }
 0x1c2   : > { %v2033_v3 = vadd.f32 %v1969_v30, %v1837_v58  ;;  %v1279_v40 = vadd.f32 %v1215_v12, %v1082_v63  ;;  %v1280_v42 = vadd.f32 %v1216_v48, %v1083_v14  ;;  %v1805_v57 = vmul.f32 %v3813_v26, %v5157_v46  ;;  %v5169_v30 = vld [vmem:[#allocation2 + $0x429] sm:$0xff] }
 0x1c3   : > { %v2000_v11 = vmul.f32 %v3815_v27, %v5161_v62  ;;  %v2228_v61 = vadd.f32 %v2164_v7, %v2032_v47  ;;  %v2001_v5 = vmul.f32 %v3815_v27, %v5165_v10  ;;  %v2196_v43 = vmul.f32 %v3865_v1, %v5169_v30  ;;  %v5205_v47 = vld [vmem:[#allocation2 + $0x20f] sm:$0xff] }
 0x1c4   : > { %v2229_v53 = vadd.f32 %v2165_v4, %v2033_v3  ;;  %v1475_v17 = vadd.f32 %v1411_v32, %v1279_v40  ;;  %v1476_v0 = vadd.f32 %v1412_v50, %v1280_v42  ;;  %v660_v19 = vmul.f32 %v5011_v37, %v3798_v16 }
 0x1c5   : > { %v661_v29 = vmul.f32 %v5013_v59, %v3798_v16  ;;  %v792_v7 = vmul.f32 %v5019_v9, %v3800_v18  ;;  %v793_v34 = vmul.f32 %v5021_v2, %v3800_v18  ;;  %v988_v52 = vmul.f32 %v5027_v36, %v3803_v21 }
 0x1c6   : > { %v2279_v20 = vpack.c.bf16 %v2229_v53, %v2228_v61  ;;  %v1671_v33 = vadd.f32 %v1607_v15, %v1475_v17  ;;  %v1672_v12 = vadd.f32 %v1608_v56, %v1476_v0  ;;  %v2197_v37 = vmul.f32 %v3865_v1, %v5179_v44  ;;  %v5203_v15 = vld [vmem:[#allocation2 + $0x207] sm:$0xff]  ;;  %v5215_v61 = vld [vmem:[#allocation2 + $0x210] sm:$0xff] }
 0x1c7   : > { %v989_v59 = vmul.f32 %v5043_v23, %v3803_v21  ;;  %v856_v48 = vadd.f32 %v792_v7, %v660_v19  ;;  %v857_v51 = vadd.f32 %v793_v34, %v661_v29  ;;  %v1185_v9 = vmul.f32 %v5103_v49, %v3805_v22 }
 0x1c8   : > { %3179 = vmatmul.mubr.bf16.gmra.mrb[24].mxu0 %v2279_v20  ;;  %v1186_v2 = vmul.f32 %v5109_v41, %v3805_v22  ;;  %v1868_v58 = vadd.f32 %v1804_v60, %v1671_v33  ;;  %v1869_v4 = vadd.f32 %v1805_v57, %v1672_v12  ;;  %v1381_v36 = vmul.f32 %v5115_v55, %v3808_v24  ;;  %v5213_v57 = vld [vmem:[#allocation2 + $0x208] sm:$0xff] }
 0x1c9   : > { %v1382_v32 = vmul.f32 %v5117_v31, %v3808_v24  ;;  %v1052_v63 = vadd.f32 %v988_v52, %v856_v48  ;;  %v1053_v14 = vadd.f32 %v989_v59, %v857_v51  ;;  %v1577_v23 = vmul.f32 %v5119_v54, %v3811_v25 }
 0x1ca   : > { %v1578_v50 = vmul.f32 %v5139_v35, %v3811_v25  ;;  %v5207_v3 = vpop.f32.mrb[0].mxu0  ;;  %v2064_v56 = vadd.f32 %v2000_v11, %v1868_v58  ;;  %v2065_v60 = vadd.f32 %v2001_v5, %v1869_v4  ;;  %v1774_v40 = vmul.f32 %v3813_v26, %v5203_v15  ;;  %v5223_v5 = vld [vmem:[#allocation2 + $0x209] sm:$0xff]  ;;  %v5243_v4 = vld [vmem:[#allocation2 + $0x211] sm:$0xff] }
 0x1cb   : > { %v1775_v42 = vmul.f32 %v3813_v26, %v5205_v47  ;;  %v5217_v53 = vpop.f32.mrb[1].mxu0  ;;  %v1249_v17 = vadd.f32 %v1185_v9, %v1052_v63  ;;  %v1250_v0 = vadd.f32 %v1186_v2, %v1053_v14  ;;  %v1970_v19 = vmul.f32 %v3815_v27, %v5213_v57 }
 0x1cc   : > { %v1971_v11 = vmul.f32 %v3815_v27, %v5215_v61  ;;  %v5225_v29 = vpop.f32.mrb[2].mxu0  ;;  %v2260_v20 = vadd.f32 %v2196_v43, %v2064_v56  ;;  %v2261_v7 = vadd.f32 %v2197_v37, %v2065_v60  ;;  %v2166_v34 = vmul.f32 %v3865_v1, %v5223_v5 }
 0x1cd   : > { %v692_v52 = vmul.f32 %v5055_v8, %v3798_v16  ;;  %v5231_v33 = vpop.f32.mrb[3].mxu0  ;;  %v1445_v12 = vadd.f32 %v1381_v36, %v1249_v17  ;;  %v1446_v59 = vadd.f32 %v1382_v32, %v1250_v0  ;;  %v693_v48 = vmul.f32 %v5061_v28, %v3798_v16 }
 0x1ce   : > { %5744 = vst [vmem:[#allocation16_spill] sm:$0xff] %v5231_v33  ;;  %v824_v51 = vmul.f32 %v5067_v45, %v3800_v18  ;;  %v2295_v9 = vpack.c.bf16 %v2261_v7, %v2260_v20  ;;  %v825_v43 = vmul.f32 %v5069_v38, %v3800_v18  ;;  %v1020_v37 = vmul.f32 %v5071_v6, %v3803_v21  ;;  %v5263_v20 = vld [vmem:[#allocation2 + $0x44f] sm:$0xff] }
 0x1cf   : > { %v1021_v8 = vmul.f32 %v5091_v39, %v3803_v21  ;;  %v1641_v2 = vadd.f32 %v1577_v23, %v1445_v12  ;;  %v1642_v58 = vadd.f32 %v1578_v50, %v1446_v59  ;;  %v1217_v28 = vmul.f32 %v5153_v13, %v3805_v22  ;;  %v5255_v50 = vld [vmem:[#allocation2 + $0x447] sm:$0xff] }
 0x1d0   : > { %v888_v36 = vadd.f32 %v824_v51, %v692_v52  ;;  %3211 = vmatmul.mubr.bf16.gmra.mrb[24].mxu1 %v2295_v9  ;;  %v2167_v45 = vmul.f32 %v3865_v1, %v5243_v4  ;;  %v889_v32 = vadd.f32 %v825_v43, %v693_v48  ;;  %v1218_v38 = vmul.f32 %v5157_v46, %v3805_v22  ;;  %v5271_v48 = vld [vmem:[#allocation2 + $0x448] sm:$0xff]  ;;  %v5273_v51 = vld [vmem:[#allocation2 + $0x450] sm:$0xff] }
 0x1d1   : > { %v1413_v6 = vmul.f32 %v5161_v62, %v3808_v24  ;;  %v1838_v39 = vadd.f32 %v1774_v40, %v1641_v2  ;;  %v1839_v63 = vadd.f32 %v1775_v42, %v1642_v58  ;;  %v1414_v23 = vmul.f32 %v5165_v10, %v3808_v24  ;;  %v5257_v56 = vpop.f32.mrb[0].mxu1  ;;  %v5275_v9 = vld [vmem:[#allocation2 + $0x449] sm:$0xff] }
 0x1d2   : > { %v1084_v14 = vadd.f32 %v1020_v37, %v888_v36  ;;  %v1085_v60 = vadd.f32 %v1021_v8, %v889_v32  ;;  %v1609_v17 = vmul.f32 %v5169_v30, %v3811_v25  ;;  %v1610_v0 = vmul.f32 %v5179_v44, %v3811_v25  ;;  %v5267_v42 = vpop.f32.mrb[1].mxu1 }
 0x1d3   : > { %v1806_v40 = vmul.f32 %v3813_v26, %v5255_v50  ;;  %v2034_v7 = vadd.f32 %v1970_v19, %v1838_v39  ;;  %v2035_v52 = vadd.f32 %v1971_v11, %v1839_v63  ;;  %v1807_v59 = vmul.f32 %v3813_v26, %v5263_v20  ;;  %v5277_v43 = vpop.f32.mrb[2].mxu1 }
 0x1d4   : > { %v1281_v12 = vadd.f32 %v1217_v28, %v1084_v14  ;;  %v1282_v37 = vadd.f32 %v1218_v38, %v1085_v60  ;;  %v2002_v8 = vmul.f32 %v3815_v27, %v5271_v48  ;;  %v2003_v19 = vmul.f32 %v3815_v27, %v5273_v51  ;;  %v5285_v2 = vpop.f32.mrb[3].mxu1 }
 0x1d5   : > { %v2198_v11 = vmul.f32 %v3865_v1, %v5275_v9  ;;  %v2230_v58 = vadd.f32 %v2166_v34, %v2034_v7  ;;  %v2231_v36 = vadd.f32 %v2167_v45, %v2035_v52  ;;  %v662_v32 = vmul.f32 %v5103_v49, %v3798_v16  ;;  %v2131_v49 = vld [vmem:[#allocation2 + $0x451] sm:$0xff] }
 0x1d6   : > { %v1477_v28 = vadd.f32 %v1413_v6, %v1281_v12  ;;  %v1478_v39 = vadd.f32 %v1414_v23, %v1282_v37  ;;  %v663_v38 = vmul.f32 %v5109_v41, %v3798_v16  ;;  %v794_v63 = vmul.f32 %v5115_v55, %v3800_v18 }
 0x1d7   : > { %v795_v14 = vmul.f32 %v5117_v31, %v3800_v18  ;;  %v2280_v60 = vpack.c.bf16 %v2231_v36, %v2230_v58  ;;  %v990_v34 = vmul.f32 %v5119_v54, %v3803_v21  ;;  %v991_v45 = vmul.f32 %v5139_v35, %v3803_v21  ;;  %v1709_v58 = vld [vmem:[#allocation2 + $0x22f] sm:$0xff] }
 0x1d8   : > { %v1673_v33 = vadd.f32 %v1609_v17, %v1477_v28  ;;  %v1674_v6 = vadd.f32 %v1610_v0, %v1478_v39  ;;  %v858_v23 = vadd.f32 %v794_v63, %v662_v32  ;;  %v1187_v41 = vmul.f32 %v5203_v15, %v3805_v22  ;;  %v1708_v17 = vld [vmem:[#allocation2 + $0x227] sm:$0xff]  ;;  %v1905_v15 = vld [vmem:[#allocation2 + $0x230] sm:$0xff] }
 0x1d9   : > { %v859_v7 = vadd.f32 %v795_v14, %v663_v38  ;;  %3182 = vmatprep.mubr.bf16.mxu0 %v2280_v60  ;;  %v2199_v52 = vmul.f32 %v3865_v1, %v2131_v49  ;;  %v1188_v31 = vmul.f32 %v5205_v47, %v3805_v22  ;;  %v1383_v54 = vmul.f32 %v5213_v57, %v3808_v24  ;;  %v1904_v36 = vld [vmem:[#allocation2 + $0x228] sm:$0xff] }
 0x1da   : > { %v1870_v55 = vadd.f32 %v1806_v40, %v1673_v33  ;;  %v1871_v12 = vadd.f32 %v1807_v59, %v1674_v6  ;;  %v1054_v35 = vadd.f32 %v990_v34, %v858_v23  ;;  %v1384_v37 = vmul.f32 %v5215_v61, %v3808_v24  ;;  %v2100_v34 = vld [vmem:[#allocation2 + $0x229] sm:$0xff] }
 0x1db   : > { %v1055_v0 = vadd.f32 %v991_v45, %v859_v7  ;;  %v1579_v33 = vmul.f32 %v5223_v5, %v3811_v25  ;;  %v1580_v47 = vmul.f32 %v5243_v4, %v3811_v25  ;;  %v1776_v59 = vmul.f32 %v3813_v26, %v1708_v17  ;;  %v2101_v4 = vld [vmem:[#allocation2 + $0x231] sm:$0xff] }
 0x1dc   : > { %v2066_v28 = vadd.f32 %v2002_v8, %v1870_v55  ;;  %v2067_v40 = vadd.f32 %v2003_v19, %v1871_v12  ;;  %v1251_v32 = vadd.f32 %v1187_v41, %v1054_v35  ;;  %v1777_v38 = vmul.f32 %v3813_v26, %v1709_v58  ;;  %v1936_v12 = vld [vmem:[#allocation2 + $0x468] sm:$0xff]  ;;  %v5342_v58 = vld [vmem:[%s562_s26] ss:$0 sm:$0xff] }
 0x1dd   : > { %v1252_v57 = vadd.f32 %v1188_v31, %v1055_v0  ;;  %v1972_v61 = vmul.f32 %v3815_v27, %v1904_v36  ;;  %v1973_v63 = vmul.f32 %v3815_v27, %v1905_v15  ;;  %v694_v5 = vmul.f32 %v5153_v13, %v3798_v16  ;;  %v1740_v31 = vld [vmem:[#allocation2 + $0x467] sm:$0xff] }
 0x1de   : > { %v2262_v39 = vadd.f32 %v2198_v11, %v2066_v28  ;;  %v2263_v14 = vadd.f32 %v2199_v52, %v2067_v40  ;;  %v1447_v8 = vadd.f32 %v1383_v54, %v1251_v32  ;;  %v695_v19 = vmul.f32 %v5157_v46, %v3798_v16  ;;  %v1741_v54 = vld [vmem:[#allocation2 + $0x46f] sm:$0xff] }
 0x1df   : > { %v1448_v60 = vadd.f32 %v1384_v37, %v1252_v57  ;;  %v826_v11 = vmul.f32 %v5161_v62, %v3800_v18  ;;  %v827_v45 = vmul.f32 %v5165_v10, %v3800_v18  ;;  %v1022_v6 = vmul.f32 %v5169_v30, %v3803_v21  ;;  %v2132_v57 = vld [vmem:[#allocation2 + $0x469] sm:$0xff] }
 0x1e0   : > { %v2296_v23 = vpack.c.bf16 %v2263_v14, %v2262_v39  ;;  %v1643_v7 = vadd.f32 %v1579_v33, %v1447_v8  ;;  %v1023_v13 = vmul.f32 %v5179_v44, %v3803_v21  ;;  %v1219_v16 = vmul.f32 %v5255_v50, %v3805_v22 }
 0x1e1   : > { %v1644_v41 = vadd.f32 %v1580_v47, %v1448_v60  ;;  %v890_v55 = vadd.f32 %v826_v11, %v694_v5  ;;  %v891_v52 = vadd.f32 %v827_v45, %v695_v19  ;;  %v1220_v46 = vmul.f32 %v5263_v20, %v3805_v22  ;;  %v1937_v22 = vld [vmem:[#allocation2 + $0x470] sm:$0xff] }
 0x1e2   : > { %3214 = vmatprep.mubr.bf16.mxu1 %v2296_v23  ;;  %v1840_v62 = vadd.f32 %v1776_v59, %v1643_v7  ;;  %v2168_v10 = vmul.f32 %v3865_v1, %v2100_v34  ;;  %v2169_v30 = vmul.f32 %v3865_v1, %v2101_v4  ;;  %v1415_v44 = vmul.f32 %v5271_v48, %v3808_v24  ;;  %v2133_v59 = vld [vmem:[#allocation2 + $0x471] sm:$0xff] }
 0x1e3   : > { %v1841_v18 = vadd.f32 %v1777_v38, %v1644_v41  ;;  %v1086_v17 = vadd.f32 %v1022_v6, %v890_v55  ;;  %v1087_v21 = vadd.f32 %v1023_v13, %v891_v52  ;;  %v1416_v50 = vmul.f32 %v5273_v51, %v3808_v24 }
 0x1e4   : > { %v2036_v20 = vadd.f32 %v1972_v61, %v1840_v62  ;;  %v1611_v0 = vmul.f32 %v5275_v9, %v3811_v25  ;;  %v1612_v37 = vmul.f32 %v2131_v49, %v3811_v25  ;;  %v1808_v28 = vmul.f32 %v3813_v26, %v1740_v31  ;;  %v5747_v61 = vld [vmem:[#allocation16_spill] sm:$0xff] }
 0x1e5   : > { %v2037_v35 = vadd.f32 %v1973_v63, %v1841_v18  ;;  %v1283_v36 = vadd.f32 %v1219_v16, %v1086_v17  ;;  %v1284_v15 = vadd.f32 %v1220_v46, %v1087_v21  ;;  %v1809_v48 = vmul.f32 %v3813_v26, %v1741_v54 }
 0x1e6   : > { %v2232_v33 = vadd.f32 %v2168_v10, %v2036_v20  ;;  %v2004_v51 = vmul.f32 %v3815_v27, %v1936_v12  ;;  %v2005_v47 = vmul.f32 %v3815_v27, %v1937_v22  ;;  %v5350_v25 = vadd.f32 %v5207_v3, %v5342_v58 }
 0x1e7   : > { %v2233_v24 = vadd.f32 %v2169_v30, %v2037_v35  ;;  %v1479_v40 = vadd.f32 %v1415_v44, %v1283_v36  ;;  %v1480_v32 = vadd.f32 %v1416_v50, %v1284_v15  ;;  %v5354_v9 = vadd.f32 %v5257_v56, %v5342_v58 }
 0x1e8   : > { %5745 = vst [vmem:[#allocation17_spill] sm:$0xff] %v5350_v25  ;;  %v5358_v26 = vadd.f32 %v5342_v58, %v5217_v53  ;;  %v5362_v27 = vadd.f32 %v5342_v58, %v5267_v42  ;;  %v5366_v39 = vadd.f32 %v5225_v29, %v5342_v58  ;;  %v5370_v56 = vadd.f32 %v5277_v43, %v5342_v58 }
 0x1e9   : > { %v2281_v49 = vpack.c.bf16 %v2233_v24, %v2232_v33  ;;  %v1675_v3 = vadd.f32 %v1611_v0, %v1479_v40  ;;  %v1676_v38 = vadd.f32 %v1612_v37, %v1480_v32  ;;  %v5374_v63 = vadd.f32 %v5342_v58, %v5747_v61 }
 0x1ea   : > { %5746 = vst [vmem:[#allocation18_spill] sm:$0xff] %v5366_v39  ;;  %v5378_v53 = vadd.f32 %v5342_v58, %v5285_v2  ;;  %v2200_v29 = vmul.f32 %v3865_v1, %v2132_v57  ;;  %v2201_v8 = vmul.f32 %v3865_v1, %v2133_v59 }
 0x1eb   : > { %5748 = vst [vmem:[#allocation16_spill] sm:$0xff] %v5374_v63  ;;  %3183 = vmatmul.mubr.bf16.gmra.mrb[28].mxu0 %v2281_v49  ;;  %v1872_v42 = vadd.f32 %v1808_v28, %v1675_v3  ;;  %v1873_v14 = vadd.f32 %v1809_v48, %v1676_v38 }
 0x1ec   : > { %v3160_v60 = vpop.f32.mrb[4].mxu0 }
 0x1ed   : > { %v5383_v5 = vadd.f32 %v3160_v60, %v5342_v58  ;;  %v2402_v43 = vpop.f32.mrb[5].mxu0  ;;  %v2068_v34 = vadd.f32 %v2004_v51, %v1872_v42  ;;  %v2069_v4 = vadd.f32 %v2005_v47, %v1873_v14 }
 0x1ee   : > { %v5386_v19 = vadd.f32 %v5342_v58, %v2402_v43  ;;  %v3161_v11 = vpop.f32.mrb[6].mxu0 }
 0x1ef   : > { %5749 = vst [vmem:[#allocation19_spill] sm:$0xff] %v5383_v5  ;;  %v5389_v2 = vadd.f32 %v3161_v11, %v5342_v58  ;;  %v2405_v45 = vpop.f32.mrb[7].mxu0  ;;  %v2264_v6 = vadd.f32 %v2200_v29, %v2068_v34  ;;  %v2265_v23 = vadd.f32 %v2201_v8, %v2069_v4 }
 0x1f0   : > { %v5392_v7 = vadd.f32 %v5342_v58, %v2405_v45 }
 0x1f1   : > { %5750 = vst [vmem:[#allocation20_spill] sm:$0xff] %v5389_v2  ;;  %v2297_v1 = vpack.c.bf16 %v2265_v23, %v2264_v6 }
 0x1f3   : > { %3215 = vmatmul.mubr.bf16.gmra.mrb[28].mxu1 %v2297_v1 }
 0x1f4   : > { %v3192_v41 = vpop.f32.mrb[4].mxu1 }
 0x1f5   : > { %v5395_v13 = vadd.f32 %v3192_v41, %v5342_v58  ;;  %v2530_v55 = vpop.f32.mrb[5].mxu1 }
 0x1f6   : > { %v5398_v52 = vadd.f32 %v5342_v58, %v2530_v55  ;;  %v3193_v16 = vpop.f32.mrb[6].mxu1 }
 0x1f7   : > { %v5401_v46 = vadd.f32 %v3193_v16, %v5342_v58  ;;  %v2533_v62 = vpop.f32.mrb[7].mxu1 }
 0x1f8   : > { %v5404_v18 = vadd.f32 %v5342_v58, %v2533_v62 }
 0x20f   : > { %v3164_v10 = vpop.f32.mrb[8].mxu0 }
 0x210   : > { %v5407_v30 = vadd.f32 %v3164_v10, %v5342_v58  ;;  %v2418_v31 = vpop.f32.mrb[9].mxu0 }
 0x211   : > { %v5410_v54 = vadd.f32 %v5342_v58, %v2418_v31  ;;  %v3165_v17 = vpop.f32.mrb[10].mxu0 }
 0x212   : > { %v5413_v21 = vadd.f32 %v3165_v17, %v5342_v58  ;;  %v2421_v44 = vpop.f32.mrb[11].mxu0 }
 0x213   : > { %v5416_v50 = vadd.f32 %v5342_v58, %v2421_v44 }
 0x217   : > { %v3196_v12 = vpop.f32.mrb[8].mxu1 }
 0x218   : > { %v5419_v22 = vadd.f32 %v3196_v12, %v5342_v58  ;;  %v2546_v20 = vpop.f32.mrb[9].mxu1 }
 0x219   : > { %v5422_v35 = vadd.f32 %v5342_v58, %v2546_v20  ;;  %v3197_v0 = vpop.f32.mrb[10].mxu1 }
 0x21a   : > { %v5425_v37 = vadd.f32 %v3197_v0, %v5342_v58  ;;  %v2549_v36 = vpop.f32.mrb[11].mxu1 }
 0x21b   : > { %v5428_v15 = vadd.f32 %v5342_v58, %v2549_v36 }
 0x232   : > { %v3168_v28 = vpop.f32.mrb[12].mxu0 }
 0x233   : > { %v5431_v48 = vadd.f32 %v3168_v28, %v5342_v58  ;;  %v2434_v33 = vpop.f32.mrb[13].mxu0 }
 0x234   : > { %v5434_v24 = vadd.f32 %v5342_v58, %v2434_v33  ;;  %v3169_v51 = vpop.f32.mrb[14].mxu0 }
 0x235   : > { %v5437_v47 = vadd.f32 %v3169_v51, %v5342_v58  ;;  %v2437_v40 = vpop.f32.mrb[15].mxu0 }
 0x236   : > { %v5440_v32 = vadd.f32 %v5342_v58, %v2437_v40 }
 0x23a   : > { %v3200_v49 = vpop.f32.mrb[12].mxu1 }
 0x23b   : > { %v5443_v57 = vadd.f32 %v3200_v49, %v5342_v58  ;;  %v2562_v59 = vpop.f32.mrb[13].mxu1 }
 0x23c   : > { %v5446_v3 = vadd.f32 %v5342_v58, %v2562_v59  ;;  %v3201_v38 = vpop.f32.mrb[14].mxu1 }
 0x23d   : > { %v5449_v61 = vadd.f32 %v3201_v38, %v5342_v58  ;;  %v2565_v42 = vpop.f32.mrb[15].mxu1 }
 0x23e   : > { %v5452_v14 = vadd.f32 %v5342_v58, %v2565_v42 }
 0x255   : > { %v3172_v29 = vpop.f32.mrb[16].mxu0 }
 0x256   : > { %v5455_v8 = vadd.f32 %v3172_v29, %v5342_v58  ;;  %v2450_v60 = vpop.f32.mrb[17].mxu0 }
 0x257   : > { %v5458_v43 = vadd.f32 %v5342_v58, %v2450_v60  ;;  %v3173_v34 = vpop.f32.mrb[18].mxu0 }
 0x258   : > { %v5461_v4 = vadd.f32 %v3173_v34, %v5342_v58  ;;  %v2453_v11 = vpop.f32.mrb[19].mxu0 }
 0x259   : > { %v5464_v45 = vadd.f32 %v5342_v58, %v2453_v11 }
 0x25d   : > { %v3204_v6 = vpop.f32.mrb[16].mxu1 }
 0x25e   : > { %v5467_v23 = vadd.f32 %v3204_v6, %v5342_v58  ;;  %v2578_v1 = vpop.f32.mrb[17].mxu1 }
 0x25f   : > { %v5470_v41 = vadd.f32 %v5342_v58, %v2578_v1  ;;  %v3205_v55 = vpop.f32.mrb[18].mxu1 }
 0x260   : > { %5751 = vst [vmem:[#allocation21_spill] sm:$0xff] %v5467_v23  ;;  %v5473_v16 = vadd.f32 %v3205_v55, %v5342_v58  ;;  %v2581_v62 = vpop.f32.mrb[19].mxu1 }
 0x261   : > { %5752 = vst [vmem:[#allocation22_spill] sm:$0xff] %v5470_v41  ;;  %v5476_v10 = vadd.f32 %v5342_v58, %v2581_v62 }
 0x262   : > { %5753 = vst [vmem:[#allocation23_spill] sm:$0xff] %v5473_v16 }
 0x263   : > { %5754 = vst [vmem:[#allocation24_spill] sm:$0xff] %v5476_v10 }
 0x278   : > { %v3176_v31 = vpop.f32.mrb[20].mxu0 }
 0x279   : > { %v5479_v17 = vadd.f32 %v3176_v31, %v5342_v58  ;;  %v2466_v44 = vpop.f32.mrb[21].mxu0 }
 0x27a   : > { %v5482_v12 = vadd.f32 %v5342_v58, %v2466_v44  ;;  %v3177_v20 = vpop.f32.mrb[22].mxu0 }
 0x27b   : > { %v5485_v0 = vadd.f32 %v3177_v20, %v5342_v58  ;;  %v2469_v36 = vpop.f32.mrb[23].mxu0 }
 0x27c   : > { %v5488_v28 = vadd.f32 %v5342_v58, %v2469_v36 }
 0x280   : > { %v3208_v33 = vpop.f32.mrb[20].mxu1 }
 0x281   : > { %v5491_v51 = vadd.f32 %v3208_v33, %v5342_v58  ;;  %v2594_v40 = vpop.f32.mrb[21].mxu1 }
 0x282   : > { %v5494_v49 = vadd.f32 %v5342_v58, %v2594_v40  ;;  %v3209_v59 = vpop.f32.mrb[22].mxu1 }
 0x283   : > { %5755 = vst [vmem:[#allocation25_spill] sm:$0xff] %v5491_v51  ;;  %v5497_v38 = vadd.f32 %v3209_v59, %v5342_v58  ;;  %v2597_v42 = vpop.f32.mrb[23].mxu1 }
 0x284   : > { %v5500_v29 = vadd.f32 %v5342_v58, %v2597_v42 }
 0x285   : > { %5756 = vst [vmem:[#allocation26_spill] sm:$0xff] %v5497_v38 }
 0x286   : > { %5757 = vst [vmem:[#allocation27_spill] sm:$0xff] %v5500_v29 }
 0x29b   : > { %v3180_v60 = vpop.f32.mrb[24].mxu0 }
 0x29c   : > { %v5503_v34 = vadd.f32 %v3180_v60, %v5342_v58  ;;  %v2482_v11 = vpop.f32.mrb[25].mxu0 }
 0x29d   : > { %v5506_v6 = vadd.f32 %v5342_v58, %v2482_v11  ;;  %v3181_v1 = vpop.f32.mrb[26].mxu0 }
 0x29e   : > { %v5509_v55 = vadd.f32 %v3181_v1, %v5342_v58  ;;  %v2485_v62 = vpop.f32.mrb[27].mxu0 }
 0x29f   : > { %v5512_v31 = vadd.f32 %v5342_v58, %v2485_v62 }
 0x2a3   : > { %v3212_v44 = vpop.f32.mrb[24].mxu1 }
 0x2a4   : > { %v5515_v20 = vadd.f32 %v3212_v44, %v5342_v58  ;;  %v2610_v36 = vpop.f32.mrb[25].mxu1 }
 0x2a5   : > { %v5518_v33 = vadd.f32 %v5342_v58, %v2610_v36  ;;  %v3213_v40 = vpop.f32.mrb[26].mxu1 }
 0x2a6   : > { %5758 = vst [vmem:[#allocation28_spill] sm:$0xff] %v5515_v20  ;;  %v5521_v59 = vadd.f32 %v3213_v40, %v5342_v58  ;;  %v2613_v42 = vpop.f32.mrb[27].mxu1 }
 0x2a7   : > { %5759 = vst [vmem:[#allocation29_spill] sm:$0xff] %v5518_v33  ;;  %v5524_v60 = vadd.f32 %v5342_v58, %v2613_v42 }
 0x2a8   : > { %5760 = vst [vmem:[#allocation30_spill] sm:$0xff] %v5521_v59 }
 0x2a9   : > { %5761 = vst [vmem:[#allocation31_spill] sm:$0xff] %v5524_v60 }
 0x2be   : > { %v3184_v11 = vpop.f32.mrb[28].mxu0 }
 0x2bf   : > { %v5527_v1 = vadd.f32 %v3184_v11, %v5342_v58  ;;  %v2498_v62 = vpop.f32.mrb[29].mxu0 }
 0x2c0   : > { %v5530_v44 = vadd.f32 %v5342_v58, %v2498_v62  ;;  %v3185_v20 = vpop.f32.mrb[30].mxu0 }
 0x2c1   : > { %v5533_v36 = vadd.f32 %v3185_v20, %v5342_v58  ;;  %v2501_v33 = vpop.f32.mrb[31].mxu0 }
 0x2c2   : > { %v5536_v40 = vadd.f32 %v5342_v58, %v2501_v33  ;;  %v2645_v33 = vmax.f32 (!%p3091_p8), %v5358_v26, 0.0 }
 0x2c4   : > { %2709 = vst [vmem:[#allocation2 + $0x28] sm:$0xff] (!%p3091_p8), %v2645_v33  ;;  %v2659_v33 = vmax.f32 (!%p3091_p8), %v5431_v48, 0.0 }
 0x2c6   : > { %v3216_v59 = vpop.f32.mrb[28].mxu1  ;;  %2644 = sbr.rel (%p3091_p8) target bundleno = 746 (0x2ea), region = 60  ;;  %2723 = vst [vmem:[#allocation2 + $0x108] sm:$0xff] (!%p3091_p8), %v2659_v33  ;;  %v2673_v33 = vmax.f32 (!%p3091_p8), %v5530_v44, 0.0 }
 0x2c7   : > { %v5539_v42 = vadd.f32 %v3216_v59, %v5342_v58  ;;  %v2626_v60 = vpop.f32.mrb[29].mxu1  ;;  %v2646_v59 = vmax.f32 (!%p3091_p8), %v5374_v63, 0.0  ;;  %v2654_v63 = vmax.f32 (!%p3091_p8), %v5416_v50, 0.0 }
 0x2c8   : > { %v5542_v11 = vadd.f32 %v5342_v58, %v2626_v60  ;;  %v3217_v38 = vpop.f32.mrb[30].mxu1  ;;  %v2648_v60 = vmax.f32 (!%p3091_p8), %v5366_v39, 0.0  ;;  %v2656_v39 = vmax.f32 (!%p3091_p8), %v5413_v21, 0.0  ;;  %2737 = vst [vmem:[#allocation2 + $0x1e8] sm:$0xff] (!%p3091_p8), %v2673_v33  ;;  %v2687_v33 = vmax.f32 (!%p3091_p8), %v5419_v22, 0.0 }
 0x2c9   : > { %5762 = vst [vmem:[#allocation32_spill] sm:$0xff] %v5539_v42  ;;  %v5545_v62 = vadd.f32 %v3217_v38, %v5342_v58  ;;  %v2629_v51 = vpop.f32.mrb[31].mxu1  ;;  %v2647_v42 = vmax.f32 (!%p3091_p8), %v5350_v25, 0.0  ;;  %v2650_v38 = vmax.f32 (!%p3091_p8), %v5392_v7, 0.0  ;;  %2710 = vst [vmem:[#allocation2 + $0x30] sm:$0xff] (!%p3091_p8), %v2646_v59  ;;  %v2655_v25 = vmax.f32 (!%p3091_p8), %v5407_v30, 0.0 }
 0x2ca   : > { %5763 = vst [vmem:[#allocation33_spill] sm:$0xff] %v5542_v11  ;;  %v5548_v20 = vadd.f32 %v5342_v58, %v2629_v51  ;;  %v2649_v11 = vmax.f32 (!%p3091_p8), %v5386_v19, 0.0  ;;  %v2652_v58 = vmax.f32 (!%p3091_p8), %v5389_v2, 0.0  ;;  %2712 = vst [vmem:[#allocation2 + $0x50] sm:$0xff] (!%p3091_p8), %v2648_v60  ;;  %v2653_v51 = vmax.f32 (!%p3091_p8), %v5410_v54, 0.0 }
 0x2cb   : > { %5764 = vst [vmem:[#allocation34_spill] sm:$0xff] %v5545_v62  ;;  %v2651_v62 = vmax.f32 (!%p3091_p8), %v5383_v5, 0.0  ;;  %2711 = vst [vmem:[#allocation2 + $0x48] sm:$0xff] (!%p3091_p8), %v2647_v42  ;;  %v2657_v5 = vmax.f32 (!%p3091_p8), %v5434_v24, 0.0  ;;  %v2658_v2 = vmax.f32 (!%p3091_p8), %v5440_v32, 0.0  ;;  %v2660_v42 = vmax.f32 (!%p3091_p8), %v5437_v47, 0.0 }
 0x2cc   : > { %5765 = vst [vmem:[#allocation35_spill] sm:$0xff] %v5548_v20  ;;  %2713 = vst [vmem:[#allocation2 + $0x68] sm:$0xff] (!%p3091_p8), %v2649_v11  ;;  %v2661_v59 = vmax.f32 (!%p3091_p8), %v5458_v43, 0.0  ;;  %v2662_v60 = vmax.f32 (!%p3091_p8), %v5464_v45, 0.0  ;;  %v2663_v11 = vmax.f32 (!%p3091_p8), %v5455_v8, 0.0 }
 0x2cd   : > { %2714 = vst [vmem:[#allocation2 + $0x70] sm:$0xff] %v2650_v38  ;;  %2715 = vst [vmem:[#allocation2 + $0x88] sm:$0xff] %v2651_v62  ;;  %v2664_v62 = vmax.f32 %v5461_v4, 0.0  ;;  %v2665_v38 = vmax.f32 %v5482_v12, 0.0 }
 0x2ce   : > { %2716 = vst [vmem:[#allocation2 + $0x90] sm:$0xff] %v2652_v58  ;;  %2717 = vst [vmem:[#allocation2 + $0xa8] sm:$0xff] %v2653_v51  ;;  %v2666_v58 = vmax.f32 %v5488_v28, 0.0  ;;  %v2670_v51 = vmax.f32 %v5512_v31, 0.0 }
 0x2cf   : > { %2718 = vst [vmem:[#allocation2 + $0xb0] sm:$0xff] %v2654_v63  ;;  %2719 = vst [vmem:[#allocation2 + $0xc8] sm:$0xff] %v2655_v25  ;;  %v2667_v63 = vmax.f32 %v5479_v17, 0.0  ;;  %v2668_v25 = vmax.f32 %v5485_v0, 0.0 }
 0x2d0   : > { %2720 = vst [vmem:[#allocation2 + $0xd0] sm:$0xff] %v2656_v39  ;;  %2721 = vst [vmem:[#allocation2 + $0xe8] sm:$0xff] %v2657_v5  ;;  %v2669_v39 = vmax.f32 %v5506_v6, 0.0  ;;  %v2671_v5 = vmax.f32 %v5503_v34, 0.0 }
 0x2d1   : > { %2722 = vst [vmem:[#allocation2 + $0xf0] sm:$0xff] %v2658_v2  ;;  %2724 = vst [vmem:[#allocation2 + $0x110] sm:$0xff] %v2660_v42  ;;  %v2672_v2 = vmax.f32 %v5509_v55, 0.0  ;;  %v2674_v42 = vmax.f32 %v5536_v40, 0.0 }
 0x2d2   : > { %2725 = vst [vmem:[#allocation2 + $0x128] sm:$0xff] %v2661_v59  ;;  %2726 = vst [vmem:[#allocation2 + $0x130] sm:$0xff] %v2662_v60  ;;  %v2675_v59 = vmax.f32 %v5527_v1, 0.0  ;;  %v2676_v60 = vmax.f32 %v5533_v36, 0.0 }
 0x2d3   : > { %2727 = vst [vmem:[#allocation2 + $0x148] sm:$0xff] %v2663_v11  ;;  %2728 = vst [vmem:[#allocation2 + $0x150] sm:$0xff] %v2664_v62  ;;  %v2677_v11 = vmax.f32 %v5362_v27, 0.0  ;;  %v2678_v62 = vmax.f32 %v5378_v53, 0.0 }
 0x2d4   : > { %2729 = vst [vmem:[#allocation2 + $0x168] sm:$0xff] %v2665_v38  ;;  %2730 = vst [vmem:[#allocation2 + $0x170] sm:$0xff] %v2666_v58  ;;  %v2679_v38 = vmax.f32 %v5354_v9, 0.0  ;;  %v2680_v58 = vmax.f32 %v5370_v56, 0.0 }
 0x2d5   : > { %2731 = vst [vmem:[#allocation2 + $0x188] sm:$0xff] %v2667_v63  ;;  %2732 = vst [vmem:[#allocation2 + $0x190] sm:$0xff] %v2668_v25  ;;  %v2681_v63 = vmax.f32 %v5398_v52, 0.0  ;;  %v2682_v25 = vmax.f32 %v5404_v18, 0.0 }
 0x2d6   : > { %2733 = vst [vmem:[#allocation2 + $0x1a8] sm:$0xff] %v2669_v39  ;;  %2734 = vst [vmem:[#allocation2 + $0x1b0] sm:$0xff] %v2670_v51  ;;  %v2683_v39 = vmax.f32 %v5395_v13, 0.0  ;;  %v2684_v51 = vmax.f32 %v5401_v46, 0.0 }
 0x2d7   : > { %2735 = vst [vmem:[#allocation2 + $0x1c8] sm:$0xff] %v2671_v5  ;;  %2736 = vst [vmem:[#allocation2 + $0x1d0] sm:$0xff] %v2672_v2  ;;  %v2685_v5 = vmax.f32 %v5422_v35, 0.0  ;;  %v2686_v2 = vmax.f32 %v5428_v15, 0.0 }
 0x2d8   : > { %2738 = vst [vmem:[#allocation2 + $0x1f0] sm:$0xff] %v2674_v42  ;;  %2739 = vst [vmem:[#allocation2 + $0x208] sm:$0xff] %v2675_v59  ;;  %v2688_v42 = vmax.f32 %v5425_v37, 0.0  ;;  %v2689_v59 = vmax.f32 %v5446_v3, 0.0 }
 0x2d9   : > { %2740 = vst [vmem:[#allocation2 + $0x210] sm:$0xff] %v2676_v60  ;;  %2741 = vst [vmem:[#allocation2 + $0x268] sm:$0xff] %v2677_v11  ;;  %v2690_v60 = vmax.f32 %v5452_v14, 0.0  ;;  %v2691_v11 = vmax.f32 %v5443_v57, 0.0 }
 0x2da   : > { %2742 = vst [vmem:[#allocation2 + $0x270] sm:$0xff] %v2678_v62  ;;  %2743 = vst [vmem:[#allocation2 + $0x288] sm:$0xff] %v2679_v38  ;;  %v2692_v62 = vmax.f32 %v5449_v61, 0.0  ;;  %v2693_v38 = vmax.f32 %v5470_v41, 0.0  ;;  %v5769_v41 = vld [vmem:[#allocation31_spill] sm:$0xff] }
 0x2db   : > { %2744 = vst [vmem:[#allocation2 + $0x290] sm:$0xff] %v2680_v58  ;;  %2745 = vst [vmem:[#allocation2 + $0x2a8] sm:$0xff] %v2681_v63  ;;  %v2694_v58 = vmax.f32 %v5476_v10, 0.0  ;;  %v2695_v63 = vmax.f32 %v5467_v23, 0.0  ;;  %v5768_v10 = vld [vmem:[#allocation29_spill] sm:$0xff] }
 0x2dc   : > { %2746 = vst [vmem:[#allocation2 + $0x2b0] sm:$0xff] %v2682_v25  ;;  %2747 = vst [vmem:[#allocation2 + $0x2c8] sm:$0xff] %v2683_v39  ;;  %v2696_v25 = vmax.f32 %v5473_v16, 0.0  ;;  %v2697_v39 = vmax.f32 %v5494_v49, 0.0  ;;  %v2701_v23 = vmax.f32 %v5768_v10, 0.0  ;;  %v2702_v16 = vmax.f32 %v5769_v41, 0.0 }
 0x2dd   : > { %2748 = vst [vmem:[#allocation2 + $0x2d0] sm:$0xff] %v2684_v51  ;;  %2749 = vst [vmem:[#allocation2 + $0x2e8] sm:$0xff] %v2685_v5  ;;  %v2698_v51 = vmax.f32 %v5500_v29, 0.0  ;;  %v5766_v5 = vld [vmem:[#allocation25_spill] sm:$0xff] }
 0x2de   : > { %2750 = vst [vmem:[#allocation2 + $0x2f0] sm:$0xff] %v2686_v2  ;;  %2751 = vst [vmem:[#allocation2 + $0x308] sm:$0xff] %v2687_v33  ;;  %v2699_v2 = vmax.f32 %v5766_v5, 0.0  ;;  %v5767_v33 = vld [vmem:[#allocation26_spill] sm:$0xff]  ;;  %v5772_v29 = vld [vmem:[#allocation33_spill] sm:$0xff] }
 0x2df   : > { %2752 = vst [vmem:[#allocation2 + $0x310] sm:$0xff] %v2688_v42  ;;  %2753 = vst [vmem:[#allocation2 + $0x328] sm:$0xff] %v2689_v59  ;;  %v2700_v42 = vmax.f32 %v5767_v33, 0.0  ;;  %v5770_v59 = vld [vmem:[#allocation28_spill] sm:$0xff]  ;;  %v2705_v5 = vmax.f32 %v5772_v29, 0.0  ;;  %v2706_v33 = vmax.f32 %v5548_v20, 0.0 }
 0x2e0   : > { %2754 = vst [vmem:[#allocation2 + $0x330] sm:$0xff] %v2690_v60  ;;  %2755 = vst [vmem:[#allocation2 + $0x348] sm:$0xff] %v2691_v11  ;;  %v2703_v60 = vmax.f32 %v5770_v59, 0.0  ;;  %v5771_v11 = vld [vmem:[#allocation30_spill] sm:$0xff] }
 0x2e1   : > { %2756 = vst [vmem:[#allocation2 + $0x350] sm:$0xff] %v2692_v62  ;;  %2757 = vst [vmem:[#allocation2 + $0x368] sm:$0xff] %v2693_v38  ;;  %v2704_v62 = vmax.f32 %v5771_v11, 0.0  ;;  %v5773_v38 = vld [vmem:[#allocation32_spill] sm:$0xff] }
 0x2e2   : > { %2758 = vst [vmem:[#allocation2 + $0x370] sm:$0xff] %v2694_v58  ;;  %2759 = vst [vmem:[#allocation2 + $0x388] sm:$0xff] %v2695_v63  ;;  %v2707_v58 = vmax.f32 %v5773_v38, 0.0  ;;  %v5774_v63 = vld [vmem:[#allocation34_spill] sm:$0xff] }
 0x2e3   : > { %2760 = vst [vmem:[#allocation2 + $0x390] sm:$0xff] %v2696_v25  ;;  %2761 = vst [vmem:[#allocation2 + $0x3a8] sm:$0xff] %v2697_v39  ;;  %v2708_v25 = vmax.f32 %v5774_v63, 0.0 }
 0x2e4   : > { %2762 = vst [vmem:[#allocation2 + $0x3b0] sm:$0xff] %v2698_v51  ;;  %2763 = vst [vmem:[#allocation2 + $0x3c8] sm:$0xff] %v2699_v2 }
 0x2e5   : > { %2764 = vst [vmem:[#allocation2 + $0x3d0] sm:$0xff] %v2700_v42  ;;  %2765 = vst [vmem:[#allocation2 + $0x3e8] sm:$0xff] %v2701_v23 }
 0x2e6   : > { %2766 = vst [vmem:[#allocation2 + $0x3f0] sm:$0xff] %v2702_v16  ;;  %2767 = vst [vmem:[#allocation2 + $0x408] sm:$0xff] %v2703_v60 }
 0x2e7   : > { %2768 = vst [vmem:[#allocation2 + $0x410] sm:$0xff] %v2704_v62  ;;  %2769 = vst [vmem:[#allocation2 + $0x428] sm:$0xff] %v2705_v5 }
 0x2e8   : > { %2770 = vst [vmem:[#allocation2 + $0x430] sm:$0xff] %v2706_v33  ;;  %2771 = vst [vmem:[#allocation2 + $0x448] sm:$0xff] %v2707_v58 }
 0x2e9   : > { %2772 = vst [vmem:[#allocation2 + $0x450] sm:$0xff] %v2708_v25 }
 0x2ea PF: > { %p3092_p10 = scmp.ne.s32.totalorder %s3491_s15, 5 }
 0x2eb   : > { %v2777_v41 = vld [vmem:[#allocation3] sm:$0xff] (!%p3092_p10)  ;;  %v2778_v10 = vld [vmem:[#allocation3 + $0x8] sm:$0xff] (!%p3092_p10)  ;;  %v2779_v29 = vld [vmem:[#allocation3 + $0x10] sm:$0xff] (!%p3092_p10) }
 0x2ec   : > { %2776 = sbr.rel (%p3092_p10) target bundleno = 787 (0x313), region = 64  ;;  %v2841_v39 = vadd.f32 (!%p3092_p10), %v2777_v41, %v5358_v26  ;;  %v5775_v51 = vld [vmem:[#allocation16_spill] sm:$0xff] (!%p3092_p10)  ;;  %v5776_v42 = vld [vmem:[#allocation17_spill] sm:$0xff] (!%p3092_p10)  ;;  %v2781_v59 = vld [vmem:[#allocation3 + $0x20] sm:$0xff] (!%p3092_p10) }
 0x2ed   : > { %v2842_v2 = vadd.f32 (!%p3092_p10), %v2778_v10, %v5775_v51  ;;  %v2843_v23 = vadd.f32 (!%p3092_p10), %v2779_v29, %v5776_v42  ;;  %v2780_v16 = vld [vmem:[#allocation3 + $0x18] sm:$0xff] (!%p3092_p10)  ;;  %v2782_v60 = vld [vmem:[#allocation3 + $0x28] sm:$0xff] (!%p3092_p10)  ;;  %v2845_v5 = vadd.f32 (!%p3092_p10), %v2781_v59, %v5386_v19  ;;  %v2783_v38 = vld [vmem:[#allocation3 + $0x30] sm:$0xff] (!%p3092_p10) }
 0x2ee   : > { %v5777_v11 = vld [vmem:[#allocation18_spill] sm:$0xff] (!%p3092_p10)  ;;  %v2846_v33 = vadd.f32 (!%p3092_p10), %v2782_v60, %v5392_v7  ;;  %2905 = vst [vmem:[#allocation11] sm:$0xff] (!%p3092_p10), %v2841_v39  ;;  %v5778_v26 = vld [vmem:[#allocation19_spill] sm:$0xff] (!%p3092_p10)  ;;  %v5779_v41 = vld [vmem:[#allocation20_spill] sm:$0xff] (!%p3092_p10) }
 0x2ef   : > { %v2844_v62 = vadd.f32 (!%p3092_p10), %v2780_v16, %v5777_v11  ;;  %v2784_v58 = vld [vmem:[#allocation3 + $0x38] sm:$0xff] (!%p3092_p10)  ;;  %v2785_v63 = vld [vmem:[#allocation3 + $0x40] sm:$0xff] (!%p3092_p10)  ;;  %2906 = vst [vmem:[#allocation11 + $0x8] sm:$0xff] (!%p3092_p10), %v2842_v2  ;;  %2907 = vst [vmem:[#allocation11 + $0x10] sm:$0xff] (!%p3092_p10), %v2843_v23  ;;  %v2847_v25 = vadd.f32 (!%p3092_p10), %v2783_v38, %v5778_v26 }
 0x2f0   : > { %v2848_v10 = vadd.f32 (!%p3092_p10), %v2784_v58, %v5779_v41  ;;  %v2849_v29 = vadd.f32 (!%p3092_p10), %v2785_v63, %v5410_v54  ;;  %v2786_v51 = vld [vmem:[#allocation3 + $0x48] sm:$0xff] (!%p3092_p10)  ;;  %v2787_v42 = vld [vmem:[#allocation3 + $0x50] sm:$0xff] (!%p3092_p10)  ;;  %v2788_v20 = vld [vmem:[#allocation3 + $0x58] sm:$0xff] (!%p3092_p10)  ;;  %2909 = vst [vmem:[#allocation11 + $0x20] sm:$0xff] (!%p3092_p10), %v2845_v5 }
 0x2f1   : > { %2908 = vst [vmem:[#allocation11 + $0x18] sm:$0xff] (!%p3092_p10), %v2844_v62  ;;  %2910 = vst [vmem:[#allocation11 + $0x28] sm:$0xff] (!%p3092_p10), %v2846_v33  ;;  %v2850_v19 = vadd.f32 (!%p3092_p10), %v2786_v51, %v5416_v50  ;;  %v2851_v7 = vadd.f32 (!%p3092_p10), %v2787_v42, %v5407_v30  ;;  %v2852_v39 = vadd.f32 (!%p3092_p10), %v2788_v20, %v5413_v21  ;;  %v2789_v2 = vld [vmem:[#allocation3 + $0x60] sm:$0xff] (!%p3092_p10)  ;;  %v2790_v23 = vld [vmem:[#allocation3 + $0x68] sm:$0xff] (!%p3092_p10) }
 0x2f2   : > { %v2791_v16 = vld [vmem:[#allocation3 + $0x70] sm:$0xff] (!%p3092_p10)  ;;  %2911 = vst [vmem:[#allocation11 + $0x30] sm:$0xff] (!%p3092_p10), %v2847_v25  ;;  %2912 = vst [vmem:[#allocation11 + $0x38] sm:$0xff] (!%p3092_p10), %v2848_v10  ;;  %v2853_v54 = vadd.f32 (!%p3092_p10), %v2789_v2, %v5434_v24  ;;  %v2854_v59 = vadd.f32 (!%p3092_p10), %v2790_v23, %v5440_v32  ;;  %v2792_v11 = vld [vmem:[#allocation3 + $0x78] sm:$0xff] (!%p3092_p10) }
 0x2f3   : > { %2913 = vst [vmem:[#allocation11 + $0x40] sm:$0xff] %v2849_v29  ;;  %v2855_v60 = vadd.f32 %v2791_v16, %v5431_v48  ;;  %v2793_v62 = vld [vmem:[#allocation3 + $0x80] sm:$0xff]  ;;  %v2794_v5 = vld [vmem:[#allocation3 + $0x88] sm:$0xff]  ;;  %2914 = vst [vmem:[#allocation11 + $0x48] sm:$0xff] %v2850_v19  ;;  %v2856_v30 = vadd.f32 %v2792_v11, %v5437_v47 }
 0x2f4   : > { %2915 = vst [vmem:[#allocation11 + $0x50] sm:$0xff] %v2851_v7  ;;  %2916 = vst [vmem:[#allocation11 + $0x58] sm:$0xff] %v2852_v39  ;;  %v2857_v21 = vadd.f32 %v2793_v62, %v5458_v43  ;;  %v2858_v50 = vadd.f32 %v2794_v5, %v5464_v45  ;;  %v2795_v20 = vld [vmem:[#allocation3 + $0x90] sm:$0xff]  ;;  %v2796_v33 = vld [vmem:[#allocation3 + $0x98] sm:$0xff] }
 0x2f5   : > { %v2797_v38 = vld [vmem:[#allocation3 + $0xa0] sm:$0xff]  ;;  %2917 = vst [vmem:[#allocation11 + $0x60] sm:$0xff] %v2853_v54  ;;  %2918 = vst [vmem:[#allocation11 + $0x68] sm:$0xff] %v2854_v59  ;;  %v2859_v48 = vadd.f32 %v2795_v20, %v5455_v8  ;;  %v2860_v24 = vadd.f32 %v2796_v33, %v5461_v4  ;;  %v2798_v58 = vld [vmem:[#allocation3 + $0xa8] sm:$0xff] }
 0x2f6   : > { %2919 = vst [vmem:[#allocation11 + $0x70] sm:$0xff] %v2855_v60  ;;  %v2861_v32 = vadd.f32 %v2797_v38, %v5482_v12  ;;  %v2799_v63 = vld [vmem:[#allocation3 + $0xb0] sm:$0xff]  ;;  %v2800_v26 = vld [vmem:[#allocation3 + $0xb8] sm:$0xff]  ;;  %2920 = vst [vmem:[#allocation11 + $0x78] sm:$0xff] %v2856_v30  ;;  %v2862_v47 = vadd.f32 %v2798_v58, %v5488_v28 }
 0x2f7   : > { %2921 = vst [vmem:[#allocation11 + $0x80] sm:$0xff] %v2857_v21  ;;  %2922 = vst [vmem:[#allocation11 + $0x88] sm:$0xff] %v2858_v50  ;;  %v2863_v43 = vadd.f32 %v2799_v63, %v5479_v17  ;;  %v2864_v45 = vadd.f32 %v2800_v26, %v5485_v0  ;;  %v2801_v25 = vld [vmem:[#allocation3 + $0xc0] sm:$0xff]  ;;  %v2802_v41 = vld [vmem:[#allocation3 + $0xc8] sm:$0xff] }
 0x2f8   : > { %v2803_v10 = vld [vmem:[#allocation3 + $0xd0] sm:$0xff]  ;;  %2923 = vst [vmem:[#allocation11 + $0x90] sm:$0xff] %v2859_v48  ;;  %2924 = vst [vmem:[#allocation11 + $0x98] sm:$0xff] %v2860_v24  ;;  %v2865_v8 = vadd.f32 %v2801_v25, %v5506_v6  ;;  %v2866_v4 = vadd.f32 %v2802_v41, %v5512_v31  ;;  %v2804_v29 = vld [vmem:[#allocation3 + $0xd8] sm:$0xff] }
 0x2f9   : > { %2925 = vst [vmem:[#allocation11 + $0xa0] sm:$0xff] %v2861_v32  ;;  %v2867_v12 = vadd.f32 %v2803_v10, %v5503_v34  ;;  %v2805_v51 = vld [vmem:[#allocation3 + $0xe0] sm:$0xff]  ;;  %v2806_v42 = vld [vmem:[#allocation3 + $0xe8] sm:$0xff]  ;;  %2926 = vst [vmem:[#allocation11 + $0xa8] sm:$0xff] %v2862_v47  ;;  %v2868_v17 = vadd.f32 %v2804_v29, %v5509_v55 }
 0x2fa   : > { %2927 = vst [vmem:[#allocation11 + $0xb0] sm:$0xff] %v2863_v43  ;;  %2928 = vst [vmem:[#allocation11 + $0xb8] sm:$0xff] %v2864_v45  ;;  %v2869_v0 = vadd.f32 %v2805_v51, %v5530_v44  ;;  %v2870_v28 = vadd.f32 %v2806_v42, %v5536_v40  ;;  %v2807_v19 = vld [vmem:[#allocation3 + $0xf0] sm:$0xff]  ;;  %v2808_v7 = vld [vmem:[#allocation3 + $0xf8] sm:$0xff] }
 0x2fb   : > { %v2809_v39 = vld [vmem:[#allocation3 + $0x100] sm:$0xff]  ;;  %2929 = vst [vmem:[#allocation11 + $0xc0] sm:$0xff] %v2865_v8  ;;  %2930 = vst [vmem:[#allocation11 + $0xc8] sm:$0xff] %v2866_v4  ;;  %v2871_v34 = vadd.f32 %v2807_v19, %v5527_v1  ;;  %v2872_v6 = vadd.f32 %v2808_v7, %v5533_v36  ;;  %v2810_v2 = vld [vmem:[#allocation3 + $0x108] sm:$0xff] }
 0x2fc   : > { %2931 = vst [vmem:[#allocation11 + $0xd0] sm:$0xff] %v2867_v12  ;;  %v2873_v31 = vadd.f32 %v2809_v39, %v5362_v27  ;;  %v2811_v23 = vld [vmem:[#allocation3 + $0x110] sm:$0xff]  ;;  %v2812_v16 = vld [vmem:[#allocation3 + $0x118] sm:$0xff]  ;;  %2932 = vst [vmem:[#allocation11 + $0xd8] sm:$0xff] %v2868_v17  ;;  %v2874_v55 = vadd.f32 %v2810_v2, %v5378_v53 }
 0x2fd   : > { %2933 = vst [vmem:[#allocation11 + $0xe0] sm:$0xff] %v2869_v0  ;;  %2934 = vst [vmem:[#allocation11 + $0xe8] sm:$0xff] %v2870_v28  ;;  %v2875_v44 = vadd.f32 %v2811_v23, %v5354_v9  ;;  %v2876_v40 = vadd.f32 %v2812_v16, %v5370_v56  ;;  %v2813_v54 = vld [vmem:[#allocation3 + $0x120] sm:$0xff]  ;;  %v2814_v59 = vld [vmem:[#allocation3 + $0x128] sm:$0xff] }
 0x2fe   : > { %v2815_v60 = vld [vmem:[#allocation3 + $0x130] sm:$0xff]  ;;  %2935 = vst [vmem:[#allocation11 + $0xf0] sm:$0xff] %v2871_v34  ;;  %2936 = vst [vmem:[#allocation11 + $0xf8] sm:$0xff] %v2872_v6  ;;  %v2877_v27 = vadd.f32 %v2813_v54, %v5398_v52  ;;  %v2878_v1 = vadd.f32 %v2814_v59, %v5404_v18  ;;  %v2816_v11 = vld [vmem:[#allocation3 + $0x138] sm:$0xff] }
 0x2ff   : > { %2937 = vst [vmem:[#allocation11 + $0x100] sm:$0xff] %v2873_v31  ;;  %v2879_v36 = vadd.f32 %v2815_v60, %v5395_v13  ;;  %v2817_v62 = vld [vmem:[#allocation3 + $0x140] sm:$0xff]  ;;  %v2818_v5 = vld [vmem:[#allocation3 + $0x148] sm:$0xff]  ;;  %2938 = vst [vmem:[#allocation11 + $0x108] sm:$0xff] %v2874_v55  ;;  %v2880_v9 = vadd.f32 %v2816_v11, %v5401_v46 }
 0x300   : > { %2939 = vst [vmem:[#allocation11 + $0x110] sm:$0xff] %v2875_v44  ;;  %2940 = vst [vmem:[#allocation11 + $0x118] sm:$0xff] %v2876_v40  ;;  %v2881_v56 = vadd.f32 %v2817_v62, %v5422_v35  ;;  %v2882_v53 = vadd.f32 %v2818_v5, %v5428_v15  ;;  %v2819_v30 = vld [vmem:[#allocation3 + $0x150] sm:$0xff]  ;;  %v2820_v21 = vld [vmem:[#allocation3 + $0x158] sm:$0xff] }
 0x301   : > { %v2821_v50 = vld [vmem:[#allocation3 + $0x160] sm:$0xff]  ;;  %2941 = vst [vmem:[#allocation11 + $0x120] sm:$0xff] %v2877_v27  ;;  %2942 = vst [vmem:[#allocation11 + $0x128] sm:$0xff] %v2878_v1  ;;  %v2883_v13 = vadd.f32 %v2819_v30, %v5419_v22  ;;  %v2884_v52 = vadd.f32 %v2820_v21, %v5425_v37  ;;  %v2822_v20 = vld [vmem:[#allocation3 + $0x168] sm:$0xff] }
 0x302   : > { %2943 = vst [vmem:[#allocation11 + $0x130] sm:$0xff] %v2879_v36  ;;  %v2885_v18 = vadd.f32 %v2821_v50, %v5446_v3  ;;  %v2823_v33 = vld [vmem:[#allocation3 + $0x170] sm:$0xff]  ;;  %v2824_v38 = vld [vmem:[#allocation3 + $0x178] sm:$0xff]  ;;  %2944 = vst [vmem:[#allocation11 + $0x138] sm:$0xff] %v2880_v9  ;;  %v2886_v46 = vadd.f32 %v2822_v20, %v5452_v14 }
 0x303   : > { %2945 = vst [vmem:[#allocation11 + $0x140] sm:$0xff] %v2881_v56  ;;  %2946 = vst [vmem:[#allocation11 + $0x148] sm:$0xff] %v2882_v53  ;;  %v2887_v35 = vadd.f32 %v2823_v33, %v5443_v57  ;;  %v2888_v15 = vadd.f32 %v2824_v38, %v5449_v61  ;;  %v2825_v48 = vld [vmem:[#allocation3 + $0x180] sm:$0xff]  ;;  %v2826_v24 = vld [vmem:[#allocation3 + $0x188] sm:$0xff] }
 0x304   : > { %v2827_v32 = vld [vmem:[#allocation3 + $0x190] sm:$0xff]  ;;  %2947 = vst [vmem:[#allocation11 + $0x150] sm:$0xff] %v2883_v13  ;;  %2948 = vst [vmem:[#allocation11 + $0x158] sm:$0xff] %v2884_v52  ;;  %v5780_v22 = vld [vmem:[#allocation22_spill] sm:$0xff] }
 0x305   : > { %2949 = vst [vmem:[#allocation11 + $0x160] sm:$0xff] %v2885_v18  ;;  %v2889_v37 = vadd.f32 %v2825_v48, %v5780_v22  ;;  %v5781_v3 = vld [vmem:[#allocation24_spill] sm:$0xff]  ;;  %v5782_v63 = vld [vmem:[#allocation21_spill] sm:$0xff]  ;;  %v2829_v43 = vld [vmem:[#allocation3 + $0x1a0] sm:$0xff] }
 0x306   : > { %v2890_v58 = vadd.f32 %v2826_v24, %v5781_v3  ;;  %v2891_v26 = vadd.f32 %v2827_v32, %v5782_v63  ;;  %v2828_v47 = vld [vmem:[#allocation3 + $0x198] sm:$0xff]  ;;  %v2830_v45 = vld [vmem:[#allocation3 + $0x1a8] sm:$0xff]  ;;  %2950 = vst [vmem:[#allocation11 + $0x168] sm:$0xff] %v2886_v46  ;;  %2951 = vst [vmem:[#allocation11 + $0x170] sm:$0xff] %v2887_v35  ;;  %v2893_v14 = vadd.f32 %v2829_v43, %v5494_v49 }
 0x307   : > { %2952 = vst [vmem:[#allocation11 + $0x178] sm:$0xff] %v2888_v15  ;;  %v5783_v57 = vld [vmem:[#allocation23_spill] sm:$0xff]  ;;  %v2831_v10 = vld [vmem:[#allocation3 + $0x1b0] sm:$0xff]  ;;  %v2832_v8 = vld [vmem:[#allocation3 + $0x1b8] sm:$0xff] }
 0x308   : > { %v2892_v61 = vadd.f32 %v2828_v47, %v5783_v57  ;;  %v5784_v25 = vld [vmem:[#allocation27_spill] sm:$0xff]  ;;  %2953 = vst [vmem:[#allocation11 + $0x180] sm:$0xff] %v2889_v37  ;;  %2954 = vst [vmem:[#allocation11 + $0x188] sm:$0xff] %v2890_v58  ;;  %v5785_v12 = vld [vmem:[#allocation25_spill] sm:$0xff] }
 0x309   : > { %v2894_v41 = vadd.f32 %v2830_v45, %v5784_v25  ;;  %v2833_v4 = vld [vmem:[#allocation3 + $0x1c0] sm:$0xff]  ;;  %2955 = vst [vmem:[#allocation11 + $0x190] sm:$0xff] %v2891_v26  ;;  %v2895_v29 = vadd.f32 %v2831_v10, %v5785_v12  ;;  %v5787_v17 = vld [vmem:[#allocation29_spill] sm:$0xff]  ;;  %v2834_v28 = vld [vmem:[#allocation3 + $0x1c8] sm:$0xff] }
 0x30a   : > { %v5786_v51 = vld [vmem:[#allocation26_spill] sm:$0xff]  ;;  %v2897_v0 = vadd.f32 %v2833_v4, %v5787_v17  ;;  %v2835_v19 = vld [vmem:[#allocation3 + $0x1d0] sm:$0xff]  ;;  %2956 = vst [vmem:[#allocation11 + $0x198] sm:$0xff] %v2892_v61  ;;  %2957 = vst [vmem:[#allocation11 + $0x1a0] sm:$0xff] %v2893_v14 }
 0x30b   : > { %v2896_v42 = vadd.f32 %v2832_v8, %v5786_v51  ;;  %v2836_v7 = vld [vmem:[#allocation3 + $0x1d8] sm:$0xff]  ;;  %2958 = vst [vmem:[#allocation11 + $0x1a8] sm:$0xff] %v2894_v41  ;;  %v5788_v49 = vld [vmem:[#allocation31_spill] sm:$0xff]  ;;  %v5789_v34 = vld [vmem:[#allocation28_spill] sm:$0xff] }
 0x30c   : > { %v2898_v39 = vadd.f32 %v2834_v28, %v5788_v49  ;;  %v2899_v6 = vadd.f32 %v2835_v19, %v5789_v34  ;;  %v5790_v31 = vld [vmem:[#allocation30_spill] sm:$0xff]  ;;  %v2838_v16 = vld [vmem:[#allocation3 + $0x1e8] sm:$0xff]  ;;  %v2839_v55 = vld [vmem:[#allocation3 + $0x1f0] sm:$0xff]  ;;  %2959 = vst [vmem:[#allocation11 + $0x1b0] sm:$0xff] %v2895_v29 }
 0x30d   : > { %v2900_v2 = vadd.f32 %v2836_v7, %v5790_v31  ;;  %v2837_v23 = vld [vmem:[#allocation3 + $0x1e0] sm:$0xff]  ;;  %2960 = vst [vmem:[#allocation11 + $0x1b8] sm:$0xff] %v2896_v42  ;;  %2961 = vst [vmem:[#allocation11 + $0x1c0] sm:$0xff] %v2897_v0  ;;  %v5791_v44 = vld [vmem:[#allocation33_spill] sm:$0xff] }
 0x30e   : > { %v2901_v40 = vadd.f32 %v2837_v23, %v5791_v44  ;;  %v5792_v54 = vld [vmem:[#allocation35_spill] sm:$0xff]  ;;  %v5793_v60 = vld [vmem:[#allocation32_spill] sm:$0xff]  ;;  %v2840_v1 = vld [vmem:[#allocation3 + $0x1f8] sm:$0xff]  ;;  %2962 = vst [vmem:[#allocation11 + $0x1c8] sm:$0xff] %v2898_v39 }
 0x30f   : > { %v2902_v59 = vadd.f32 %v2838_v16, %v5792_v54  ;;  %v2903_v27 = vadd.f32 %v2839_v55, %v5793_v60  ;;  %2963 = vst [vmem:[#allocation11 + $0x1d0] sm:$0xff] %v2899_v6  ;;  %2964 = vst [vmem:[#allocation11 + $0x1d8] sm:$0xff] %v2900_v2  ;;  %v5794_v36 = vld [vmem:[#allocation34_spill] sm:$0xff] }
 0x310   : > { %v2904_v11 = vadd.f32 %v2840_v1, %v5794_v36  ;;  %2965 = vst [vmem:[#allocation11 + $0x1e0] sm:$0xff] %v2901_v40 }
 0x311   : > { %2966 = vst [vmem:[#allocation11 + $0x1e8] sm:$0xff] %v2902_v59  ;;  %2967 = vst [vmem:[#allocation11 + $0x1f0] sm:$0xff] %v2903_v27 }
 0x312   : > { %2968 = vst [vmem:[#allocation11 + $0x1f8] sm:$0xff] %v2904_v11 }
 0x313 PF: > { %s5795_s15 = sadd.s32 4294967295, %s3499_s17   ;;  %s3512_s19 = smov [#allocation11]  }
 0x314   : > { %p5682_p11 = scmp.eq.s32.totalorder %s5795_s15, 5  ;;  %s2979_s27 = sshll.u32 %s3512_s19, 4  ;;  %s2980_s27 = int_to_ptr.vmem [resolvable:$true] %s2979_s27 }
 0x315   : > { %s3435_s20 = scalar_lea.vmem %s2980_s27, 8192  ;;  %p3442_p0 = scmp.lt.s32.totalorder %s2980_s27, %s2980_s27 }
 0x316   : > { %p3436_p12 = scmp.ne.s32.totalorder %s2980_s27, %s3435_s20  ;;  %p3443_p1 = scmp.lt.s32.totalorder %s3435_s20, %s3435_s20 }
 0x318   : > { %p3437_p13 = pnand %p3436_p12, %p5682_p11  ;;  %p3444_p4 = por %p3443_p1, %p3442_p0 }
 0x31a   : > { %p3438_p6 = pneg %p3437_p13 }
 0x31c   : > { %p3445_p7 = pnand %p3444_p4, %p3438_p6 }
 0x31e   : > { %3448 = shalt.err (!%p3445_p7)
}
 0x31f   : > { %s3449_s9 = scalar_lea.hbm %s5721_s4, 8192 }
 0x320   : > { %p3450_p9 = scmp.ne.s32.totalorder %s5721_s4, %s3449_s9  ;;  %p3455_p5 = scmp.lt.u32.totalorder %s3449_s9, %s5721_s4 }
 0x322   : > { %p3451_p3 = pnand %p3450_p9, %p5682_p11 }
 0x324   : > { %p3452_p2 = pneg %p3451_p3 }
 0x326   : > { %p3457_p8 = pnand %p3455_p5, %p3452_p2 }
 0x328   : > { %3460 = shalt.err (!%p3457_p8)
}
 0x329   : > { %s3513_s29 = smov 128   ;;  %s3514_s30 = smov 8  }
 0x32a   : > { %3251 = dma.vmem_to_hbm [thread:$0]  (%p5682_p11), %s2980_s27, 8192, %s5721_s4, [#allocation5], %s3513_s29, %s3513_s29, %s3514_s30  }
 0x32b   : > { %3486 = dma.done.wait (%p5682_p11), [#allocation5], 8192  }
 0x32c   : > { %3488 = vsyncadd (%p5682_p11), [#allocation5], 4294959104 }
 0x32d PF: > { %s18_s17 = sadd.s32 1, %s3499_s17   ;;  %s5797_s15 = smov %s3495_s16 }
 0x32e   : > { %p15_p10 = scmp.ge.s32.totalorder %s18_s17, 8   ;;  %s5798_s16 = smov %s5800_s24 }
 0x330   :  { %17 = sbr.rel (!%p15_p10) target bundleno = 5 (0x5), region = 98 }
 0x337   :  { %2995 = vsyncpa [#allocation4], 1 }
 0x338   :  { %2997 = vsyncpa [#allocation4 + $0x1], 1 }
 0x339   :  { %2998 = vsyncpa [#allocation7], 1 }
 0x33a   :  { %2999 = vsyncpa [#allocation10], 1 }
 0x33b   :  { %3000 = vsyncpa [#allocation5], 1 }
 0x33c   :  { %3002 = vsyncpa [#allocation5 + $0x1], 1 }

</bundles_post_ra>
